<compile_context>
chip_gen: v6e
topology: v6e:2x2x1
jax: 0.10.0
libtpu: 0.0.40
codegen_flags: <defaults>
</compile_context>

<pallas_src>
import numpy as np

import jax
import jax.numpy as jnp
from jax.experimental import pallas as pl
from jax.experimental.pallas import tpu as pltpu


# ----------------------------------------------------------------------------
# Pallas kernels
# ----------------------------------------------------------------------------
def _conv_pool_kernel(v0_ref, v1_ref, v2_ref, v3_ref, t_ref, b_ref, o_ref):
    """Fused 3x3 conv (pad=1) + bias + ReLU + 2x2 max-pool, TM images per step.

    v0..v3 : (M, K) bf16   shifted padded-row views, M = TM * (H//2).
             For pooled row p: v0=row 2p, v1=row 2p+1, v2=row 2p+2, v3=row 2p+3.
    t_ref  : (3, K, 2N) bf16  banded weight banks, column-parity concat along N.
    b_ref  : (1, N) f32       bias row (zero in output pad-column groups).
    o_ref  : (M, N) bf16      pooled, column-padded output rows.
    """
    N = o_ref.shape[1]
    t0, t1, t2 = t_ref[0], t_ref[1], t_ref[2]

    def taps(r0, r1, r2):
        return (jnp.dot(r0, t0, preferred_element_type=jnp.float32)
                + jnp.dot(r1, t1, preferred_element_type=jnp.float32)
                + jnp.dot(r2, t2, preferred_element_type=jnp.float32))

    a_he = taps(v0_ref[...], v1_ref[...], v2_ref[...])     # conv rows h = 2p
    a_ho = taps(v1_ref[...], v2_ref[...], v3_ref[...])     # conv rows h = 2p+1
    m = jnp.maximum(a_he, a_ho)                            # (M, 2N)
    pooled = jnp.maximum(m[:, :N], m[:, N:])               # max over col parity
    # relu(max4(conv) + b) == pool(relu(conv + b)) since b is per-channel.
    o_ref[...] = jnp.maximum(pooled + b_ref[...], 0.0).astype(o_ref.dtype)


def _fc_fused_kernel(x_ref, w1_ref, b1_ref, w2_ref, b2_ref, o_ref):
    """out = relu(x @ W1 + b1) @ W2 + b2, all in one kernel."""
    h = jnp.dot(x_ref[...], w1_ref[...], preferred_element_type=jnp.float32)
    h = jnp.maximum(h + b1_ref[...], 0.0)
    y = jnp.dot(h.astype(w2_ref.dtype), w2_ref[...],
                preferred_element_type=jnp.float32)
    o_ref[...] = (y + b2_ref[...]).astype(o_ref.dtype)


# ----------------------------------------------------------------------------
# Pallas wrappers
# ----------------------------------------------------------------------------
def _pick_tm(batch, mult, target):
    """Smallest multiple of `mult` covering the batch, capped at `target`."""
    return max(mult, min(target, pl.cdiv(batch, mult) * mult))


def conv3x3_relu_pool(xrows, t, brow, *, tm_images):
    """xrows: (B, H, K) bf16 column-padded input rows (K = (W+2)*Cin).
    Returns (B, H//2, N) bf16 pooled, column-padded output (N = brow width)."""
    B, H, K = xrows.shape
    P = H // 2
    N = brow.shape[1]
    TM = tm_images
    Bp = pl.cdiv(B, TM) * TM
    if Bp != B:
        xrows = jnp.pad(xrows, ((0, Bp - B), (0, 0), (0, 0)))

    # Zero top/bottom pad rows, then the four shifted row views, flattened so
    # the kernel's matmul M dimension is TM*P (no in-kernel sublane reshapes).
    xp = jnp.pad(xrows, ((0, 0), (1, 1), (0, 0)))          # (Bp, H+2, K)
    views = [xp[:, s:s + H:2, :].reshape(Bp * P, K) for s in range(4)]

    M = TM * P
    cost = pl.CostEstimate(
        flops=int(6 * 2 * Bp * P * K * (2 * N)),
        transcendentals=0,
        bytes_accessed=int((4 * Bp * P * K + Bp * P * N) * 2
                           + 3 * K * 2 * N * 2 + N * 4))

    out = pl.pallas_call(
        _conv_pool_kernel,
        out_shape=jax.ShapeDtypeStruct((Bp * P, N), jnp.bfloat16),
        grid=(Bp // TM,),
        in_specs=[pl.BlockSpec((M, K), lambda i: (i, 0))] * 4 + [
            pl.BlockSpec((3, K, 2 * N), lambda i: (0, 0, 0)),   # banks, resident
            pl.BlockSpec((1, N), lambda i: (0, 0)),             # bias row
        ],
        out_specs=pl.BlockSpec((M, N), lambda i: (i, 0)),
        compiler_params=pltpu.CompilerParams(
            dimension_semantics=("parallel",)),
        cost_estimate=cost,
    )(*views, t, brow)
    return out.reshape(Bp, P, N)[:B]


def fc_fused(x, w1, b1, w2, b2, *, tm_max=256):
    """relu(x @ w1 + b1) @ w2 + b2.  x: (B, K) bf16 -> (B, Dout) f32."""
    B, K = x.shape
    Hd = w1.shape[1]
    Dout = w2.shape[1]
    Bp = pl.cdiv(B, 8) * 8
    tm = min(tm_max, Bp)
    Bp = pl.cdiv(Bp, tm) * tm
    if Bp != B:
        x = jnp.pad(x, ((0, Bp - B), (0, 0)))

    cost = pl.CostEstimate(
        flops=int(2 * Bp * K * Hd + 2 * Bp * Hd * Dout),
        transcendentals=0,
        bytes_accessed=int(Bp * K * 2 + K * Hd * 2 + Hd * Dout * 2
                           + Bp * Dout * 4))

    out = pl.pallas_call(
        _fc_fused_kernel,
        out_shape=jax.ShapeDtypeStruct((Bp, Dout), jnp.float32),
        grid=(Bp // tm,),
        in_specs=[
            pl.BlockSpec((tm, K), lambda i: (i, 0)),
            pl.BlockSpec((K, Hd), lambda i: (0, 0)),
            pl.BlockSpec((1, Hd), lambda i: (0, 0)),
            pl.BlockSpec((Hd, Dout), lambda i: (0, 0)),
            pl.BlockSpec((1, Dout), lambda i: (0, 0)),
        ],
        out_specs=pl.BlockSpec((tm, Dout), lambda i: (i, 0)),
        compiler_params=pltpu.CompilerParams(
            dimension_semantics=("parallel",)),
        cost_estimate=cost,
    )(x.astype(jnp.bfloat16), w1, b1, w2, b2)
    return out[:B]


# ----------------------------------------------------------------------------
# Parameters (deterministic, PyTorch-shaped) and one-time weight preparation
# ----------------------------------------------------------------------------
def init_params(key):
    ks = jax.random.split(key, 8)
    s = 0.05
    return {
        "conv1_w": jax.random.normal(ks[0], (16, 1, 3, 3), jnp.float32) * s,
        "conv1_b": jax.random.normal(ks[1], (16,), jnp.float32) * s,
        "conv2_w": jax.random.normal(ks[2], (32, 16, 3, 3), jnp.float32) * s,
        "conv2_b": jax.random.normal(ks[3], (32,), jnp.float32) * s,
        "fc1_w": jax.random.normal(ks[4], (128, 32 * 7 * 7), jnp.float32) * s,
        "fc1_b": jax.random.normal(ks[5], (128,), jnp.float32) * s,
        "fc2_w": jax.random.normal(ks[6], (10, 128), jnp.float32) * s,
        "fc2_b": jax.random.normal(ks[7], (10,), jnp.float32) * s,
    }


def prepare_params(params):
    """Host-side, one-time weight prep:
    - conv weights -> parity-concatenated banded matmul banks (3, K, 2N) bf16,
      with output column groups placed so conv1's output is already conv2's
      column-padded input layout (and conv2's output is 256-wide lane-dense);
    - fc1 columns permuted to the padded-NHWC flat order; fc2 padded 10 -> 128.
    """
    def conv_banks(w_oihw, b, W, n_groups, q_offset):
        w = np.asarray(w_oihw, np.float32)              # (Cout, Cin, 3, 3)
        Cout, Cin = w.shape[0], w.shape[1]
        W2 = W // 2
        K = (W + 2) * Cin
        N = n_groups * Cout
        T = np.zeros((2, 3, K, N), np.float32)          # [col-parity, ki, K, N]
        brow = np.zeros((1, N), np.float32)
        for parity in range(2):
            for ki in range(3):
                for q in range(W2):
                    g = q + q_offset                    # output column group
                    wcol = 2 * q + parity               # conv output column
                    for kj in range(3):
                        col = wcol + kj                 # padded input column
                        T[parity, ki,
                          col * Cin:(col + 1) * Cin,
                          g * Cout:(g + 1) * Cout] = w[:, :, ki, kj].T
        for q in range(W2):
            g = q + q_offset
            brow[0, g * Cout:(g + 1) * Cout] = np.asarray(b, np.float32)
        Tc = np.concatenate([T[0], T[1]], axis=-1)      # (3, K, 2N)
        return jnp.asarray(Tc, jnp.bfloat16), jnp.asarray(brow, jnp.float32)

    # conv1: output groups 1..14 real, groups 0 and 15 are exact-zero padding
    # columns -> output rows are directly conv2's (14+2)*16 = 256-wide input.
    t1, b1 = conv_banks(params["conv1_w"], params["conv1_b"], 28,
                        n_groups=16, q_offset=1)
    # conv2: groups 0..6 real, group 7 zero -> 256-wide lane-dense output.
    t2, b2 = conv_banks(params["conv2_w"], params["conv2_b"], 14,
                        n_groups=8, q_offset=0)

    # fc1: our flattened features are (h, w_pad, c) with w_pad in [0, 8) and
    # w_pad == 7 an all-zero pad block; PyTorch flattens NCHW as (c, h, w).
    fc1_w = np.asarray(params["fc1_w"], np.float32)     # (128, 1568)
    h_i, w_i, c_i = np.meshgrid(np.arange(7), np.arange(7), np.arange(32),
                                indexing="ij")
    dst = (h_i * 256 + w_i * 32 + c_i).ravel()
    src = (c_i * 49 + h_i * 7 + w_i).ravel()
    w1p = np.zeros((7 * 256, 128), np.float32)
    w1p[dst] = fc1_w[:, src].T

    # fc2: pad 10 output logits to 128 lanes (sliced back in the wrapper).
    w2p = np.zeros((128, 128), np.float32)
    w2p[:, :10] = np.asarray(params["fc2_w"], np.float32).T
    fb2p = np.zeros((1, 128), np.float32)
    fb2p[0, :10] = np.asarray(params["fc2_b"], np.float32)

    return {
        "t1": t1, "b1": b1, "t2": t2, "b2": b2,
        "w1": jnp.asarray(w1p, jnp.bfloat16),
        "fb1": jnp.asarray(params["fc1_b"], jnp.float32).reshape(1, 128),
        "w2": jnp.asarray(w2p, jnp.bfloat16),
        "fb2": jnp.asarray(fb2p, jnp.float32),
    }


# ----------------------------------------------------------------------------
# Forward pass (mirrors SimpleCNN.forward)
# ----------------------------------------------------------------------------
@jax.jit
def simple_cnn_forward(prep, x_nchw):
    B = x_nchw.shape[0]

    # conv1 input rows: (B, 28, 30) bf16 (Cin = 1, 1-col zero padding).
    x = x_nchw.reshape(B, 28, 28)                       # C == 1
    xrows1 = jnp.pad(x, ((0, 0), (0, 0), (1, 1))).astype(jnp.bfloat16)

    tm1 = _pick_tm(B, 4, 16)    # M = tm1*14 (multiple of 8, ~224 at tm1=16)
    y1 = conv3x3_relu_pool(xrows1, prep["t1"], prep["b1"],
                           tm_images=tm1)               # (B, 14, 256)

    tm2 = _pick_tm(B, 8, 32)    # M = tm2*7 (multiple of 8, ~224 at tm2=32)
    y2 = conv3x3_relu_pool(y1, prep["t2"], prep["b2"],
                           tm_images=tm2)               # (B, 7, 256)

    flat = y2.reshape(B, 7 * 256)                       # padded-NHWC flat, bf16
    logits = fc_fused(flat, prep["w1"], prep["fb1"],
                      prep["w2"], prep["fb2"])          # (B, 128) f32
    return logits[:, :10]


# ----------------------------------------------------------------------------
# Pure-JAX reference (correctness sanity check)
# ----------------------------------------------------------------------------
def reference_forward(params, x):
    def conv(y, w, b):
        y = jax.lax.conv_general_dilated(
            y, w, window_strides=(1, 1), padding="SAME",
            dimension_numbers=("NCHW", "OIHW", "NCHW"))
        return jax.nn.relu(y + b[None, :, None, None])

    def pool(y):
        B, C, H, W = y.shape
        return y.reshape(B, C, H // 2, 2, W // 2, 2).max(axis=(3, 5))

    y = pool(conv(x, params["conv1_w"], params["conv1_b"]))
    y = pool(conv(y, params["conv2_w"], params["conv2_b"]))
    y = y.reshape(y.shape[0], -1)
    y = jax.nn.relu(y @ params["fc1_w"].T + params["fc1_b"])
    return y @ params["fc2_w"].T + params["fc2_b"]


if __name__ == "__main__":
    key = jax.random.PRNGKey(0)
    pkey, xkey = jax.random.split(key)
    params = init_params(pkey)
    prep = prepare_params(params)

    # NCHW input; 28x28 is required by fc1 (32 * 7 * 7 features after 2 pools).
    x = jax.random.normal(xkey, (2, 1, 28, 28), jnp.float32)

    out = simple_cnn_forward(prep, x)
    jax.block_until_ready(out)
    assert out.shape == (2, 10), out.shape

    ref = reference_forward(params, x)
    err = float(jnp.max(jnp.abs(out - ref)))
    assert err < 2.5e-2, f"max abs diff vs reference: {err}"
    print("KERNEL_OK")
</pallas_src>

<mosaic_0001>
module attributes {stable_mosaic.version = 11 : i64} {
  func.func @_conv_pool_kernel(%arg0: i32, %arg1: memref<56x30xbf16, #tpu.memory_space<vmem>>, %arg2: memref<56x30xbf16, #tpu.memory_space<vmem>>, %arg3: memref<56x30xbf16, #tpu.memory_space<vmem>>, %arg4: memref<56x30xbf16, #tpu.memory_space<vmem>>, %arg5: memref<3x30x512xbf16, #tpu.memory_space<vmem>>, %arg6: memref<1x256xf32, #tpu.memory_space<vmem>>, %arg7: memref<56x256xbf16, #tpu.memory_space<vmem>>) attributes {dimension_semantics = [#tpu.dimension_semantics<parallel>], iteration_bounds = array<i64: 1>, scalar_prefetch = 0 : i64, scratch_operands = 0 : i64, tpu.core_type = #tpu.core_type<tc>, window_params = [{transform_indices = @transform_0, window_bounds = array<i64: 56, 30>}, {transform_indices = @transform_1, window_bounds = array<i64: 56, 30>}, {transform_indices = @transform_2, window_bounds = array<i64: 56, 30>}, {transform_indices = @transform_3, window_bounds = array<i64: 56, 30>}, {pipeline_mode = #tpu.pipeline_mode<synchronous>, transform_indices = @transform_4, window_bounds = array<i64: 3, 30, 512>}, {pipeline_mode = #tpu.pipeline_mode<synchronous>, transform_indices = @transform_5, window_bounds = array<i64: 1, 256>}, {transform_indices = @transform_6, window_bounds = array<i64: 56, 256>}]} {
    %c0 = arith.constant 0 : index
    %c0_0 = arith.constant 0 : index
    %c0_1 = arith.constant 0 : index
    %0 = vector.load %arg5[%c0, %c0_0, %c0_1] : memref<3x30x512xbf16, #tpu.memory_space<vmem>>, vector<1x30x512xbf16>
    %1 = vector.shape_cast %0 : vector<1x30x512xbf16> to vector<30x512xbf16>
    %c1 = arith.constant 1 : index
    %c0_2 = arith.constant 0 : index
    %c0_3 = arith.constant 0 : index
    %2 = vector.load %arg5[%c1, %c0_2, %c0_3] : memref<3x30x512xbf16, #tpu.memory_space<vmem>>, vector<1x30x512xbf16>
    %3 = vector.shape_cast %2 : vector<1x30x512xbf16> to vector<30x512xbf16>
    %c2 = arith.constant 2 : index
    %c0_4 = arith.constant 0 : index
    %c0_5 = arith.constant 0 : index
    %4 = vector.load %arg5[%c2, %c0_4, %c0_5] : memref<3x30x512xbf16, #tpu.memory_space<vmem>>, vector<1x30x512xbf16>
    %5 = vector.shape_cast %4 : vector<1x30x512xbf16> to vector<30x512xbf16>
    %c0_6 = arith.constant 0 : index
    %c0_7 = arith.constant 0 : index
    %6 = vector.load %arg1[%c0_6, %c0_7] : memref<56x30xbf16, #tpu.memory_space<vmem>>, vector<56x30xbf16>
    %c0_8 = arith.constant 0 : index
    %c0_9 = arith.constant 0 : index
    %7 = vector.load %arg2[%c0_8, %c0_9] : memref<56x30xbf16, #tpu.memory_space<vmem>>, vector<56x30xbf16>
    %c0_10 = arith.constant 0 : index
    %c0_11 = arith.constant 0 : index
    %8 = vector.load %arg3[%c0_10, %c0_11] : memref<56x30xbf16, #tpu.memory_space<vmem>>, vector<56x30xbf16>
    %cst = arith.constant dense<0.000000e+00> : vector<56x512xf32>
    %9 = tpu.matmul %6, %1, %cst {dimension_numbers = #tpu.dot_dimension_numbers<[1], [0], [0], [1], [0, 0, 1, 1], [], []>} : vector<56x30xbf16>, vector<30x512xbf16>, vector<56x512xf32> -> vector<56x512xf32>
    %cst_12 = arith.constant dense<0.000000e+00> : vector<56x512xf32>
    %10 = tpu.matmul %7, %3, %cst_12 {dimension_numbers = #tpu.dot_dimension_numbers<[1], [0], [0], [1], [0, 0, 1, 1], [], []>} : vector<56x30xbf16>, vector<30x512xbf16>, vector<56x512xf32> -> vector<56x512xf32>
    %11 = arith.addf %9, %10 : vector<56x512xf32>
    %cst_13 = arith.constant dense<0.000000e+00> : vector<56x512xf32>
    %12 = tpu.matmul %8, %5, %cst_13 {dimension_numbers = #tpu.dot_dimension_numbers<[1], [0], [0], [1], [0, 0, 1, 1], [], []>} : vector<56x30xbf16>, vector<30x512xbf16>, vector<56x512xf32> -> vector<56x512xf32>
    %13 = arith.addf %11, %12 : vector<56x512xf32>
    %c0_14 = arith.constant 0 : index
    %c0_15 = arith.constant 0 : index
    %14 = vector.load %arg2[%c0_14, %c0_15] : memref<56x30xbf16, #tpu.memory_space<vmem>>, vector<56x30xbf16>
    %c0_16 = arith.constant 0 : index
    %c0_17 = arith.constant 0 : index
    %15 = vector.load %arg3[%c0_16, %c0_17] : memref<56x30xbf16, #tpu.memory_space<vmem>>, vector<56x30xbf16>
    %c0_18 = arith.constant 0 : index
    %c0_19 = arith.constant 0 : index
    %16 = vector.load %arg4[%c0_18, %c0_19] : memref<56x30xbf16, #tpu.memory_space<vmem>>, vector<56x30xbf16>
    %cst_20 = arith.constant dense<0.000000e+00> : vector<56x512xf32>
    %17 = tpu.matmul %14, %1, %cst_20 {dimension_numbers = #tpu.dot_dimension_numbers<[1], [0], [0], [1], [0, 0, 1, 1], [], []>} : vector<56x30xbf16>, vector<30x512xbf16>, vector<56x512xf32> -> vector<56x512xf32>
    %cst_21 = arith.constant dense<0.000000e+00> : vector<56x512xf32>
    %18 = tpu.matmul %15, %3, %cst_21 {dimension_numbers = #tpu.dot_dimension_numbers<[1], [0], [0], [1], [0, 0, 1, 1], [], []>} : vector<56x30xbf16>, vector<30x512xbf16>, vector<56x512xf32> -> vector<56x512xf32>
    %19 = arith.addf %17, %18 : vector<56x512xf32>
    %cst_22 = arith.constant dense<0.000000e+00> : vector<56x512xf32>
    %20 = tpu.matmul %16, %5, %cst_22 {dimension_numbers = #tpu.dot_dimension_numbers<[1], [0], [0], [1], [0, 0, 1, 1], [], []>} : vector<56x30xbf16>, vector<30x512xbf16>, vector<56x512xf32> -> vector<56x512xf32>
    %21 = arith.addf %19, %20 : vector<56x512xf32>
    %22 = arith.maximumf %13, %21 : vector<56x512xf32>
    %23 = vector.extract_strided_slice %22 {offsets = [0, 0], sizes = [56, 256], strides = [1, 1]} : vector<56x512xf32> to vector<56x256xf32>
    %24 = vector.extract_strided_slice %22 {offsets = [0, 256], sizes = [56, 256], strides = [1, 1]} : vector<56x512xf32> to vector<56x256xf32>
    %25 = arith.maximumf %23, %24 : vector<56x256xf32>
    %c0_23 = arith.constant 0 : index
    %c0_24 = arith.constant 0 : index
    %26 = vector.load %arg6[%c0_23, %c0_24] : memref<1x256xf32, #tpu.memory_space<vmem>>, vector<1x256xf32>
    %27 = vector.broadcast %26 : vector<1x256xf32> to vector<56x256xf32>
    %28 = arith.addf %25, %27 : vector<56x256xf32>
    %cst_25 = arith.constant 0.000000e+00 : f32
    %29 = vector.broadcast %cst_25 : f32 to vector<56x256xf32>
    %30 = arith.maximumf %28, %29 : vector<56x256xf32>
    %31 = arith.truncf %30 : vector<56x256xf32> to vector<56x256xbf16>
    %c0_26 = arith.constant 0 : index
    %c0_27 = arith.constant 0 : index
    %32 = vector.load %arg7[%c0_26, %c0_27] : memref<56x256xbf16, #tpu.memory_space<vmem>>, vector<56x256xbf16>
    tpu.vector_store %arg7[%c0_26, %c0_27], %31 {strides = array<i32>} : memref<56x256xbf16, #tpu.memory_space<vmem>>, vector<56x256xbf16>,
    return
  }
  func.func @transform_0(%arg0: i32) -> (i32, i32) {
    %c0_i32 = arith.constant 0 : i32
    %c0_i32_0 = arith.constant 0 : i32
    return %arg0, %c0_i32 : i32, i32
  }
  func.func @transform_1(%arg0: i32) -> (i32, i32) {
    %c0_i32 = arith.constant 0 : i32
    %c0_i32_0 = arith.constant 0 : i32
    return %arg0, %c0_i32 : i32, i32
  }
  func.func @transform_2(%arg0: i32) -> (i32, i32) {
    %c0_i32 = arith.constant 0 : i32
    %c0_i32_0 = arith.constant 0 : i32
    return %arg0, %c0_i32 : i32, i32
  }
  func.func @transform_3(%arg0: i32) -> (i32, i32) {
    %c0_i32 = arith.constant 0 : i32
    %c0_i32_0 = arith.constant 0 : i32
    return %arg0, %c0_i32 : i32, i32
  }
  func.func @transform_4(%arg0: i32) -> (i32, i32, i32) {
    %c0_i32 = arith.constant 0 : i32
    %c0_i32_0 = arith.constant 0 : i32
    %c0_i32_1 = arith.constant 0 : i32
    %c0_i32_2 = arith.constant 0 : i32
    return %c0_i32, %c0_i32_0, %c0_i32_1 : i32, i32, i32
  }
  func.func @transform_5(%arg0: i32) -> (i32, i32) {
    %c0_i32 = arith.constant 0 : i32
    %c0_i32_0 = arith.constant 0 : i32
    %c0_i32_1 = arith.constant 0 : i32
    return %c0_i32, %c0_i32_0 : i32, i32
  }
  func.func @transform_6(%arg0: i32) -> (i32, i32) {
    %c0_i32 = arith.constant 0 : i32
    %c0_i32_0 = arith.constant 0 : i32
    return %arg0, %c0_i32 : i32, i32
  }
}

module attributes {stable_mosaic.version = 11 : i64} {
  func.func @_conv_pool_kernel(%arg0: i32, %arg1: memref<56x256xbf16, #tpu.memory_space<vmem>>, %arg2: memref<56x256xbf16, #tpu.memory_space<vmem>>, %arg3: memref<56x256xbf16, #tpu.memory_space<vmem>>, %arg4: memref<56x256xbf16, #tpu.memory_space<vmem>>, %arg5: memref<3x256x512xbf16, #tpu.memory_space<vmem>>, %arg6: memref<1x256xf32, #tpu.memory_space<vmem>>, %arg7: memref<56x256xbf16, #tpu.memory_space<vmem>>) attributes {dimension_semantics = [#tpu.dimension_semantics<parallel>], iteration_bounds = array<i64: 1>, scalar_prefetch = 0 : i64, scratch_operands = 0 : i64, tpu.core_type = #tpu.core_type<tc>, window_params = [{transform_indices = @transform_0, window_bounds = array<i64: 56, 256>}, {transform_indices = @transform_1, window_bounds = array<i64: 56, 256>}, {transform_indices = @transform_2, window_bounds = array<i64: 56, 256>}, {transform_indices = @transform_3, window_bounds = array<i64: 56, 256>}, {pipeline_mode = #tpu.pipeline_mode<synchronous>, transform_indices = @transform_4, window_bounds = array<i64: 3, 256, 512>}, {pipeline_mode = #tpu.pipeline_mode<synchronous>, transform_indices = @transform_5, window_bounds = array<i64: 1, 256>}, {transform_indices = @transform_6, window_bounds = array<i64: 56, 256>}]} {
    %c0 = arith.constant 0 : index
    %c0_0 = arith.constant 0 : index
    %c0_1 = arith.constant 0 : index
    %0 = vector.load %arg5[%c0, %c0_0, %c0_1] : memref<3x256x512xbf16, #tpu.memory_space<vmem>>, vector<1x256x512xbf16>
    %1 = vector.shape_cast %0 : vector<1x256x512xbf16> to vector<256x512xbf16>
    %c1 = arith.constant 1 : index
    %c0_2 = arith.constant 0 : index
    %c0_3 = arith.constant 0 : index
    %2 = vector.load %arg5[%c1, %c0_2, %c0_3] : memref<3x256x512xbf16, #tpu.memory_space<vmem>>, vector<1x256x512xbf16>
    %3 = vector.shape_cast %2 : vector<1x256x512xbf16> to vector<256x512xbf16>
    %c2 = arith.constant 2 : index
    %c0_4 = arith.constant 0 : index
    %c0_5 = arith.constant 0 : index
    %4 = vector.load %arg5[%c2, %c0_4, %c0_5] : memref<3x256x512xbf16, #tpu.memory_space<vmem>>, vector<1x256x512xbf16>
    %5 = vector.shape_cast %4 : vector<1x256x512xbf16> to vector<256x512xbf16>
    %c0_6 = arith.constant 0 : index
    %c0_7 = arith.constant 0 : index
    %6 = vector.load %arg1[%c0_6, %c0_7] : memref<56x256xbf16, #tpu.memory_space<vmem>>, vector<56x256xbf16>
    %c0_8 = arith.constant 0 : index
    %c0_9 = arith.constant 0 : index
    %7 = vector.load %arg2[%c0_8, %c0_9] : memref<56x256xbf16, #tpu.memory_space<vmem>>, vector<56x256xbf16>
    %c0_10 = arith.constant 0 : index
    %c0_11 = arith.constant 0 : index
    %8 = vector.load %arg3[%c0_10, %c0_11] : memref<56x256xbf16, #tpu.memory_space<vmem>>, vector<56x256xbf16>
    %cst = arith.constant dense<0.000000e+00> : vector<56x512xf32>
    %9 = tpu.matmul %6, %1, %cst {dimension_numbers = #tpu.dot_dimension_numbers<[1], [0], [0], [1], [0, 0, 1, 1], [], []>} : vector<56x256xbf16>, vector<256x512xbf16>, vector<56x512xf32> -> vector<56x512xf32>
    %cst_12 = arith.constant dense<0.000000e+00> : vector<56x512xf32>
    %10 = tpu.matmul %7, %3, %cst_12 {dimension_numbers = #tpu.dot_dimension_numbers<[1], [0], [0], [1], [0, 0, 1, 1], [], []>} : vector<56x256xbf16>, vector<256x512xbf16>, vector<56x512xf32> -> vector<56x512xf32>
    %11 = arith.addf %9, %10 : vector<56x512xf32>
    %cst_13 = arith.constant dense<0.000000e+00> : vector<56x512xf32>
    %12 = tpu.matmul %8, %5, %cst_13 {dimension_numbers = #tpu.dot_dimension_numbers<[1], [0], [0], [1], [0, 0, 1, 1], [], []>} : vector<56x256xbf16>, vector<256x512xbf16>, vector<56x512xf32> -> vector<56x512xf32>
    %13 = arith.addf %11, %12 : vector<56x512xf32>
    %c0_14 = arith.constant 0 : index
    %c0_15 = arith.constant 0 : index
    %14 = vector.load %arg2[%c0_14, %c0_15] : memref<56x256xbf16, #tpu.memory_space<vmem>>, vector<56x256xbf16>
    %c0_16 = arith.constant 0 : index
    %c0_17 = arith.constant 0 : index
    %15 = vector.load %arg3[%c0_16, %c0_17] : memref<56x256xbf16, #tpu.memory_space<vmem>>, vector<56x256xbf16>
    %c0_18 = arith.constant 0 : index
    %c0_19 = arith.constant 0 : index
    %16 = vector.load %arg4[%c0_18, %c0_19] : memref<56x256xbf16, #tpu.memory_space<vmem>>, vector<56x256xbf16>
    %cst_20 = arith.constant dense<0.000000e+00> : vector<56x512xf32>
    %17 = tpu.matmul %14, %1, %cst_20 {dimension_numbers = #tpu.dot_dimension_numbers<[1], [0], [0], [1], [0, 0, 1, 1], [], []>} : vector<56x256xbf16>, vector<256x512xbf16>, vector<56x512xf32> -> vector<56x512xf32>
    %cst_21 = arith.constant dense<0.000000e+00> : vector<56x512xf32>
    %18 = tpu.matmul %15, %3, %cst_21 {dimension_numbers = #tpu.dot_dimension_numbers<[1], [0], [0], [1], [0, 0, 1, 1], [], []>} : vector<56x256xbf16>, vector<256x512xbf16>, vector<56x512xf32> -> vector<56x512xf32>
    %19 = arith.addf %17, %18 : vector<56x512xf32>
    %cst_22 = arith.constant dense<0.000000e+00> : vector<56x512xf32>
    %20 = tpu.matmul %16, %5, %cst_22 {dimension_numbers = #tpu.dot_dimension_numbers<[1], [0], [0], [1], [0, 0, 1, 1], [], []>} : vector<56x256xbf16>, vector<256x512xbf16>, vector<56x512xf32> -> vector<56x512xf32>
    %21 = arith.addf %19, %20 : vector<56x512xf32>
    %22 = arith.maximumf %13, %21 : vector<56x512xf32>
    %23 = vector.extract_strided_slice %22 {offsets = [0, 0], sizes = [56, 256], strides = [1, 1]} : vector<56x512xf32> to vector<56x256xf32>
    %24 = vector.extract_strided_slice %22 {offsets = [0, 256], sizes = [56, 256], strides = [1, 1]} : vector<56x512xf32> to vector<56x256xf32>
    %25 = arith.maximumf %23, %24 : vector<56x256xf32>
    %c0_23 = arith.constant 0 : index
    %c0_24 = arith.constant 0 : index
    %26 = vector.load %arg6[%c0_23, %c0_24] : memref<1x256xf32, #tpu.memory_space<vmem>>, vector<1x256xf32>
    %27 = vector.broadcast %26 : vector<1x256xf32> to vector<56x256xf32>
    %28 = arith.addf %25, %27 : vector<56x256xf32>
    %cst_25 = arith.constant 0.000000e+00 : f32
    %29 = vector.broadcast %cst_25 : f32 to vector<56x256xf32>
    %30 = arith.maximumf %28, %29 : vector<56x256xf32>
    %31 = arith.truncf %30 : vector<56x256xf32> to vector<56x256xbf16>
    %c0_26 = arith.constant 0 : index
    %c0_27 = arith.constant 0 : index
    %32 = vector.load %arg7[%c0_26, %c0_27] : memref<56x256xbf16, #tpu.memory_space<vmem>>, vector<56x256xbf16>
    tpu.vector_store %arg7[%c0_26, %c0_27], %31 {strides = array<i32>} : memref<56x256xbf16, #tpu.memory_space<vmem>>, vector<56x256xbf16>,
    return
  }
  func.func @transform_0(%arg0: i32) -> (i32, i32) {
    %c0_i32 = arith.constant 0 : i32
    %c0_i32_0 = arith.constant 0 : i32
    return %arg0, %c0_i32 : i32, i32
  }
  func.func @transform_1(%arg0: i32) -> (i32, i32) {
    %c0_i32 = arith.constant 0 : i32
    %c0_i32_0 = arith.constant 0 : i32
    return %arg0, %c0_i32 : i32, i32
  }
  func.func @transform_2(%arg0: i32) -> (i32, i32) {
    %c0_i32 = arith.constant 0 : i32
    %c0_i32_0 = arith.constant 0 : i32
    return %arg0, %c0_i32 : i32, i32
  }
  func.func @transform_3(%arg0: i32) -> (i32, i32) {
    %c0_i32 = arith.constant 0 : i32
    %c0_i32_0 = arith.constant 0 : i32
    return %arg0, %c0_i32 : i32, i32
  }
  func.func @transform_4(%arg0: i32) -> (i32, i32, i32) {
    %c0_i32 = arith.constant 0 : i32
    %c0_i32_0 = arith.constant 0 : i32
    %c0_i32_1 = arith.constant 0 : i32
    %c0_i32_2 = arith.constant 0 : i32
    return %c0_i32, %c0_i32_0, %c0_i32_1 : i32, i32, i32
  }
  func.func @transform_5(%arg0: i32) -> (i32, i32) {
    %c0_i32 = arith.constant 0 : i32
    %c0_i32_0 = arith.constant 0 : i32
    %c0_i32_1 = arith.constant 0 : i32
    return %c0_i32, %c0_i32_0 : i32, i32
  }
  func.func @transform_6(%arg0: i32) -> (i32, i32) {
    %c0_i32 = arith.constant 0 : i32
    %c0_i32_0 = arith.constant 0 : i32
    return %arg0, %c0_i32 : i32, i32
  }
}

module attributes {stable_mosaic.version = 11 : i64} {
  func.func @_fc_fused_kernel(%arg0: i32, %arg1: memref<8x1792xbf16, #tpu.memory_space<vmem>>, %arg2: memref<1792x128xbf16, #tpu.memory_space<vmem>>, %arg3: memref<1x128xf32, #tpu.memory_space<vmem>>, %arg4: memref<128x128xbf16, #tpu.memory_space<vmem>>, %arg5: memref<1x128xf32, #tpu.memory_space<vmem>>, %arg6: memref<8x128xf32, #tpu.memory_space<vmem>>) attributes {dimension_semantics = [#tpu.dimension_semantics<parallel>], iteration_bounds = array<i64: 1>, scalar_prefetch = 0 : i64, scratch_operands = 0 : i64, tpu.core_type = #tpu.core_type<tc>, window_params = [{transform_indices = @transform_0, window_bounds = array<i64: 8, 1792>}, {pipeline_mode = #tpu.pipeline_mode<synchronous>, transform_indices = @transform_1, window_bounds = array<i64: 1792, 128>}, {pipeline_mode = #tpu.pipeline_mode<synchronous>, transform_indices = @transform_2, window_bounds = array<i64: 1, 128>}, {pipeline_mode = #tpu.pipeline_mode<synchronous>, transform_indices = @transform_3, window_bounds = array<i64: 128, 128>}, {pipeline_mode = #tpu.pipeline_mode<synchronous>, transform_indices = @transform_4, window_bounds = array<i64: 1, 128>}, {transform_indices = @transform_5, window_bounds = array<i64: 8, 128>}]} {
    %c0 = arith.constant 0 : index
    %c0_0 = arith.constant 0 : index
    %0 = vector.load %arg1[%c0, %c0_0] : memref<8x1792xbf16, #tpu.memory_space<vmem>>, vector<8x1792xbf16>
    %c0_1 = arith.constant 0 : index
    %c0_2 = arith.constant 0 : index
    %1 = vector.load %arg2[%c0_1, %c0_2] : memref<1792x128xbf16, #tpu.memory_space<vmem>>, vector<1792x128xbf16>
    %cst = arith.constant dense<0.000000e+00> : vector<8x128xf32>
    %2 = tpu.matmul %0, %1, %cst {dimension_numbers = #tpu.dot_dimension_numbers<[1], [0], [0], [1], [0, 0, 1, 1], [], []>} : vector<8x1792xbf16>, vector<1792x128xbf16>, vector<8x128xf32> -> vector<8x128xf32>
    %c0_3 = arith.constant 0 : index
    %c0_4 = arith.constant 0 : index
    %3 = vector.load %arg3[%c0_3, %c0_4] : memref<1x128xf32, #tpu.memory_space<vmem>>, vector<1x128xf32>
    %4 = vector.broadcast %3 : vector<1x128xf32> to vector<8x128xf32>
    %5 = arith.addf %2, %4 : vector<8x128xf32>
    %cst_5 = arith.constant 0.000000e+00 : f32
    %6 = vector.broadcast %cst_5 : f32 to vector<8x128xf32>
    %7 = arith.maximumf %5, %6 : vector<8x128xf32>
    %8 = arith.truncf %7 : vector<8x128xf32> to vector<8x128xbf16>
    %c0_6 = arith.constant 0 : index
    %c0_7 = arith.constant 0 : index
    %9 = vector.load %arg4[%c0_6, %c0_7] : memref<128x128xbf16, #tpu.memory_space<vmem>>, vector<128x128xbf16>
    %cst_8 = arith.constant dense<0.000000e+00> : vector<8x128xf32>
    %10 = tpu.matmul %8, %9, %cst_8 {dimension_numbers = #tpu.dot_dimension_numbers<[1], [0], [0], [1], [0, 0, 1, 1], [], []>} : vector<8x128xbf16>, vector<128x128xbf16>, vector<8x128xf32> -> vector<8x128xf32>
    %c0_9 = arith.constant 0 : index
    %c0_10 = arith.constant 0 : index
    %11 = vector.load %arg5[%c0_9, %c0_10] : memref<1x128xf32, #tpu.memory_space<vmem>>, vector<1x128xf32>
    %12 = vector.broadcast %11 : vector<1x128xf32> to vector<8x128xf32>
    %13 = arith.addf %10, %12 : vector<8x128xf32>
    %c0_11 = arith.constant 0 : index
    %c0_12 = arith.constant 0 : index
    %14 = vector.load %arg6[%c0_11, %c0_12] : memref<8x128xf32, #tpu.memory_space<vmem>>, vector<8x128xf32>
    tpu.vector_store %arg6[%c0_11, %c0_12], %13 {strides = array<i32>} : memref<8x128xf32, #tpu.memory_space<vmem>>, vector<8x128xf32>,
    return
  }
  func.func @transform_0(%arg0: i32) -> (i32, i32) {
    %c0_i32 = arith.constant 0 : i32
    %c0_i32_0 = arith.constant 0 : i32
    return %arg0, %c0_i32 : i32, i32
  }
  func.func @transform_1(%arg0: i32) -> (i32, i32) {
    %c0_i32 = arith.constant 0 : i32
    %c0_i32_0 = arith.constant 0 : i32
    %c0_i32_1 = arith.constant 0 : i32
    return %c0_i32, %c0_i32_0 : i32, i32
  }
  func.func @transform_2(%arg0: i32) -> (i32, i32) {
    %c0_i32 = arith.constant 0 : i32
    %c0_i32_0 = arith.constant 0 : i32
    %c0_i32_1 = arith.constant 0 : i32
    return %c0_i32, %c0_i32_0 : i32, i32
  }
  func.func @transform_3(%arg0: i32) -> (i32, i32) {
    %c0_i32 = arith.constant 0 : i32
    %c0_i32_0 = arith.constant 0 : i32
    %c0_i32_1 = arith.constant 0 : i32
    return %c0_i32, %c0_i32_0 : i32, i32
  }
  func.func @transform_4(%arg0: i32) -> (i32, i32) {
    %c0_i32 = arith.constant 0 : i32
    %c0_i32_0 = arith.constant 0 : i32
    %c0_i32_1 = arith.constant 0 : i32
    return %c0_i32, %c0_i32_0 : i32, i32
  }
  func.func @transform_5(%arg0: i32) -> (i32, i32) {
    %c0_i32 = arith.constant 0 : i32
    %c0_i32_0 = arith.constant 0 : i32
    return %arg0, %c0_i32 : i32, i32
  }
}

</mosaic_0001>

<bundles_post_ra>
// kernel: simple_cnn_forward.3
= control target key start
LH: loop header
LB: loop body
LE: loop exit
PB: predicated region body
PF: predicated region fallthrough
CT: control target
= control target key end

     0   :  { %11 = vsyncpa [#allocation3], 0  ;;  %s1596_s21 = smov [#allocation2]   ;;  %s2175_s0 = inlined_call_operand.vmem [shape: bf16[56,30], index: 0, kind: input, shape index: {}]   ;;  %s2176_s1 = inlined_call_operand.vmem [shape: bf16[56,30], index: 1, kind: input, shape index: {}]   ;;  %s2177_s2 = inlined_call_operand.vmem [shape: bf16[56,30], index: 2, kind: input, shape index: {}]   ;;  %s2178_s3 = inlined_call_operand.vmem [shape: bf16[56,30], index: 3, kind: input, shape index: {}]   ;;  %s2179_s4 = inlined_call_operand.hbm [shape: bf16[3,30,512], index: 4, kind: input, shape index: {}]   ;;  %s2180_s5 = inlined_call_operand.vmem [shape: f32[1,256], index: 5, kind: input, shape index: {}]   ;;  %s2181_s6 = inlined_call_operand.vmem [shape: bf16[56,256], index: 6, kind: output, shape index: {}]  }
   0x1   :  { %s25_s22 = sshll.u32 %s1596_s21, 4  ;;  %s26_s22 = int_to_ptr.vmem [resolvable:$true] %s25_s22 }
   0x2   :  { %s1582_s23 = scalar_lea.vmem %s26_s22, 3072  ;;  %p1587_p1 = scmp.lt.s32.totalorder %s26_s22, %s26_s22 }
   0x3   :  { %p1583_p0 = scmp.ne.s32.totalorder %s26_s22, %s1582_s23  ;;  %p1588_p2 = scmp.lt.s32.totalorder %s1582_s23, %s1582_s23 }
   0x5   :  { %p1589_p3 = por %p1588_p2, %p1587_p1 }
   0x7   :  { %p1590_p4 = pnand %p1589_p3, %p1583_p0 }
   0x9   :  { %1593 = shalt.err (!%p1590_p4)
}
   0xa   :  { %s1597_s24 = smov 256   ;;  %s1598_s25 = smov 16  }
   0xb   :  { %31 = dma.hbm_to_vmem [thread:$0]  %s2179_s4, 3072, %s26_s22, [#allocation3], %s1597_s24, %s1597_s24, %s1598_s25  }
   0xc   :  { %1594 = dma.done.wait [#allocation3], 3072  }
   0xd   :  { %1595 = vsyncadd [#allocation3], 4294964224  ;;  %v1599_v0 = vmov 0   ;;  %vm152_vm0 = vcmask 1046528   ;;  %v1648_v5 = vld [vmem:[#allocation2 + $0x44] ss:$16 sps:$4 sm:$0xff]  }
   0xe   :  { %197 = vmatprep.mubr.bf16.mxu0 %v1599_v0  ;;  %268 = vmatprep.mubr.bf16.mxu1 %v1599_v0  ;;  %v1640_v1 = vld [vmem:[#allocation2 + $0x64] ss:$16 sps:$4 sm:$0x7f]   ;;  %v1642_v2 = vld [vmem:[#allocation2 + $0x6c] ss:$16 sps:$4 sm:$0x7f]  }
   0xf   :  { %1416 = vmatprep.subr.msk.bf16.mxu0 %vm152_vm0, %v1640_v1  ;;  %v1526_v3 = vld [vmem:[#allocation2 + $0x60] ss:$16 sps:$4 sm:$0x7f]   ;;  %v1527_v4 = vld [vmem:[#allocation2 + $0x68] ss:$16 sps:$4 sm:$0x7f]   ;;  %1421 = vmatprep.subr.msk.bf16.mxu1 %vm152_vm0, %v1642_v2 }
  0x10   :  { %v1651_v6 = vsel %vm152_vm0, %v1526_v3, 0  ;;  %v1654_v7 = vsel %vm152_vm0, %v1527_v4, 0  ;;  %v1656_v8 = vld [vmem:[#allocation2 + $0x4c] ss:$16 sps:$4 sm:$0xff]   ;;  %v1660_v9 = vld [vmem:[#allocation2 + $0x40] ss:$16 sps:$4 sm:$0xff]  }
  0x11   :  { %178 = vmatpush1.bf16.msra.mxu0 %v1651_v6  ;;  %249 = vmatpush1.bf16.msra.mxu1 %v1654_v7  ;;  %v1662_v10 = vld [vmem:[#allocation2 + $0x48] ss:$16 sps:$4 sm:$0xff]   ;;  %vm139_vm1 = vcmask 244736   ;;  %v1666_v11 = vld [vmem:[#allocation2 + $0x24] ss:$16 sps:$4 sm:$0x7f]  }
  0x12   :  { %179 = vmatprep.subr.bf16.mxu0 %v1648_v5  ;;  %250 = vmatprep.subr.bf16.mxu1 %v1656_v8  ;;  %v1671_v12 = vld [vmem:[%s2176_s1] sm:$0xff]   ;;  %v1673_v13 = vld [vmem:[#allocation2 + $0x2c] ss:$16 sps:$4 sm:$0x7f]   ;;  %v1697_v20 = vld [vmem:[#allocation2 + $0x8] ss:$16 sps:$4 sm:$0xff]  }
  0x13   :  { %v1539_v14 = vld [vmem:[#allocation2 + $0x20] ss:$16 sps:$4 sm:$0x7f]   ;;  %v1540_v15 = vld [vmem:[#allocation2 + $0x28] ss:$16 sps:$4 sm:$0x7f]  }
  0x14   :  { %v1682_v16 = vsel %vm152_vm0, %v1539_v14, 0  ;;  %v1685_v17 = vsel %vm152_vm0, %v1540_v15, 0  ;;  %v1691_v18 = vld [vmem:[#allocation2] ss:$16 sps:$4 sm:$0xff]   ;;  %v1693_v19 = vld [vmem:[#allocation2 + $0x4] ss:$16 sps:$4 sm:$0xff]  }
  0x15   :  { %180 = vmatpush1.bf16.msra.mxu0 %v1660_v9  ;;  %251 = vmatpush1.bf16.msra.mxu1 %v1662_v10  ;;  %v1701_v21 = vld [vmem:[#allocation2 + $0xc] ss:$16 sps:$4 sm:$0xff]   ;;  %v1710_v23 = vld [vmem:[#allocation2 + $0xa4] ss:$16 sps:$4 sm:$0x7f]  }
  0x16   :  { %1438 = vmatprep.subr.msk.bf16.mxu0 %vm152_vm0, %v1666_v11  ;;  %1443 = vmatprep.subr.msk.bf16.mxu1 %vm152_vm0, %v1673_v13  ;;  %v1706_v22 = vld [vmem:[%s2176_s1 + $0x8] sm:$0xff]   ;;  %v1729_v25 = vld [vmem:[%s2176_s1 + $0x10] sm:$0xff]   ;;  %v1740_v26 = vld [vmem:[%s2176_s1 + $0x18] ss:$0 sps:$4 sm:$0xff]  }
  0x17   :  { %v1714_v24 = vld [vmem:[#allocation2 + $0xac] ss:$16 sps:$4 sm:$0x7f]   ;;  %v1555_v27 = vld [vmem:[#allocation2 + $0xa0] ss:$16 sps:$4 sm:$0x7f]  }
  0x18   :  { %1417 = vmatmul.mubr.msk.bf16.vlgmr.msra.gmra.mxu0 %vm139_vm1, %v1671_v12  ;;  %1422 = vmatmul.mubr.msk.bf16.vlgmr.msra.gmra.mxu1 %vm139_vm1, %v1671_v12  ;;  %v1556_v28 = vld [vmem:[#allocation2 + $0xa8] ss:$16 sps:$4 sm:$0x7f]   ;;  %v1550_v29 = vld [vmem:[%s2175_s0] sm:$0xff]   ;;  %v1752_v30 = vsel %vm152_vm0, %v1555_v27, 0  ;;  %v1558_v37 = vld [vmem:[%s2175_s0 + $0x10] sm:$0xff]  }
  0x19   :  { %398 = vmatpush1.bf16.msra.mxu0 %v1682_v16  ;;  %469 = vmatpush1.bf16.msra.mxu1 %v1685_v17  ;;  %v1755_v31 = vsel %vm152_vm0, %v1556_v28, 0  ;;  %v1757_v32 = vld [vmem:[#allocation2 + $0x84] ss:$16 sps:$4 sm:$0xff]   ;;  %v1759_v33 = vld [vmem:[#allocation2 + $0x8c] ss:$16 sps:$4 sm:$0xff]  }
  0x1a   :  { %207 = vmatprep.mubr.bf16.mxu0 %v1599_v0  ;;  %278 = vmatprep.mubr.bf16.mxu1 %v1599_v0  ;;  %v1765_v34 = vld [vmem:[#allocation2 + $0x80] ss:$16 sps:$4 sm:$0xff]   ;;  %v1767_v35 = vld [vmem:[#allocation2 + $0x88] ss:$16 sps:$4 sm:$0xff]  }
  0x1b   :  { %399 = vmatprep.subr.bf16.mxu0 %v1693_v19  ;;  %470 = vmatprep.subr.bf16.mxu1 %v1701_v21  ;;  %v1557_v36 = vld [vmem:[%s2175_s0 + $0x8] sm:$0xff]   ;;  %v1565_v38 = vld [vmem:[%s2175_s0 + $0x18] ss:$0 sps:$4 sm:$0xff]   ;;  %v1566_v39 = vld [vmem:[%s2177_s2] sm:$0xff]  }
  0x1c   :  { %v1567_v40 = vld [vmem:[%s2177_s2 + $0x8] sm:$0xff]   ;;  %v1568_v41 = vld [vmem:[%s2177_s2 + $0x10] sm:$0xff]   ;;  %v1569_v42 = vld [vmem:[%s2177_s2 + $0x18] ss:$0 sps:$4 sm:$0xff]  }
  0x1d   :  { %400 = vmatpush1.bf16.msra.mxu0 %v1691_v18  ;;  %471 = vmatpush1.bf16.msra.mxu1 %v1697_v20  ;;  %v1570_v43 = vld [vmem:[%s2178_s3] sm:$0xff]   ;;  %v1571_v44 = vld [vmem:[%s2178_s3 + $0x8] sm:$0xff]   ;;  %v1572_v45 = vld [vmem:[%s2178_s3 + $0x10] sm:$0xff]  }
  0x1e   :  { %1460 = vmatprep.subr.msk.bf16.mxu0 %vm152_vm0, %v1710_v23  ;;  %1465 = vmatprep.subr.msk.bf16.mxu1 %vm152_vm0, %v1714_v24  ;;  %v1573_v46 = vld [vmem:[%s2178_s3 + $0x18] ss:$0 sps:$4 sm:$0xff]  }
  0x20   :  { %1418 = vmatmul.mubr.msk.bf16.gmra.mxu0 %vm139_vm1, %v1706_v22  ;;  %1423 = vmatmul.mubr.msk.bf16.gmra.mxu1 %vm139_vm1, %v1706_v22 }
  0x21   :  { %217 = vmatprep.mubr.bf16.mxu0 %v1599_v0  ;;  %288 = vmatprep.mubr.bf16.mxu1 %v1599_v0 }
  0x28   :  { %1419 = vmatmul.mubr.msk.bf16.gmra.mxu0 %vm139_vm1, %v1729_v25  ;;  %1424 = vmatmul.mubr.msk.bf16.gmra.mxu1 %vm139_vm1, %v1729_v25 }
  0x29   :  { %227 = vmatprep.mubr.bf16.mxu0 %v1599_v0  ;;  %298 = vmatprep.mubr.bf16.mxu1 %v1599_v0 }
  0x30   :  { %1420 = vmatmul.mubr.msk.bf16.gmra.mxu0 %vm139_vm1, %v1740_v26  ;;  %1425 = vmatmul.mubr.msk.bf16.gmra.mxu1 %vm139_vm1, %v1740_v26 }
  0x31   :  { %417 = vmatprep.mubr.bf16.mxu0 %v1599_v0  ;;  %488 = vmatprep.mubr.bf16.mxu1 %v1599_v0 }
  0x38   :  { %1439 = vmatmul.mubr.msk.bf16.vlgmr.msra.gmra.mxu0 %vm139_vm1, %v1550_v29  ;;  %1444 = vmatmul.mubr.msk.bf16.vlgmr.msra.gmra.mxu1 %vm139_vm1, %v1550_v29 }
  0x39   :  { %618 = vmatpush1.bf16.msra.mxu0 %v1752_v30  ;;  %689 = vmatpush1.bf16.msra.mxu1 %v1755_v31 }
  0x3a   :  { %427 = vmatprep.mubr.bf16.mxu0 %v1599_v0  ;;  %498 = vmatprep.mubr.bf16.mxu1 %v1599_v0 }
  0x3b   :  { %619 = vmatprep.subr.bf16.mxu0 %v1757_v32  ;;  %690 = vmatprep.subr.bf16.mxu1 %v1759_v33 }
  0x3d   :  { %620 = vmatpush1.bf16.msra.mxu0 %v1765_v34  ;;  %691 = vmatpush1.bf16.msra.mxu1 %v1767_v35 }
  0x3e   :  { %1470 = vmatprep.subr.msk.bf16.mxu0 %vm152_vm0, %v1640_v1  ;;  %1475 = vmatprep.subr.msk.bf16.mxu1 %vm152_vm0, %v1642_v2 }
  0x40   :  { %1440 = vmatmul.mubr.msk.bf16.gmra.mxu0 %vm139_vm1, %v1557_v36  ;;  %1445 = vmatmul.mubr.msk.bf16.gmra.mxu1 %vm139_vm1, %v1557_v36 }
  0x41   :  { %437 = vmatprep.mubr.bf16.mxu0 %v1599_v0  ;;  %508 = vmatprep.mubr.bf16.mxu1 %v1599_v0 }
  0x48   :  { %1441 = vmatmul.mubr.msk.bf16.gmra.mxu0 %vm139_vm1, %v1558_v37  ;;  %1446 = vmatmul.mubr.msk.bf16.gmra.mxu1 %vm139_vm1, %v1558_v37 }
  0x49   :  { %447 = vmatprep.mubr.bf16.mxu0 %v1599_v0  ;;  %518 = vmatprep.mubr.bf16.mxu1 %v1599_v0 }
  0x50   :  { %1442 = vmatmul.mubr.msk.bf16.gmra.mxu0 %vm139_vm1, %v1565_v38  ;;  %1447 = vmatmul.mubr.msk.bf16.gmra.mxu1 %vm139_vm1, %v1565_v38 }
  0x51   :  { %637 = vmatprep.mubr.bf16.mxu0 %v1599_v0  ;;  %708 = vmatprep.mubr.bf16.mxu1 %v1599_v0 }
  0x58   :  { %1461 = vmatmul.mubr.msk.bf16.vlgmr.msra.gmra.mxu0 %vm139_vm1, %v1566_v39  ;;  %1466 = vmatmul.mubr.msk.bf16.vlgmr.msra.gmra.mxu1 %vm139_vm1, %v1566_v39 }
  0x59   :  { %795 = vmatpush1.bf16.msra.mxu0 %v1651_v6  ;;  %866 = vmatpush1.bf16.msra.mxu1 %v1654_v7 }
  0x5a   :  { %647 = vmatprep.mubr.bf16.mxu0 %v1599_v0  ;;  %718 = vmatprep.mubr.bf16.mxu1 %v1599_v0 }
  0x5b   :  { %796 = vmatprep.subr.bf16.mxu0 %v1648_v5  ;;  %867 = vmatprep.subr.bf16.mxu1 %v1656_v8 }
  0x5d   :  { %797 = vmatpush1.bf16.msra.mxu0 %v1660_v9  ;;  %868 = vmatpush1.bf16.msra.mxu1 %v1662_v10 }
  0x5e   :  { %1480 = vmatprep.subr.msk.bf16.mxu0 %vm152_vm0, %v1666_v11  ;;  %1485 = vmatprep.subr.msk.bf16.mxu1 %vm152_vm0, %v1673_v13 }
  0x60   :  { %1462 = vmatmul.mubr.msk.bf16.gmra.mxu0 %vm139_vm1, %v1567_v40  ;;  %1467 = vmatmul.mubr.msk.bf16.gmra.mxu1 %vm139_vm1, %v1567_v40 }
  0x61   :  { %657 = vmatprep.mubr.bf16.mxu0 %v1599_v0  ;;  %728 = vmatprep.mubr.bf16.mxu1 %v1599_v0 }
  0x68   :  { %1463 = vmatmul.mubr.msk.bf16.gmra.mxu0 %vm139_vm1, %v1568_v41  ;;  %1468 = vmatmul.mubr.msk.bf16.gmra.mxu1 %vm139_vm1, %v1568_v41 }
  0x69   :  { %667 = vmatprep.mubr.bf16.mxu0 %v1599_v0  ;;  %738 = vmatprep.mubr.bf16.mxu1 %v1599_v0 }
  0x70   :  { %1464 = vmatmul.mubr.msk.bf16.gmra.mxu0 %vm139_vm1, %v1569_v42  ;;  %1469 = vmatmul.mubr.msk.bf16.gmra.mxu1 %vm139_vm1, %v1569_v42 }
  0x71   :  { %814 = vmatprep.mubr.bf16.mxu0 %v1599_v0  ;;  %885 = vmatprep.mubr.bf16.mxu1 %v1599_v0 }
  0x78   :  { %1471 = vmatmul.mubr.msk.bf16.vlgmr.msra.gmra.mxu0 %vm139_vm1, %v1566_v39  ;;  %1476 = vmatmul.mubr.msk.bf16.vlgmr.msra.gmra.mxu1 %vm139_vm1, %v1566_v39 }
  0x79   :  { %937 = vmatpush1.bf16.msra.mxu0 %v1682_v16  ;;  %1008 = vmatpush1.bf16.msra.mxu1 %v1685_v17 }
  0x7a   :  { %824 = vmatprep.mubr.bf16.mxu0 %v1599_v0  ;;  %895 = vmatprep.mubr.bf16.mxu1 %v1599_v0 }
  0x7b   :  { %938 = vmatprep.subr.bf16.mxu0 %v1693_v19  ;;  %1009 = vmatprep.subr.bf16.mxu1 %v1701_v21 }
  0x7d   :  { %939 = vmatpush1.bf16.msra.mxu0 %v1691_v18  ;;  %1010 = vmatpush1.bf16.msra.mxu1 %v1697_v20 }
  0x7e   :  { %1494 = vmatprep.subr.msk.bf16.mxu0 %vm152_vm0, %v1710_v23  ;;  %1499 = vmatprep.subr.msk.bf16.mxu1 %vm152_vm0, %v1714_v24 }
  0x80   :  { %1472 = vmatmul.mubr.msk.bf16.gmra.mxu0 %vm139_vm1, %v1567_v40  ;;  %1477 = vmatmul.mubr.msk.bf16.gmra.mxu1 %vm139_vm1, %v1567_v40 }
  0x81   :  { %834 = vmatprep.mubr.bf16.mxu0 %v1599_v0  ;;  %905 = vmatprep.mubr.bf16.mxu1 %v1599_v0 }
  0x88   :  { %1473 = vmatmul.mubr.msk.bf16.gmra.mxu0 %vm139_vm1, %v1568_v41  ;;  %1478 = vmatmul.mubr.msk.bf16.gmra.mxu1 %vm139_vm1, %v1568_v41 }
  0x89   :  { %844 = vmatprep.mubr.bf16.mxu0 %v1599_v0  ;;  %915 = vmatprep.mubr.bf16.mxu1 %v1599_v0 }
  0x90   :  { %1474 = vmatmul.mubr.msk.bf16.gmra.mxu0 %vm139_vm1, %v1569_v42  ;;  %1479 = vmatmul.mubr.msk.bf16.gmra.mxu1 %vm139_vm1, %v1569_v42 }
  0x91   :  { %956 = vmatprep.mubr.bf16.mxu0 %v1599_v0  ;;  %1027 = vmatprep.mubr.bf16.mxu1 %v1599_v0 }
  0x98   :  { %1481 = vmatmul.mubr.msk.bf16.vlgmr.msra.gmra.mxu0 %vm139_vm1, %v1671_v12  ;;  %1486 = vmatmul.mubr.msk.bf16.vlgmr.msra.gmra.mxu1 %vm139_vm1, %v1671_v12 }
  0x99   :  { %1109 = vmatpush1.bf16.msra.mxu0 %v1752_v30  ;;  %1180 = vmatpush1.bf16.msra.mxu1 %v1755_v31 }
  0x9a   :  { %966 = vmatprep.mubr.bf16.mxu0 %v1599_v0  ;;  %1037 = vmatprep.mubr.bf16.mxu1 %v1599_v0 }
  0x9b   :  { %1110 = vmatprep.subr.bf16.mxu0 %v1757_v32  ;;  %1181 = vmatprep.subr.bf16.mxu1 %v1759_v33 }
  0x9d   :  { %1111 = vmatpush1.bf16.msra.mxu0 %v1765_v34  ;;  %1182 = vmatpush1.bf16.msra.mxu1 %v1767_v35 }
  0xa0   :  { %1482 = vmatmul.mubr.msk.bf16.gmra.mxu0 %vm139_vm1, %v1706_v22  ;;  %1487 = vmatmul.mubr.msk.bf16.gmra.mxu1 %vm139_vm1, %v1706_v22 }
  0xa1   :  { %976 = vmatprep.mubr.bf16.mxu0 %v1599_v0  ;;  %1047 = vmatprep.mubr.bf16.mxu1 %v1599_v0 }
  0xa8   :  { %1483 = vmatmul.mubr.msk.bf16.gmra.mxu0 %vm139_vm1, %v1729_v25  ;;  %1488 = vmatmul.mubr.msk.bf16.gmra.mxu1 %vm139_vm1, %v1729_v25 }
  0xa9   :  { %986 = vmatprep.mubr.bf16.mxu0 %v1599_v0  ;;  %1057 = vmatprep.mubr.bf16.mxu1 %v1599_v0 }
  0xb0   :  { %1484 = vmatmul.mubr.msk.bf16.gmra.mxu0 %vm139_vm1, %v1740_v26  ;;  %1489 = vmatmul.mubr.msk.bf16.gmra.mxu1 %vm139_vm1, %v1740_v26 }
  0xb1   :  { %1128 = vmatprep.mubr.bf16.mxu0 %v1599_v0  ;;  %1199 = vmatprep.mubr.bf16.mxu1 %v1599_v0 }
  0xb8   :  { %1495 = vmatmul.mubr.msk.bf16.vlgmr.msra.gmra.mxu0 %vm139_vm1, %v1570_v43  ;;  %1500 = vmatmul.mubr.msk.bf16.vlgmr.msra.gmra.mxu1 %vm139_vm1, %v1570_v43 }
  0xb9   :  { %1138 = vmatprep.mubr.bf16.mxu0 %v1599_v0  ;;  %1209 = vmatprep.mubr.bf16.mxu1 %v1599_v0 }
  0xc0   :  { %1496 = vmatmul.mubr.msk.bf16.gmra.mxu0 %vm139_vm1, %v1571_v44  ;;  %1501 = vmatmul.mubr.msk.bf16.gmra.mxu1 %vm139_vm1, %v1571_v44 }
  0xc1   :  { %1148 = vmatprep.mubr.bf16.mxu0 %v1599_v0  ;;  %1219 = vmatprep.mubr.bf16.mxu1 %v1599_v0 }
  0xc8   :  { %1497 = vmatmul.mubr.msk.bf16.gmra.mxu0 %vm139_vm1, %v1572_v45  ;;  %1502 = vmatmul.mubr.msk.bf16.gmra.mxu1 %vm139_vm1, %v1572_v45 }
  0xc9   :  { %1158 = vmatprep.mubr.bf16.mxu0 %v1599_v0  ;;  %1229 = vmatprep.mubr.bf16.mxu1 %v1599_v0 }
  0xd0   :  { %1498 = vmatmul.mubr.msk.bf16.gmra.mxu0 %vm139_vm1, %v1573_v46  ;;  %1503 = vmatmul.mubr.msk.bf16.gmra.mxu1 %vm139_vm1, %v1573_v46 }
  0xd8   :  { %v199_v47 = vpop.f32.mrf.mxu0  ;;  %v270_v48 = vpop.f32.mrf.mxu1 }
  0xda   :  { %v201_v49 = vpop.f32.mrf.mxu0  ;;  %v272_v50 = vpop.f32.mrf.mxu1 }
  0xdc   :  { %v203_v51 = vpop.f32.mrf.mxu0  ;;  %v274_v52 = vpop.f32.mrf.mxu1 }
  0xde   :  { %v205_v53 = vpop.f32.mrf.mxu0  ;;  %v276_v54 = vpop.f32.mrf.mxu1 }
  0xe0   :  { %v209_v55 = vpop.f32.mrf.mxu0  ;;  %v280_v56 = vpop.f32.mrf.mxu1 }
  0xe2   :  { %v211_v57 = vpop.f32.mrf.mxu0  ;;  %v282_v58 = vpop.f32.mrf.mxu1 }
  0xe4   :  { %v213_v59 = vpop.f32.mrf.mxu0  ;;  %v284_v60 = vpop.f32.mrf.mxu1 }
  0xe6   :  { %v215_v61 = vpop.f32.mrf.mxu0  ;;  %v286_v62 = vpop.f32.mrf.mxu1 }
  0xe8   :  { %v219_v63 = vpop.f32.mrf.mxu0  ;;  %v290_v0 = vpop.f32.mrf.mxu1 }
  0xea   :  { %v221_v1 = vpop.f32.mrf.mxu0  ;;  %v292_v2 = vpop.f32.mrf.mxu1 }
  0xec   :  { %v223_v3 = vpop.f32.mrf.mxu0  ;;  %v294_v4 = vpop.f32.mrf.mxu1 }
  0xee   :  { %v225_v5 = vpop.f32.mrf.mxu0  ;;  %v296_v6 = vpop.f32.mrf.mxu1 }
  0xf0   :  { %v229_v7 = vpop.f32.mrf.mxu0  ;;  %v300_v8 = vpop.f32.mrf.mxu1 }
  0xf2   :  { %v231_v9 = vpop.f32.mrf.mxu0  ;;  %v302_v10 = vpop.f32.mrf.mxu1 }
  0xf4   :  { %v233_v11 = vpop.f32.mrf.mxu0  ;;  %v304_v12 = vpop.f32.mrf.mxu1 }
  0xf6   :  { %v234_v13 = vpop.f32.mrf.mxu0  ;;  %v305_v14 = vpop.f32.mrf.mxu1 }
  0xf8   :  { %v419_v15 = vpop.f32.mrf.mxu0  ;;  %v490_v16 = vpop.f32.mrf.mxu1 }
  0xf9   :  { %v420_v17 = vadd.f32 %v419_v15, %v199_v47  ;;  %v491_v18 = vadd.f32 %v490_v16, %v270_v48 }
  0xfa   :  { %v421_v19 = vpop.f32.mrf.mxu0  ;;  %v492_v20 = vpop.f32.mrf.mxu1 }
  0xfb   :  { %v422_v21 = vadd.f32 %v421_v19, %v201_v49  ;;  %v493_v22 = vadd.f32 %v492_v20, %v272_v50 }
  0xfc   :  { %v423_v23 = vpop.f32.mrf.mxu0  ;;  %v494_v24 = vpop.f32.mrf.mxu1 }
  0xfd   :  { %v424_v25 = vadd.f32 %v423_v23, %v203_v51  ;;  %v495_v26 = vadd.f32 %v494_v24, %v274_v52 }
  0xfe   :  { %v425_v27 = vpop.f32.mrf.mxu0  ;;  %v496_v28 = vpop.f32.mrf.mxu1 }
  0xff   :  { %v426_v29 = vadd.f32 %v425_v27, %v205_v53  ;;  %v497_v30 = vadd.f32 %v496_v28, %v276_v54 }
 0x100   :  { %v429_v31 = vpop.f32.mrf.mxu0  ;;  %v500_v32 = vpop.f32.mrf.mxu1 }
 0x101   :  { %v430_v33 = vadd.f32 %v429_v31, %v209_v55  ;;  %v501_v34 = vadd.f32 %v500_v32, %v280_v56 }
 0x102   :  { %v431_v35 = vpop.f32.mrf.mxu0  ;;  %v502_v36 = vpop.f32.mrf.mxu1 }
 0x103   :  { %v432_v37 = vadd.f32 %v431_v35, %v211_v57  ;;  %v503_v38 = vadd.f32 %v502_v36, %v282_v58 }
 0x104   :  { %v433_v39 = vpop.f32.mrf.mxu0  ;;  %v504_v40 = vpop.f32.mrf.mxu1 }
 0x105   :  { %v434_v41 = vadd.f32 %v433_v39, %v213_v59  ;;  %v505_v42 = vadd.f32 %v504_v40, %v284_v60 }
 0x106   :  { %v435_v43 = vpop.f32.mrf.mxu0  ;;  %v506_v44 = vpop.f32.mrf.mxu1 }
 0x107   :  { %v436_v45 = vadd.f32 %v435_v43, %v215_v61  ;;  %v507_v46 = vadd.f32 %v506_v44, %v286_v62 }
 0x108   :  { %v439_v47 = vpop.f32.mrf.mxu0  ;;  %v510_v48 = vpop.f32.mrf.mxu1 }
 0x109   :  { %v440_v49 = vadd.f32 %v439_v47, %v219_v63  ;;  %v511_v50 = vadd.f32 %v510_v48, %v290_v0 }
 0x10a   :  { %v441_v51 = vpop.f32.mrf.mxu0  ;;  %v512_v52 = vpop.f32.mrf.mxu1 }
 0x10b   :  { %v442_v53 = vadd.f32 %v441_v51, %v221_v1  ;;  %v513_v54 = vadd.f32 %v512_v52, %v292_v2 }
 0x10c   :  { %v443_v55 = vpop.f32.mrf.mxu0  ;;  %v514_v56 = vpop.f32.mrf.mxu1 }
 0x10d   :  { %v444_v57 = vadd.f32 %v443_v55, %v223_v3  ;;  %v515_v58 = vadd.f32 %v514_v56, %v294_v4 }
 0x10e   :  { %v445_v11 = vpop.f32.mrf.mxu0  ;;  %v516_v12 = vpop.f32.mrf.mxu1 }
 0x10f   :  { %v446_v59 = vadd.f32 %v445_v11, %v225_v5  ;;  %v517_v60 = vadd.f32 %v516_v12, %v296_v6 }
 0x110   :  { %v449_v13 = vpop.f32.mrf.mxu0  ;;  %v520_v14 = vpop.f32.mrf.mxu1 }
 0x111   :  { %v450_v61 = vadd.f32 %v449_v13, %v229_v7  ;;  %v521_v62 = vadd.f32 %v520_v14, %v300_v8 }
 0x112   :  { %v451_v15 = vpop.f32.mrf.mxu0  ;;  %v522_v16 = vpop.f32.mrf.mxu1 }
 0x113   :  { %v452_v63 = vadd.f32 %v451_v15, %v231_v9  ;;  %v523_v0 = vadd.f32 %v522_v16, %v302_v10 }
 0x114   :  { %v453_v19 = vpop.f32.mrf.mxu0  ;;  %v524_v20 = vpop.f32.mrf.mxu1 }
 0x116   :  { %v454_v1 = vpop.f32.mrf.mxu0  ;;  %v525_v2 = vpop.f32.mrf.mxu1 }
 0x118   :  { %v639_v23 = vpop.f32.mrf.mxu0  ;;  %v710_v24 = vpop.f32.mrf.mxu1 }
 0x119   :  { %v1920_v3 = vadd.f32 %v639_v23, %v420_v17  ;;  %v1922_v4 = vadd.f32 %v710_v24, %v491_v18 }
 0x11a   :  { %v641_v5 = vpop.f32.mrf.mxu0  ;;  %v712_v6 = vpop.f32.mrf.mxu1 }
 0x11b   :  { %v1924_v27 = vadd.f32 %v641_v5, %v422_v21  ;;  %v1926_v7 = vadd.f32 %v712_v6, %v493_v22 }
 0x11c   :  { %v643_v8 = vpop.f32.mrf.mxu0  ;;  %v714_v28 = vpop.f32.mrf.mxu1 }
 0x11d   :  { %v1928_v9 = vadd.f32 %v643_v8, %v424_v25  ;;  %v1930_v10 = vadd.f32 %v714_v28, %v495_v26 }
 0x11e   :  { %v645_v31 = vpop.f32.mrf.mxu0  ;;  %v716_v32 = vpop.f32.mrf.mxu1 }
 0x11f   :  { %2182 = vst [vmem:[#allocation5_spill] sm:$0xff] %v1930_v10  ;;  %v1932_v35 = vadd.f32 %v645_v31, %v426_v29  ;;  %v1934_v17 = vadd.f32 %v716_v32, %v497_v30 }
 0x120   :  { %v649_v18 = vpop.f32.mrf.mxu0  ;;  %v720_v36 = vpop.f32.mrf.mxu1 }
 0x121   :  { %2183 = vst [vmem:[#allocation6_spill] sm:$0xff] %v1932_v35  ;;  %2184 = vst [vmem:[#allocation7_spill] sm:$0xff] %v1934_v17  ;;  %v1936_v39 = vadd.f32 %v649_v18, %v430_v33  ;;  %v1938_v21 = vadd.f32 %v720_v36, %v501_v34  ;;  %v1308_v17 = vld [vmem:[%s2180_s5] sm:$0x3] }
 0x122   :  { %v651_v22 = vpop.f32.mrf.mxu0  ;;  %v722_v40 = vpop.f32.mrf.mxu1 }
 0x123   :  { %2185 = vst [vmem:[#allocation8_spill] sm:$0xff] %v1936_v39  ;;  %2186 = vst [vmem:[#allocation9_spill] sm:$0xff] %v1938_v21  ;;  %v1940_v43 = vadd.f32 %v651_v22, %v432_v37  ;;  %v1942_v25 = vadd.f32 %v722_v40, %v503_v38 }
 0x124   :  { %v653_v26 = vpop.f32.mrf.mxu0  ;;  %v724_v44 = vpop.f32.mrf.mxu1 }
 0x125   :  { %2187 = vst [vmem:[#allocation10_spill] sm:$0xff] %v1940_v43  ;;  %2188 = vst [vmem:[#allocation11_spill] sm:$0xff] %v1942_v25  ;;  %v1944_v47 = vadd.f32 %v653_v26, %v434_v41  ;;  %v1946_v29 = vadd.f32 %v724_v44, %v505_v42 }
 0x126   :  { %v655_v30 = vpop.f32.mrf.mxu0  ;;  %v726_v48 = vpop.f32.mrf.mxu1 }
 0x127   :  { %2189 = vst [vmem:[#allocation12_spill] sm:$0xff] %v1944_v47  ;;  %2190 = vst [vmem:[#allocation13_spill] sm:$0xff] %v1946_v29  ;;  %v1948_v51 = vadd.f32 %v655_v30, %v436_v45  ;;  %v1950_v33 = vadd.f32 %v726_v48, %v507_v46 }
 0x128   :  { %v659_v34 = vpop.f32.mrf.mxu0  ;;  %v730_v52 = vpop.f32.mrf.mxu1 }
 0x129   :  { %2191 = vst [vmem:[#allocation14_spill] sm:$0xff] %v1948_v51  ;;  %2192 = vst [vmem:[#allocation15_spill] sm:$0xff] %v1950_v33  ;;  %v1952_v55 = vadd.f32 %v659_v34, %v440_v49  ;;  %v1954_v37 = vadd.f32 %v730_v52, %v511_v50 }
 0x12a   :  { %v661_v38 = vpop.f32.mrf.mxu0  ;;  %v732_v56 = vpop.f32.mrf.mxu1 }
 0x12b   :  { %2193 = vst [vmem:[#allocation16_spill] sm:$0xff] %v1952_v55  ;;  %2194 = vst [vmem:[#allocation17_spill] sm:$0xff] %v1954_v37  ;;  %v1956_v11 = vadd.f32 %v661_v38, %v442_v53  ;;  %v1958_v41 = vadd.f32 %v732_v56, %v513_v54 }
 0x12c   :  { %v663_v42 = vpop.f32.mrf.mxu0  ;;  %v734_v12 = vpop.f32.mrf.mxu1 }
 0x12d   :  { %2195 = vst [vmem:[#allocation18_spill] sm:$0xff] %v1956_v11  ;;  %2196 = vst [vmem:[#allocation19_spill] sm:$0xff] %v1958_v41  ;;  %v1960_v13 = vadd.f32 %v663_v42, %v444_v57  ;;  %v1962_v45 = vadd.f32 %v734_v12, %v515_v58 }
 0x12e   :  { %v665_v46 = vpop.f32.mrf.mxu0  ;;  %v736_v14 = vpop.f32.mrf.mxu1 }
 0x12f   :  { %2197 = vst [vmem:[#allocation20_spill] sm:$0xff] %v1960_v13  ;;  %2198 = vst [vmem:[#allocation21_spill] sm:$0xff] %v1962_v45  ;;  %v1964_v15 = vadd.f32 %v665_v46, %v446_v59  ;;  %v1966_v49 = vadd.f32 %v736_v14, %v517_v60 }
 0x130   :  { %v669_v50 = vpop.f32.mrf.mxu0  ;;  %v740_v16 = vpop.f32.mrf.mxu1 }
 0x131   :  { %2199 = vst [vmem:[#allocation22_spill] sm:$0xff] %v1964_v15  ;;  %2200 = vst [vmem:[#allocation23_spill] sm:$0xff] %v1966_v49  ;;  %v1968_v19 = vadd.f32 %v669_v50, %v450_v61  ;;  %v1970_v53 = vadd.f32 %v740_v16, %v521_v62 }
 0x132   :  { %v671_v54 = vpop.f32.mrf.mxu0  ;;  %v742_v20 = vpop.f32.mrf.mxu1 }
 0x133   :  { %2201 = vst [vmem:[#allocation24_spill] sm:$0xff] %v1968_v19  ;;  %2202 = vst [vmem:[#allocation25_spill] sm:$0xff] %v1970_v53  ;;  %v1972_v1 = vadd.f32 %v671_v54, %v452_v63  ;;  %v1974_v57 = vadd.f32 %v742_v20, %v523_v0 }
 0x134   :  { %v673_v58 = vpop.f32.mrf.mxu0  ;;  %v744_v2 = vpop.f32.mrf.mxu1 }
 0x135   :  { %2203 = vst [vmem:[#allocation26_spill] sm:$0xff] %v1972_v1  ;;  %2204 = vst [vmem:[#allocation27_spill] sm:$0xff] %v1974_v57 }
 0x136   :  { %v674_v23 = vpop.f32.mrf.mxu0  ;;  %v745_v24 = vpop.f32.mrf.mxu1 }
 0x138   :  { %v1976_v59 = vpop.f32.mrf.mxu0  ;;  %v1978_v60 = vpop.f32.mrf.mxu1 }
 0x13a   :  { %v1980_v5 = vpop.f32.mrf.mxu0  ;;  %v1982_v61 = vpop.f32.mrf.mxu1 }
 0x13c   :  { %v1984_v62 = vpop.f32.mrf.mxu0  ;;  %v1986_v6 = vpop.f32.mrf.mxu1 }
 0x13e   :  { %v1988_v63 = vpop.f32.mrf.mxu0  ;;  %v1990_v0 = vpop.f32.mrf.mxu1 }
 0x140   :  { %v1992_v8 = vpop.f32.mrf.mxu0  ;;  %v1994_v28 = vpop.f32.mrf.mxu1 }
 0x142   :  { %v1996_v31 = vpop.f32.mrf.mxu0  ;;  %v1998_v32 = vpop.f32.mrf.mxu1 }
 0x144   :  { %v2000_v18 = vpop.f32.mrf.mxu0  ;;  %v2002_v36 = vpop.f32.mrf.mxu1 }
 0x146   :  { %v2004_v22 = vpop.f32.mrf.mxu0  ;;  %v2006_v40 = vpop.f32.mrf.mxu1 }
 0x148   :  { %v2008_v26 = vpop.f32.mrf.mxu0  ;;  %v2010_v44 = vpop.f32.mrf.mxu1 }
 0x14a   :  { %v2012_v30 = vpop.f32.mrf.mxu0  ;;  %v2014_v48 = vpop.f32.mrf.mxu1 }
 0x14c   :  { %v2016_v34 = vpop.f32.mrf.mxu0  ;;  %v2018_v52 = vpop.f32.mrf.mxu1 }
 0x14d   :  { %2205 = vst [vmem:[#allocation28_spill] sm:$0xff] %v2018_v52 }
 0x14e   :  { %v2020_v38 = vpop.f32.mrf.mxu0  ;;  %v2022_v56 = vpop.f32.mrf.mxu1 }
 0x14f   :  { %2206 = vst [vmem:[#allocation29_spill] sm:$0xff] %v2020_v38  ;;  %2207 = vst [vmem:[#allocation30_spill] sm:$0xff] %v2022_v56 }
 0x150   :  { %v2024_v42 = vpop.f32.mrf.mxu0  ;;  %v2026_v12 = vpop.f32.mrf.mxu1 }
 0x151   :  { %2208 = vst [vmem:[#allocation31_spill] sm:$0xff] %v2024_v42  ;;  %2209 = vst [vmem:[#allocation32_spill] sm:$0xff] %v2026_v12 }
 0x152   :  { %v2028_v46 = vpop.f32.mrf.mxu0  ;;  %v2030_v14 = vpop.f32.mrf.mxu1 }
 0x153   :  { %2210 = vst [vmem:[#allocation33_spill] sm:$0xff] %v2028_v46  ;;  %2211 = vst [vmem:[#allocation34_spill] sm:$0xff] %v2030_v14  ;;  %v1310_v46 = vlaneseq }
 0x154   :  { %v850_v50 = vpop.f32.mrf.mxu0  ;;  %v921_v16 = vpop.f32.mrf.mxu1 }
 0x155   :  { %v1311_v47 = vshrl.u32 %v1310_v46, 7 }
 0x156   :  { %v851_v54 = vpop.f32.mrf.mxu0  ;;  %v922_v20 = vpop.f32.mrf.mxu1 }
 0x157   :  { %v1312_v42 = vsub.s32 0, %v1311_v47  ;;  %v1316_v39 = vsub.s32 1, %v1311_v47 }
 0x158   :  { %v958_v58 = vpop.f32.mrf.mxu0  ;;  %v1029_v2 = vpop.f32.mrf.mxu1 }
 0x159   :  { %v2047_v46 = vrot.slane %v1308_v17, %v1316_v39 }
 0x15a   :  { %v960_v23 = vpop.f32.mrf.mxu0  ;;  %v1031_v24 = vpop.f32.mrf.mxu1 }
 0x15b   :  { %v1032_v47 = vadd.f32 %v1031_v24, %v1982_v61 }
 0x15c   :  { %v962_v57 = vpop.f32.mrf.mxu0  ;;  %v1033_v1 = vpop.f32.mrf.mxu1 }
 0x15d   :  { %v1034_v52 = vadd.f32 %v1033_v1, %v1986_v6 }
 0x15e   :  { %v964_v53 = vpop.f32.mrf.mxu0  ;;  %v1035_v19 = vpop.f32.mrf.mxu1 }
 0x160   :  { %v968_v49 = vpop.f32.mrf.mxu0  ;;  %v1039_v15 = vpop.f32.mrf.mxu1 }
 0x161   :  { %v1040_v39 = vadd.f32 %v1039_v15, %v1994_v28 }
 0x162   :  { %v970_v45 = vpop.f32.mrf.mxu0  ;;  %v1041_v13 = vpop.f32.mrf.mxu1 }
 0x163   :  { %v1042_v61 = vadd.f32 %v1041_v13, %v1998_v32 }
 0x164   :  { %v972_v41 = vpop.f32.mrf.mxu0  ;;  %v1043_v11 = vpop.f32.mrf.mxu1 }
 0x165   :  { %v1044_v1 = vadd.f32 %v1043_v11, %v2002_v36 }
 0x166   :  { %v974_v37 = vpop.f32.mrf.mxu0  ;;  %v1045_v14 = vpop.f32.mrf.mxu1 }
 0x167   :  { %v975_v15 = vadd.f32 %v974_v37, %v2004_v22 }
 0x168   :  { %v978_v50 = vpop.f32.mrf.mxu0  ;;  %v1049_v16 = vpop.f32.mrf.mxu1 }
 0x169   :  { %v2071_v13 = vadd.f32 %v1049_v16, %v2010_v44 }
 0x16a   :  { %v980_v54 = vpop.f32.mrf.mxu0  ;;  %v1051_v20 = vpop.f32.mrf.mxu1 }
 0x16b   :  { %v2079_v37 = vadd.f32 %v1051_v20, %v2014_v48 }
 0x16c   :  { %v982_v55 = vpop.f32.mrf.mxu0  ;;  %v1053_v33 = vpop.f32.mrf.mxu1 }
 0x16e   :  { %v984_v51 = vpop.f32.mrf.mxu0  ;;  %v2032_v29 = vpop.f32.mrf.mxu1 }
 0x16f   :  { %2212 = vst [vmem:[#allocation35_spill] sm:$0xff] %v2032_v29  ;;  %v2045_v29 = vrot.slane %v1308_v17, %v1312_v42  ;;  %v969_v17 = vadd.f32 %v968_v49, %v1992_v8  ;;  %v2082_v8 = vadd.f32 %v982_v55, %v2016_v34 }
 0x170   :  { %v2034_v12 = vpop.f32.mrf.mxu0  ;;  %v2036_v25 = vpop.f32.mrf.mxu1 }
 0x171   :  { %2213 = vst [vmem:[#allocation36_spill] sm:$0xff] %v2034_v12  ;;  %2214 = vst [vmem:[#allocation37_spill] sm:$0xff] %v2036_v25  ;;  %v959_v25 = vadd.f32 %v958_v58, %v1976_v59  ;;  %v963_v12 = vadd.f32 %v962_v57, %v1984_v62  ;;  %v973_v57 = vadd.f32 %v972_v41, %v2000_v18 }
 0x172   :  { %v2038_v43 = vpop.f32.mrf.mxu0  ;;  %v2040_v21 = vpop.f32.mrf.mxu1 }
 0x173   :  { %2215 = vst [vmem:[#allocation38_spill] sm:$0xff] %v2038_v43  ;;  %2216 = vst [vmem:[#allocation39_spill] sm:$0xff] %v2040_v21  ;;  %v1030_v43 = vadd.f32 %v1029_v2, %v1978_v60  ;;  %v961_v21 = vadd.f32 %v960_v23, %v1980_v5  ;;  %v971_v5 = vadd.f32 %v970_v45, %v1996_v31  ;;  %v2222_v2 = vld [vmem:[#allocation6_spill] sm:$0xff] }
 0x174   :  { %v992_v35 = vpop.f32.mrf.mxu0  ;;  %v1063_v56 = vpop.f32.mrf.mxu1 }
 0x175   :  { %v965_v35 = vadd.f32 %v964_v53, %v1988_v63 }
 0x176   :  { %v993_v10 = vpop.f32.mrf.mxu0  ;;  %v1064_v38 = vpop.f32.mrf.mxu1 }
 0x177   :  { %v1036_v10 = vadd.f32 %v1035_v19, %v1990_v0 }
 0x178   :  { %v1130_v38 = vpop.f32.mrf.mxu0  ;;  %v1201_v56 = vpop.f32.mrf.mxu1 }
 0x179   :  { %v1238_v59 = vadd.f32 %v1130_v38, %v959_v25  ;;  %v1240_v60 = vadd.f32 %v1201_v56, %v1030_v43  ;;  %v1046_v43 = vadd.f32 %v1045_v14, %v2006_v40  ;;  %v2068_v25 = vadd.f32 %v978_v50, %v2008_v26  ;;  %v2218_v26 = vld [vmem:[#allocation29_spill] sm:$0xff]  ;;  %v2223_v50 = vld [vmem:[#allocation7_spill] sm:$0xff] }
 0x17a   :  { %v1132_v62 = vpop.f32.mrf.mxu0  ;;  %v1203_v53 = vpop.f32.mrf.mxu1  ;;  %v2090_v44 = vadd.f32 %v984_v51, %v2218_v26 }
 0x17b   :  { %v1266_v19 = vmax.f32 %v1920_v3, %v1238_v59  ;;  %v1268_v6 = vmax.f32 %v1922_v4, %v1240_v60  ;;  %v1239_v63 = vadd.f32 %v1132_v62, %v961_v21  ;;  %v1241_v49 = vadd.f32 %v1203_v53, %v1032_v47  ;;  %v2225_v59 = vld [vmem:[#allocation31_spill] sm:$0xff]  ;;  %v2226_v60 = vld [vmem:[#allocation36_spill] sm:$0xff] }
 0x17c   :  { %v1134_v41 = vpop.f32.mrf.mxu0  ;;  %v1205_v11 = vpop.f32.mrf.mxu1  ;;  %v2076_v21 = vadd.f32 %v980_v54, %v2012_v30  ;;  %v2219_v30 = vld [vmem:[#allocation5_spill] sm:$0xff]  ;;  %v2103_v62 = vadd.f32 %v2226_v60, %v2225_v59 }
 0x17d   :  { %v1294_v45 = vmax.f32 %v1266_v19, %v1268_v6  ;;  %v1267_v0 = vmax.f32 %v1924_v27, %v1239_v63  ;;  %v1269_v3 = vmax.f32 %v1926_v7, %v1241_v49  ;;  %v1242_v4 = vadd.f32 %v1134_v41, %v963_v12  ;;  %v2217_v7 = vld [vmem:[#allocation28_spill] sm:$0xff]  ;;  %v2221_v12 = vld [vmem:[#allocation35_spill] sm:$0xff]  ;;  %v2239_v60 = vld [vmem:[#allocation17_spill] sm:$0xff] }
 0x17e   :  { %v1244_v28 = vadd.f32 %v1205_v11, %v1034_v52  ;;  %v1136_v31 = vpop.f32.mrf.mxu0  ;;  %v1207_v32 = vpop.f32.mrf.mxu1  ;;  %v2087_v40 = vadd.f32 %v1053_v33, %v2217_v7  ;;  %v2220_v52 = vld [vmem:[#allocation30_spill] sm:$0xff] }
 0x17f   :  { %v1320_v18 = vadd.f32 %v2045_v29, %v1294_v45  ;;  %v1295_v36 = vmax.f32 %v1267_v0, %v1269_v3  ;;  %v1270_v27 = vmax.f32 %v1928_v9, %v1242_v4  ;;  %v1243_v22 = vadd.f32 %v1136_v31, %v965_v35  ;;  %v2224_v35 = vld [vmem:[#allocation8_spill] sm:$0xff]  ;;  %v2229_v45 = vld [vmem:[#allocation11_spill] sm:$0xff] }
 0x180   :  { %v1272_v48 = vmax.f32 %v2219_v30, %v1244_v28  ;;  %v1245_v42 = vadd.f32 %v1207_v32, %v1036_v10  ;;  %v1140_v55 = vpop.f32.mrf.mxu0  ;;  %v1211_v34 = vpop.f32.mrf.mxu1  ;;  %v2095_v14 = vadd.f32 %v2221_v12, %v2220_v52  ;;  %v2230_v4 = vld [vmem:[#allocation32_spill] sm:$0xff] }
 0x181   :  { %v1321_v58 = vadd.f32 %v2047_v46, %v1295_v36  ;;  %v1271_v9 = vmax.f32 %v2222_v2, %v1243_v22  ;;  %v1246_v23 = vadd.f32 %v1140_v55, %v969_v17  ;;  %v1334_v24 = vmax.f32 %v1320_v18, 0.0  ;;  %v2227_v17 = vld [vmem:[#allocation9_spill] sm:$0xff]  ;;  %v2232_v22 = vld [vmem:[#allocation12_spill] sm:$0xff] }
 0x182   :  { %v1296_v33 = vmax.f32 %v1270_v27, %v1272_v48  ;;  %v1273_v16 = vmax.f32 %v2223_v50, %v1245_v42  ;;  %v1248_v51 = vadd.f32 %v1211_v34, %v1040_v39  ;;  %v1142_v54 = vpop.f32.mrf.mxu0  ;;  %v1213_v20 = vpop.f32.mrf.mxu1  ;;  %v2228_v39 = vld [vmem:[#allocation10_spill] sm:$0xff]  ;;  %v2233_v55 = vld [vmem:[#allocation13_spill] sm:$0xff] }
 0x183   :  { %v1335_v47 = vmax.f32 %v1321_v58, 0.0  ;;  %v1274_v10 = vmax.f32 %v2224_v35, %v1246_v23  ;;  %v1247_v38 = vadd.f32 %v1142_v54, %v971_v5  ;;  %v1249_v56 = vadd.f32 %v1213_v20, %v1042_v61  ;;  %v2231_v5 = vld [vmem:[#allocation37_spill] sm:$0xff]  ;;  %v2234_v58 = vld [vmem:[#allocation14_spill] sm:$0xff] }
 0x184   :  { %v1322_v53 = vadd.f32 %v2045_v29, %v1296_v33  ;;  %v1297_v19 = vmax.f32 %v1271_v9, %v1273_v16  ;;  %v1276_v6 = vmax.f32 %v2227_v17, %v1248_v51  ;;  %v1144_v63 = vpop.f32.mrf.mxu0  ;;  %v1215_v49 = vpop.f32.mrf.mxu1  ;;  %v2111_v61 = vadd.f32 %v2231_v5, %v2230_v4  ;;  %v2235_v9 = vld [vmem:[#allocation15_spill] sm:$0xff] }
 0x185   :  { %v1511_v41 = vpack.c.bf16 %v1335_v47, %v1334_v24  ;;  %v1275_v11 = vmax.f32 %v2228_v39, %v1247_v38  ;;  %v1277_v0 = vmax.f32 %v2229_v45, %v1249_v56  ;;  %v1250_v3 = vadd.f32 %v1144_v63, %v973_v57  ;;  %v2236_v47 = vld [vmem:[#allocation16_spill] sm:$0xff]  ;;  %v2237_v38 = vld [vmem:[#allocation33_spill] sm:$0xff]  ;;  %v2238_v56 = vld [vmem:[#allocation38_spill] sm:$0xff] }
 0x186   :  { %v1323_v28 = vadd.f32 %v2047_v46, %v1297_v19  ;;  %v1298_v31 = vmax.f32 %v1274_v10, %v1276_v6  ;;  %v1252_v32 = vadd.f32 %v1215_v49, %v1044_v1  ;;  %v1146_v18 = vpop.f32.mrf.mxu0  ;;  %v1217_v36 = vpop.f32.mrf.mxu1  ;;  %v1336_v57 = vmax.f32 %v1322_v53, 0.0  ;;  %v2240_v49 = vld [vmem:[#allocation18_spill] sm:$0xff]  ;;  %v2241_v45 = vld [vmem:[#allocation19_spill] sm:$0xff] }
 0x187   :  { %1392 = vst [vmem:[%s2181_s6] sm:$0xff] %v1511_v41  ;;  %v1299_v27 = vmax.f32 %v1275_v11, %v1277_v0  ;;  %v1278_v7 = vmax.f32 %v2232_v22, %v1250_v3  ;;  %v1251_v26 = vadd.f32 %v1146_v18, %v975_v15  ;;  %v1253_v30 = vadd.f32 %v1217_v36, %v1046_v43  ;;  %v2244_v36 = vld [vmem:[#allocation39_spill] sm:$0xff] }
 0x188   :  { %v1337_v48 = vmax.f32 %v1323_v28, 0.0  ;;  %v1324_v42 = vadd.f32 %v2045_v29, %v1298_v31  ;;  %v1280_v34 = vmax.f32 %v2233_v55, %v1252_v32  ;;  %v1150_v52 = vpop.f32.mrf.mxu0  ;;  %v1221_v12 = vpop.f32.mrf.mxu1  ;;  %v991_v59 = vadd.f32 %v2238_v56, %v2237_v38  ;;  %v2242_v28 = vld [vmem:[#allocation20_spill] sm:$0xff] }
 0x189   :  { %v1325_v1 = vadd.f32 %v2047_v46, %v1299_v27  ;;  %v1279_v2 = vmax.f32 %v2234_v58, %v1251_v26  ;;  %v1281_v23 = vmax.f32 %v2235_v9, %v1253_v30  ;;  %v1254_v24 = vadd.f32 %v1150_v52, %v2068_v25 }
 0x18a   :  { %v1512_v33 = vpack.c.bf16 %v1337_v48, %v1336_v57  ;;  %v1338_v50 = vmax.f32 %v1324_v42, 0.0  ;;  %v1300_v15 = vmax.f32 %v1278_v7, %v1280_v34  ;;  %v1256_v43 = vadd.f32 %v1221_v12, %v2071_v13  ;;  %v1152_v16 = vpop.f32.mrf.mxu0  ;;  %v1223_v51 = vpop.f32.mrf.mxu1  ;;  %v2246_v42 = vld [vmem:[#allocation22_spill] sm:$0xff]  ;;  %v2247_v34 = vld [vmem:[#allocation23_spill] sm:$0xff] }
 0x18b   :  { %v1339_v54 = vmax.f32 %v1325_v1, 0.0  ;;  %v1301_v20 = vmax.f32 %v1279_v2, %v1281_v23  ;;  %v1282_v35 = vmax.f32 %v2236_v47, %v1254_v24  ;;  %v1255_v10 = vadd.f32 %v1152_v16, %v2076_v21  ;;  %v2248_v23 = vld [vmem:[#allocation24_spill] sm:$0xff]  ;;  %v2249_v16 = vld [vmem:[#allocation25_spill] sm:$0xff]  ;;  %v2250_v47 = vld [vmem:[#allocation26_spill] sm:$0xff] }
 0x18c   :  { %1393 = vst [vmem:[%s2181_s6 + $0x8] sm:$0xff] %v1512_v33  ;;  %v1326_v25 = vadd.f32 %v2045_v29, %v1300_v15  ;;  %v1284_v53 = vmax.f32 %v2239_v60, %v1256_v43  ;;  %v1257_v13 = vadd.f32 %v1223_v51, %v2079_v37  ;;  %v1154_v19 = vpop.f32.mrf.mxu0  ;;  %v1225_v17 = vpop.f32.mrf.mxu1 }
 0x18d   :  { %v1513_v6 = vpack.c.bf16 %v1339_v54, %v1338_v50  ;;  %v1327_v63 = vadd.f32 %v2047_v46, %v1301_v20  ;;  %v1283_v21 = vmax.f32 %v2240_v49, %v1255_v10  ;;  %v1258_v41 = vadd.f32 %v1154_v19, %v2082_v8  ;;  %v2243_v8 = vld [vmem:[#allocation34_spill] sm:$0xff]  ;;  %v2251_v10 = vld [vmem:[#allocation27_spill] sm:$0xff] }
 0x18e   :  { %v1340_v39 = vmax.f32 %v1326_v25, 0.0  ;;  %v1302_v11 = vmax.f32 %v1282_v35, %v1284_v53  ;;  %v1285_v0 = vmax.f32 %v2241_v45, %v1257_v13  ;;  %v1260_v3 = vadd.f32 %v1225_v17, %v2087_v40  ;;  %v1156_v4 = vpop.f32.mrf.mxu0  ;;  %v1227_v5 = vpop.f32.mrf.mxu1  ;;  %v2245_v40 = vld [vmem:[#allocation21_spill] sm:$0xff] }
 0x18f   :  { %1394 = vst [vmem:[%s2181_s6 + $0x10] sm:$0xff] %v1513_v6  ;;  %v1341_v37 = vmax.f32 %v1327_v63, 0.0  ;;  %v1286_v31 = vmax.f32 %v2242_v28, %v1258_v41  ;;  %v1259_v32 = vadd.f32 %v1156_v4, %v2090_v44  ;;  %v1261_v18 = vadd.f32 %v1227_v5, %v2095_v14 }
 0x190   :  { %v1062_v27 = vadd.f32 %v2244_v36, %v2243_v8  ;;  %v1328_v22 = vadd.f32 %v2045_v29, %v1302_v11  ;;  %v1303_v7 = vmax.f32 %v1283_v21, %v1285_v0  ;;  %v1288_v26 = vmax.f32 %v2245_v40, %v1260_v3  ;;  %v1160_v30 = vpop.f32.mrf.mxu0  ;;  %v1231_v57 = vpop.f32.mrf.mxu1 }
 0x191   :  { %v1514_v48 = vpack.c.bf16 %v1341_v37, %v1340_v39  ;;  %v1287_v55 = vmax.f32 %v2246_v42, %v1259_v32  ;;  %v1289_v52 = vmax.f32 %v2247_v34, %v1261_v18  ;;  %v1262_v12 = vadd.f32 %v1160_v30, %v2103_v62 }
 0x192   :  { %v1329_v44 = vadd.f32 %v2047_v46, %v1303_v7  ;;  %v1304_v14 = vmax.f32 %v1286_v31, %v1288_v26  ;;  %v1264_v1 = vadd.f32 %v1231_v57, %v2111_v61  ;;  %v1162_v58 = vpop.f32.mrf.mxu0  ;;  %v1233_v2 = vpop.f32.mrf.mxu1  ;;  %v1342_v15 = vmax.f32 %v1328_v22, 0.0 }
 0x193   :  { %1395 = vst [vmem:[%s2181_s6 + $0x18] sm:$0xff] %v1514_v48  ;;  %v1305_v9 = vmax.f32 %v1287_v55, %v1289_v52  ;;  %v1290_v24 = vmax.f32 %v2248_v23, %v1262_v12  ;;  %v1263_v33 = vadd.f32 %v1162_v58, %v991_v59  ;;  %v1265_v50 = vadd.f32 %v1233_v2, %v1062_v27 }
 0x194   :  { %v1343_v43 = vmax.f32 %v1329_v44, 0.0  ;;  %v1330_v62 = vadd.f32 %v2045_v29, %v1304_v14  ;;  %v1292_v51 = vmax.f32 %v2249_v16, %v1264_v1  ;;  %v1164_v54 = vpop.f32.mrf.mxu0  ;;  %v1235_v20 = vpop.f32.mrf.mxu1 }
 0x195   :  { %v1331_v61 = vadd.f32 %v2047_v46, %v1305_v9  ;;  %v1291_v35 = vmax.f32 %v2250_v47, %v1263_v33  ;;  %v1293_v38 = vmax.f32 %v2251_v10, %v1265_v50 }
 0x196   :  { %v1515_v56 = vpack.c.bf16 %v1343_v43, %v1342_v15  ;;  %v1306_v25 = vmax.f32 %v1290_v24, %v1292_v51  ;;  %v1165_v60 = vpop.f32.mrf.mxu0  ;;  %v1236_v53 = vpop.f32.mrf.mxu1  ;;  %v1344_v59 = vmax.f32 %v1330_v62, 0.0 }
 0x197   :  { %v1345_v13 = vmax.f32 %v1331_v61, 0.0  ;;  %v1307_v19 = vmax.f32 %v1291_v35, %v1293_v38 }
 0x198   :  { %1396 = vst [vmem:[%s2181_s6 + $0x20] sm:$0xff] %v1515_v56  ;;  %v1332_v17 = vadd.f32 %v2045_v29, %v1306_v25 }
 0x199   :  { %v1516_v6 = vpack.c.bf16 %v1345_v13, %v1344_v59  ;;  %v1333_v63 = vadd.f32 %v2047_v46, %v1307_v19 }
 0x19a   :  { %v1346_v49 = vmax.f32 %v1332_v17, 0.0 }
 0x19b   :  { %1397 = vst [vmem:[%s2181_s6 + $0x28] sm:$0xff] %v1516_v6  ;;  %v1347_v21 = vmax.f32 %v1333_v63, 0.0 }
 0x19d   :  { %v1517_v41 = vpack.c.bf16 %v1347_v21, %v1346_v49 }
 0x19f   :  { %1398 = vst [vmem:[%s2181_s6 + $0x30] sm:$0xff] %v1517_v41 }
 0x1a0   :  { %1403 = vsyncpa [#allocation3], 1 }

// kernel: simple_cnn_forward.5
= control target key start
LH: loop header
LB: loop body
LE: loop exit
PB: predicated region body
PF: predicated region fallthrough
CT: control target
= control target key end

     0   :  { %vm1834_vm0 = vmmov 0   ;;  %s2255_s1 = inlined_call_operand.vmem [shape: bf16[1792,128], index: 1, kind: input, shape index: {}]   ;;  %s2256_s0 = inlined_call_operand.vmem [shape: bf16[8,1792], index: 0, kind: input, shape index: {}]   ;;  %s2257_s3 = inlined_call_operand.vmem [shape: bf16[128,128], index: 3, kind: input, shape index: {}]   ;;  %s2258_s2 = inlined_call_operand.vmem [shape: f32[1,128], index: 2, kind: input, shape index: {}]   ;;  %s2259_s4 = inlined_call_operand.vmem [shape: f32[1,128], index: 4, kind: input, shape index: {}]   ;;  %s2260_s5 = inlined_call_operand.vmem [shape: f32[8,128], index: 5, kind: output, shape index: {}]  }
   0x1   :  { %v1699_v0 = vld [vmem:[%s2255_s1 + $0x78] sm:$0xff]   ;;  %v1703_v4 = vld [vmem:[%s2255_s1 + $0x70] sm:$0xff]   ;;  %v1707_v8 = vld [vmem:[%s2255_s1 + $0x68] sm:$0xff]  }
   0x2   :  { %v1700_v1 = vld [vmem:[%s2255_s1 + $0x38] sm:$0xff]   ;;  %1514 = vmatprep.subr.bf16.mxu0 %v1699_v0  ;;  %v1704_v5 = vld [vmem:[%s2255_s1 + $0x30] sm:$0xff]   ;;  %v1708_v9 = vld [vmem:[%s2255_s1 + $0x28] sm:$0xff]  }
   0x3   :  { %v1701_v2 = vld [vmem:[%s2255_s1 + $0xf8] sm:$0xff]   ;;  %1515 = vmatpush3.bf16.msra.mxu0 %v1700_v1  ;;  %v1705_v6 = vld [vmem:[%s2255_s1 + $0xf0] sm:$0xff]   ;;  %v1709_v10 = vld [vmem:[%s2255_s1 + $0xe8] sm:$0xff]  }
   0x4   :  { %v1702_v3 = vld [vmem:[%s2255_s1 + $0xb8] sm:$0xff]   ;;  %1536 = vmatprep.subr.bf16.mxu1 %v1701_v2  ;;  %1516 = vmatprep.subr.bf16.mxu0 %v1703_v4  ;;  %v1706_v7 = vld [vmem:[%s2255_s1 + $0xb0] sm:$0xff]   ;;  %v1710_v11 = vld [vmem:[%s2255_s1 + $0xa8] sm:$0xff]  }
   0x5   :  { %1537 = vmatpush3.bf16.msra.mxu1 %v1702_v3  ;;  %v1711_v12 = vld [vmem:[%s2255_s1 + $0x60] sm:$0xff]   ;;  %v1715_v16 = vld [vmem:[%s2255_s1 + $0x58] sm:$0xff]   ;;  %v1719_v20 = vld [vmem:[%s2255_s1 + $0x50] sm:$0xff]  }
   0x6   :  { %1538 = vmatprep.subr.bf16.mxu1 %v1705_v6  ;;  %v1712_v13 = vld [vmem:[%s2255_s1 + $0x20] sm:$0xff]   ;;  %v1716_v17 = vld [vmem:[%s2255_s1 + $0x18] sm:$0xff]   ;;  %v1720_v21 = vld [vmem:[%s2255_s1 + $0x10] sm:$0xff]  }
   0x7   :  { %1517 = vmatpush3.bf16.msra.mxu0 %v1704_v5  ;;  %v1713_v14 = vld [vmem:[%s2255_s1 + $0xe0] sm:$0xff]   ;;  %v1717_v18 = vld [vmem:[%s2255_s1 + $0xd8] sm:$0xff]   ;;  %v1721_v22 = vld [vmem:[%s2255_s1 + $0xd0] sm:$0xff]  }
   0x8   :  { %1518 = vmatprep.subr.bf16.mxu0 %v1707_v8  ;;  %v1714_v15 = vld [vmem:[%s2255_s1 + $0xa0] sm:$0xff]   ;;  %v1718_v19 = vld [vmem:[%s2255_s1 + $0x98] sm:$0xff]   ;;  %v1722_v23 = vld [vmem:[%s2255_s1 + $0x90] sm:$0xff]  }
   0x9   :  { %1539 = vmatpush3.bf16.msra.mxu1 %v1706_v7  ;;  %v1723_v24 = vld [vmem:[%s2255_s1 + $0x48] sm:$0xff]   ;;  %v1727_v28 = vld [vmem:[%s2255_s1 + $0x40] sm:$0xff]   ;;  %v1733_v35 = vld [vmem:[%s2255_s1 + $0x178] sm:$0xff]  }
   0xa   :  { %1540 = vmatprep.subr.bf16.mxu1 %v1709_v10  ;;  %v1724_v25 = vld [vmem:[%s2255_s1 + $0x8] sm:$0xff]   ;;  %v1728_v29 = vld [vmem:[%s2255_s1] sm:$0xff]   ;;  %v1736_v39 = vld [vmem:[%s2255_s1 + $0x138] sm:$0xff]  }
   0xb   :  { %1519 = vmatpush3.bf16.msra.mxu0 %v1708_v9  ;;  %v1725_v26 = vld [vmem:[%s2255_s1 + $0xc8] sm:$0xff]   ;;  %v1729_v30 = vld [vmem:[%s2255_s1 + $0xc0] sm:$0xff]   ;;  %v1737_v40 = vld [vmem:[%s2255_s1 + $0x1f8] sm:$0xff]  }
   0xc   :  { %1520 = vmatprep.subr.bf16.mxu0 %v1711_v12  ;;  %v1726_v27 = vld [vmem:[%s2255_s1 + $0x88] sm:$0xff]   ;;  %v21_v31 = vld [vmem:[%s2256_s0] sm:$0xff]  ;;  %v1738_v41 = vld [vmem:[%s2255_s1 + $0x1b8] sm:$0xff]  }
   0xd   :  { %1541 = vmatpush3.bf16.msra.mxu1 %v1710_v11  ;;  %v1379_v32 = vcombine.low %v21_v31, %v21_v31  ;;  %v1380_v33 = vcombine.high %v21_v31, %v21_v31  ;;  %v1732_v34 = vld [vmem:[%s2255_s1 + $0x80] sm:$0xff]   ;;  %v22_v36 = vld [vmem:[%s2256_s0 + $0x8] sm:$0xff]  ;;  %v1739_v42 = vld [vmem:[%s2255_s1 + $0x170] sm:$0xff]  }
   0xe   :  { %1542 = vmatprep.subr.bf16.mxu1 %v1713_v14  ;;  %v1381_v37 = vcombine.low %v22_v36, %v22_v36  ;;  %v1382_v38 = vcombine.high %v22_v36, %v22_v36  ;;  %v1740_v43 = vld [vmem:[%s2255_s1 + $0x130] sm:$0xff]   ;;  %v1743_v46 = vld [vmem:[%s2255_s1 + $0x168] sm:$0xff]   ;;  %v1747_v50 = vld [vmem:[%s2255_s1 + $0x160] sm:$0xff]  }
   0xf   :  { %1521 = vmatpush3.bf16.msra.mxu0 %v1712_v13  ;;  %1012 = vmatprep.mubr.bf16.mxu0 %v1380_v33  ;;  %v1741_v44 = vld [vmem:[%s2255_s1 + $0x1f0] sm:$0xff]   ;;  %v1744_v47 = vld [vmem:[%s2255_s1 + $0x128] sm:$0xff]   ;;  %v1748_v51 = vld [vmem:[%s2255_s1 + $0x120] sm:$0xff]  }
  0x10   :  { %1522 = vmatprep.subr.bf16.mxu0 %v1715_v16  ;;  %1052 = vmatprep.mubr.bf16.mxu1 %v1382_v38  ;;  %v1742_v45 = vld [vmem:[%s2255_s1 + $0x1b0] sm:$0xff]   ;;  %v1745_v48 = vld [vmem:[%s2255_s1 + $0x1e8] sm:$0xff]   ;;  %v1749_v52 = vld [vmem:[%s2255_s1 + $0x1e0] sm:$0xff]  }
  0x11   :  { %1543 = vmatpush3.bf16.msra.mxu1 %v1714_v15  ;;  %v1746_v49 = vld [vmem:[%s2255_s1 + $0x1a8] sm:$0xff]   ;;  %v1750_v53 = vld [vmem:[%s2255_s1 + $0x1a0] sm:$0xff]   ;;  %v1751_v54 = vld [vmem:[%s2255_s1 + $0x158] sm:$0xff]  }
  0x12   :  { %1544 = vmatprep.subr.bf16.mxu1 %v1717_v18  ;;  %v1752_v55 = vld [vmem:[%s2255_s1 + $0x118] sm:$0xff]   ;;  %v1755_v58 = vld [vmem:[%s2255_s1 + $0x150] sm:$0xff]   ;;  %v1759_v62 = vld [vmem:[%s2255_s1 + $0x148] sm:$0xff]  }
  0x13   :  { %1523 = vmatpush3.bf16.msra.mxu0 %v1716_v17  ;;  %v1753_v56 = vld [vmem:[%s2255_s1 + $0x1d8] sm:$0xff]   ;;  %v1756_v59 = vld [vmem:[%s2255_s1 + $0x110] sm:$0xff]   ;;  %v1760_v63 = vld [vmem:[%s2255_s1 + $0x108] sm:$0xff]  }
  0x14   :  { %1524 = vmatprep.subr.bf16.mxu0 %v1719_v20  ;;  %v1754_v57 = vld [vmem:[%s2255_s1 + $0x198] sm:$0xff]   ;;  %v1757_v60 = vld [vmem:[%s2255_s1 + $0x1d0] sm:$0xff]   ;;  %v1761_v0 = vld [vmem:[%s2255_s1 + $0x1c8] sm:$0xff]  }
  0x15   :  { %1545 = vmatpush3.bf16.msra.mxu1 %v1718_v19  ;;  %v1758_v61 = vld [vmem:[%s2255_s1 + $0x190] sm:$0xff]   ;;  %v1762_v1 = vld [vmem:[%s2255_s1 + $0x188] sm:$0xff]   ;;  %v1763_v2 = vld [vmem:[%s2255_s1 + $0x140] sm:$0xff]  }
  0x16   :  { %1546 = vmatprep.subr.bf16.mxu1 %v1721_v22  ;;  %v1764_v3 = vld [vmem:[%s2255_s1 + $0x100] sm:$0xff]   ;;  %v23_v5 = vld [vmem:[%s2256_s0 + $0x10] sm:$0xff]  ;;  %v1769_v9 = vld [vmem:[%s2255_s1 + $0x278] sm:$0xff]  }
  0x17   :  { %1525 = vmatpush3.bf16.msra.mxu0 %v1720_v21  ;;  %v1765_v4 = vld [vmem:[%s2255_s1 + $0x1c0] sm:$0xff]   ;;  %v1383_v6 = vcombine.low %v23_v5, %v23_v5  ;;  %v1384_v7 = vcombine.high %v23_v5, %v23_v5  ;;  %v24_v10 = vld [vmem:[%s2256_s0 + $0x18] sm:$0xff]  ;;  %v1775_v16 = vld [vmem:[%s2255_s1 + $0x270] sm:$0xff]   ;;  %v1833_v5 = vmov 0.0  }
  0x18   :  { %1526 = vmatprep.subr.bf16.mxu0 %v1723_v24  ;;  %v1768_v8 = vld [vmem:[%s2255_s1 + $0x180] sm:$0xff]   ;;  %v1385_v11 = vcombine.low %v24_v10, %v24_v10  ;;  %v1386_v12 = vcombine.high %v24_v10, %v24_v10  ;;  %v1772_v13 = vld [vmem:[%s2255_s1 + $0x238] sm:$0xff]   ;;  %v1776_v17 = vld [vmem:[%s2255_s1 + $0x230] sm:$0xff]  }
  0x19   :  { %1547 = vmatpush3.bf16.msra.mxu1 %v1722_v23  ;;  %v1773_v14 = vld [vmem:[%s2255_s1 + $0x2f8] sm:$0xff]   ;;  %v1777_v18 = vld [vmem:[%s2255_s1 + $0x2f0] sm:$0xff]   ;;  %v1779_v20 = vld [vmem:[%s2255_s1 + $0x268] sm:$0xff]  }
  0x1a   :  { %1548 = vmatprep.subr.bf16.mxu1 %v1725_v26  ;;  %v1774_v15 = vld [vmem:[%s2255_s1 + $0x2b8] sm:$0xff]   ;;  %v1778_v19 = vld [vmem:[%s2255_s1 + $0x2b0] sm:$0xff]   ;;  %v1780_v21 = vld [vmem:[%s2255_s1 + $0x228] sm:$0xff]  }
  0x1b   :  { %1527 = vmatpush3.bf16.msra.mxu0 %v1724_v25  ;;  %v1781_v22 = vld [vmem:[%s2255_s1 + $0x2e8] sm:$0xff]   ;;  %v1783_v24 = vld [vmem:[%s2255_s1 + $0x260] sm:$0xff]   ;;  %v1790_v31 = vld [vmem:[%s2255_s1 + $0x298] sm:$0xff]  }
  0x1c   :  { %1528 = vmatprep.subr.bf16.mxu0 %v1727_v28  ;;  %v1782_v23 = vld [vmem:[%s2255_s1 + $0x2a8] sm:$0xff]   ;;  %v1784_v25 = vld [vmem:[%s2255_s1 + $0x220] sm:$0xff]   ;;  %v1787_v28 = vld [vmem:[%s2255_s1 + $0x258] sm:$0xff]  }
  0x1d   :  { %1549 = vmatpush3.bf16.msra.mxu1 %v1726_v27  ;;  %v1785_v26 = vld [vmem:[%s2255_s1 + $0x2e0] sm:$0xff]   ;;  %v1792_v33 = vld [vmem:[%s2255_s1 + $0x210] sm:$0xff]   ;;  %v1795_v36 = vld [vmem:[%s2255_s1 + $0x248] sm:$0xff]  }
  0x1e   :  { %1550 = vmatprep.subr.bf16.mxu1 %v1729_v30  ;;  %v1786_v27 = vld [vmem:[%s2255_s1 + $0x2a0] sm:$0xff]   ;;  %v1789_v30 = vld [vmem:[%s2255_s1 + $0x2d8] sm:$0xff]   ;;  %v1797_v38 = vld [vmem:[%s2255_s1 + $0x2c8] sm:$0xff]  }
  0x1f   :  { %1529 = vmatpush3.bf16.msra.mxu0 %v1728_v29  ;;  %v1788_v29 = vld [vmem:[%s2255_s1 + $0x218] sm:$0xff]  }
  0x20   :  { %1558 = vmatprep.subr.bf16.mxu0 %v1733_v35  ;;  %v1794_v35 = vld [vmem:[%s2255_s1 + $0x290] sm:$0xff]   ;;  %v1829_v10 = vld [vmem:[%s2257_s3 + $0x18] sm:$0xff]  }
  0x21   :  { %1551 = vmatpush3.bf16.msra.mxu1 %v1732_v34  ;;  %v1793_v34 = vld [vmem:[%s2255_s1 + $0x2d0] sm:$0xff]  }
  0x22   :  { %1013 = vmatmul.mubr.bf16.vlgmr.msra.gmra.mxu0 %v1379_v32  ;;  %1580 = vmatprep.subr.bf16.mxu1 %v1737_v40  ;;  %v1791_v32 = vld [vmem:[%s2255_s1 + $0x250] sm:$0xff]   ;;  %v1799_v40 = vld [vmem:[%s2255_s1 + $0x240] sm:$0xff]  }
  0x23   :  { %1559 = vmatpush3.bf16.msra.mxu0 %v1736_v39  ;;  %1092 = vmatprep.mubr.bf16.mxu0 %v1384_v7  ;;  %v1798_v39 = vld [vmem:[%s2255_s1 + $0x288] sm:$0xff]   ;;  %v1826_v7 = vld [vmem:[%s2257_s3 + $0x30] sm:$0xff]  }
  0x24   :  { %1053 = vmatmul.mubr.bf16.vlgmr.msra.gmra.mxu1 %v1381_v37  ;;  %1560 = vmatprep.subr.bf16.mxu0 %v1739_v42  ;;  %v1796_v37 = vld [vmem:[%s2255_s1 + $0x208] sm:$0xff]   ;;  %v1801_v42 = vld [vmem:[%s2255_s1 + $0x2c0] sm:$0xff]  }
  0x25   :  { %1581 = vmatpush3.bf16.msra.mxu1 %v1738_v41  ;;  %1132 = vmatprep.mubr.bf16.mxu1 %v1386_v12  ;;  %v1800_v41 = vld [vmem:[%s2255_s1 + $0x200] sm:$0xff]   ;;  %v1831_v12 = vld [vmem:[%s2257_s3 + $0x8] sm:$0xff]  }
  0x26   :  { %1582 = vmatprep.subr.bf16.mxu1 %v1741_v44 }
  0x27   :  { %1561 = vmatpush3.bf16.msra.mxu0 %v1740_v43  ;;  %v25_v43 = vld [vmem:[%s2256_s0 + $0x20] sm:$0xff] }
  0x28   :  { %1562 = vmatprep.subr.bf16.mxu0 %v1743_v46  ;;  %v1387_v44 = vcombine.low %v25_v43, %v25_v43  ;;  %v1804_v46 = vld [vmem:[%s2255_s1 + $0x280] sm:$0xff]  }
  0x29   :  { %1583 = vmatpush3.bf16.msra.mxu1 %v1742_v45  ;;  %v1388_v45 = vcombine.high %v25_v43, %v25_v43 }
  0x2a   :  { %1584 = vmatprep.subr.bf16.mxu1 %v1745_v48  ;;  %v26_v48 = vld [vmem:[%s2256_s0 + $0x28] sm:$0xff] }
  0x2b   :  { %1563 = vmatpush3.bf16.msra.mxu0 %v1744_v47  ;;  %v1805_v47 = vld [vmem:[%s2255_s1 + $0x378] sm:$0xff]  }
  0x2c   :  { %1564 = vmatprep.subr.bf16.mxu0 %v1747_v50  ;;  %v1390_v50 = vcombine.high %v26_v48, %v26_v48 }
  0x2d   :  { %1585 = vmatpush3.bf16.msra.mxu1 %v1746_v49  ;;  %v1389_v49 = vcombine.low %v26_v48, %v26_v48 }
  0x2e   :  { %1586 = vmatprep.subr.bf16.mxu1 %v1749_v52  ;;  %v1809_v52 = vld [vmem:[%s2255_s1 + $0x370] sm:$0xff]  }
  0x2f   :  { %1565 = vmatpush3.bf16.msra.mxu0 %v1748_v51  ;;  %v1808_v51 = vld [vmem:[%s2255_s1 + $0x338] sm:$0xff]  }
  0x30   :  { %1566 = vmatprep.subr.bf16.mxu0 %v1751_v54  ;;  %v1811_v54 = vld [vmem:[%s2255_s1 + $0x368] sm:$0xff]  }
  0x31   :  { %1587 = vmatpush3.bf16.msra.mxu1 %v1750_v53  ;;  %v1810_v53 = vld [vmem:[%s2255_s1 + $0x330] sm:$0xff]  }
  0x32   :  { %1588 = vmatprep.subr.bf16.mxu1 %v1753_v56  ;;  %v1813_v56 = vld [vmem:[%s2255_s1 + $0x360] sm:$0xff]  }
  0x33   :  { %1567 = vmatpush3.bf16.msra.mxu0 %v1752_v55  ;;  %v1812_v55 = vld [vmem:[%s2255_s1 + $0x328] sm:$0xff]  }
  0x34   :  { %1568 = vmatprep.subr.bf16.mxu0 %v1755_v58  ;;  %v1815_v58 = vld [vmem:[%s2255_s1 + $0x358] sm:$0xff]  }
  0x35   :  { %1589 = vmatpush3.bf16.msra.mxu1 %v1754_v57  ;;  %v1814_v57 = vld [vmem:[%s2255_s1 + $0x320] sm:$0xff]  }
  0x36   :  { %1590 = vmatprep.subr.bf16.mxu1 %v1757_v60  ;;  %v1817_v60 = vld [vmem:[%s2255_s1 + $0x350] sm:$0xff]  }
  0x37   :  { %1569 = vmatpush3.bf16.msra.mxu0 %v1756_v59  ;;  %v1816_v59 = vld [vmem:[%s2255_s1 + $0x318] sm:$0xff]  }
  0x38   :  { %1570 = vmatprep.subr.bf16.mxu0 %v1759_v62 }
  0x39   :  { %1591 = vmatpush3.bf16.msra.mxu1 %v1758_v61  ;;  %v27_v61 = vld [vmem:[%s2256_s0 + $0x30] sm:$0xff] }
  0x3a   :  { %1592 = vmatprep.subr.bf16.mxu1 %v1761_v0  ;;  %v1392_v62 = vcombine.high %v27_v61, %v27_v61  ;;  %v1819_v0 = vld [vmem:[%s2255_s1 + $0x348] sm:$0xff]  }
  0x3b   :  { %1571 = vmatpush3.bf16.msra.mxu0 %v1760_v63  ;;  %v1818_v63 = vld [vmem:[%s2255_s1 + $0x310] sm:$0xff]  }
  0x3c   :  { %1572 = vmatprep.subr.bf16.mxu0 %v1763_v2  ;;  %v1821_v2 = vld [vmem:[%s2255_s1 + $0x340] sm:$0xff]  }
  0x3d   :  { %1593 = vmatpush3.bf16.msra.mxu1 %v1762_v1  ;;  %v1820_v1 = vld [vmem:[%s2255_s1 + $0x308] sm:$0xff]  }
  0x3e   :  { %1594 = vmatprep.subr.bf16.mxu1 %v1765_v4  ;;  %v1391_v4 = vcombine.low %v27_v61, %v27_v61 }
  0x3f   :  { %1573 = vmatpush3.bf16.msra.mxu0 %v1764_v3  ;;  %v1822_v3 = vld [vmem:[%s2255_s1 + $0x300] sm:$0xff]  }
  0x40   :  { %1602 = vmatprep.subr.bf16.mxu0 %v1769_v9  ;;  %v1828_v9 = vld [vmem:[%s2257_s3 + $0x20] sm:$0xff]  }
  0x41   :  { %1595 = vmatpush3.bf16.msra.mxu1 %v1768_v8  ;;  %v1827_v8 = vld [vmem:[%s2257_s3 + $0x28] sm:$0xff]  }
  0x42   :  { %1093 = vmatmul.mubr.bf16.vlgmr.msra.gmra.mxu0 %v1383_v6  ;;  %1624 = vmatprep.subr.bf16.mxu1 %v1773_v14  ;;  %v1825_v6 = vld [vmem:[%s2257_s3 + $0x38] sm:$0xff]  }
  0x43   :  { %1603 = vmatpush3.bf16.msra.mxu0 %v1772_v13  ;;  %1172 = vmatprep.mubr.bf16.mxu0 %v1388_v45  ;;  %v1832_v13 = vld [vmem:[%s2257_s3] sm:$0xff]  }
  0x44   :  { %1133 = vmatmul.mubr.bf16.vlgmr.msra.gmra.mxu1 %v1385_v11  ;;  %1604 = vmatprep.subr.bf16.mxu0 %v1775_v16  ;;  %v1830_v11 = vld [vmem:[%s2257_s3 + $0x10] sm:$0xff]  }
  0x45   :  { %1625 = vmatpush3.bf16.msra.mxu1 %v1774_v15  ;;  %1212 = vmatprep.mubr.bf16.mxu1 %v1390_v50  ;;  %v1378_v15 = vld [vmem:[%s2258_s2] ss:$0 sm:$0xff] }
  0x46   :  { %1626 = vmatprep.subr.bf16.mxu1 %v1777_v18 }
  0x47   :  { %1605 = vmatpush3.bf16.msra.mxu0 %v1776_v17 }
  0x48   :  { %1606 = vmatprep.subr.bf16.mxu0 %v1779_v20 }
  0x49   :  { %1627 = vmatpush3.bf16.msra.mxu1 %v1778_v19 }
  0x4a   :  { %1628 = vmatprep.subr.bf16.mxu1 %v1781_v22 }
  0x4b   :  { %1607 = vmatpush3.bf16.msra.mxu0 %v1780_v21 }
  0x4c   :  { %1608 = vmatprep.subr.bf16.mxu0 %v1783_v24 }
  0x4d   :  { %1629 = vmatpush3.bf16.msra.mxu1 %v1782_v23 }
  0x4e   :  { %1630 = vmatprep.subr.bf16.mxu1 %v1785_v26 }
  0x4f   :  { %1609 = vmatpush3.bf16.msra.mxu0 %v1784_v25 }
  0x50   :  { %1610 = vmatprep.subr.bf16.mxu0 %v1787_v28 }
  0x51   :  { %1631 = vmatpush3.bf16.msra.mxu1 %v1786_v27 }
  0x52   :  { %1632 = vmatprep.subr.bf16.mxu1 %v1789_v30 }
  0x53   :  { %1611 = vmatpush3.bf16.msra.mxu0 %v1788_v29 }
  0x54   :  { %1612 = vmatprep.subr.bf16.mxu0 %v1791_v32 }
  0x55   :  { %1633 = vmatpush3.bf16.msra.mxu1 %v1790_v31 }
  0x56   :  { %1634 = vmatprep.subr.bf16.mxu1 %v1793_v34 }
  0x57   :  { %1613 = vmatpush3.bf16.msra.mxu0 %v1792_v33 }
  0x58   :  { %1614 = vmatprep.subr.bf16.mxu0 %v1795_v36 }
  0x59   :  { %1635 = vmatpush3.bf16.msra.mxu1 %v1794_v35 }
  0x5a   :  { %1636 = vmatprep.subr.bf16.mxu1 %v1797_v38 }
  0x5b   :  { %1615 = vmatpush3.bf16.msra.mxu0 %v1796_v37 }
  0x5c   :  { %1616 = vmatprep.subr.bf16.mxu0 %v1799_v40 }
  0x5d   :  { %1637 = vmatpush3.bf16.msra.mxu1 %v1798_v39 }
  0x5e   :  { %1638 = vmatprep.subr.bf16.mxu1 %v1801_v42 }
  0x5f   :  { %1617 = vmatpush3.bf16.msra.mxu0 %v1800_v41 }
  0x60   :  { %1646 = vmatprep.subr.bf16.mxu0 %v1805_v47 }
  0x61   :  { %1639 = vmatpush3.bf16.msra.mxu1 %v1804_v46 }
  0x62   :  { %1173 = vmatmul.mubr.bf16.vlgmr.msra.gmra.mxu0 %v1387_v44  ;;  %1677 = vmatprep.subr.bf16.mxu1 %v1833_v5 }
  0x63   :  { %1647 = vmatpush3.bf16.msra.mxu0 %v1808_v51  ;;  %1252 = vmatprep.mubr.bf16.mxu0 %v1392_v62 }
  0x64   :  { %1213 = vmatmul.mubr.bf16.vlgmr.msra.gmra.mxu1 %v1389_v49  ;;  %1648 = vmatprep.subr.bf16.mxu0 %v1809_v52 }
  0x65   :  { %1678 = vmatpush3.bf16.msra.mxu1 %v1825_v6  ;;  %1693 = vmatprep.mubr.msk.bf16.mxu1 %vm1834_vm0, %v1833_v5 }
  0x66   :  { %1679 = vmatprep.subr.bf16.mxu1 %v1833_v5 }
  0x67   :  { %1649 = vmatpush3.bf16.msra.mxu0 %v1810_v53 }
  0x68   :  { %1650 = vmatprep.subr.bf16.mxu0 %v1811_v54 }
  0x69   :  { %1680 = vmatpush3.bf16.msra.mxu1 %v1826_v7 }
  0x6a   :  { %1681 = vmatprep.subr.bf16.mxu1 %v1833_v5 }
  0x6b   :  { %1651 = vmatpush3.bf16.msra.mxu0 %v1812_v55 }
  0x6c   :  { %1652 = vmatprep.subr.bf16.mxu0 %v1813_v56 }
  0x6d   :  { %1682 = vmatpush3.bf16.msra.mxu1 %v1827_v8 }
  0x6e   :  { %1683 = vmatprep.subr.bf16.mxu1 %v1833_v5 }
  0x6f   :  { %1653 = vmatpush3.bf16.msra.mxu0 %v1814_v57 }
  0x70   :  { %1654 = vmatprep.subr.bf16.mxu0 %v1815_v58 }
  0x71   :  { %1684 = vmatpush3.bf16.msra.mxu1 %v1828_v9 }
  0x72   :  { %1685 = vmatprep.subr.bf16.mxu1 %v1833_v5 }
  0x73   :  { %1655 = vmatpush3.bf16.msra.mxu0 %v1816_v59  ;;  %v1505_v59 = vld [vmem:[%s2259_s4] ss:$0 sm:$0xff] }
  0x74   :  { %1656 = vmatprep.subr.bf16.mxu0 %v1817_v60 }
  0x75   :  { %1686 = vmatpush3.bf16.msra.mxu1 %v1829_v10 }
  0x76   :  { %1687 = vmatprep.subr.bf16.mxu1 %v1833_v5 }
  0x77   :  { %1657 = vmatpush3.bf16.msra.mxu0 %v1818_v63 }
  0x78   :  { %1658 = vmatprep.subr.bf16.mxu0 %v1819_v0 }
  0x79   :  { %1688 = vmatpush3.bf16.msra.mxu1 %v1830_v11 }
  0x7a   :  { %1689 = vmatprep.subr.bf16.mxu1 %v1833_v5 }
  0x7b   :  { %1659 = vmatpush3.bf16.msra.mxu0 %v1820_v1 }
  0x7c   :  { %1660 = vmatprep.subr.bf16.mxu0 %v1821_v2 }
  0x7d   :  { %1690 = vmatpush3.bf16.msra.mxu1 %v1831_v12 }
  0x7e   :  { %1691 = vmatprep.subr.bf16.mxu1 %v1833_v5 }
  0x7f   :  { %1661 = vmatpush3.bf16.msra.mxu0 %v1822_v3 }
  0x81   :  { %1692 = vmatpush3.bf16.msra.mxu1 %v1832_v13 }
  0x82   :  { %1253 = vmatmul.mubr.bf16.vlgmr.msra.gmra.mxu0 %v1391_v4 }
  0xe2   :  { %v1530_v14 = vpop.f32.mrf.mxu0 }
  0xe4   :  { %v1531_v16 = vpop.f32.mrf.mxu0  ;;  %v1552_v17 = vpop.f32.mrf.mxu1 }
  0xe5   :  { %v1532_v18 = vadd.f32 %v1531_v16, %v1530_v14 }
  0xe6   :  { %v1533_v19 = vpop.f32.mrf.mxu0  ;;  %v1553_v20 = vpop.f32.mrf.mxu1 }
  0xe7   :  { %v1015_v21 = vadd.f32 %v1532_v18, %v1378_v15  ;;  %v1554_v22 = vadd.f32 %v1553_v20, %v1552_v17 }
  0xe8   :  { %v1534_v23 = vpop.f32.mrf.mxu0  ;;  %v1555_v24 = vpop.f32.mrf.mxu1 }
  0xe9   :  { %v1055_v25 = vadd.f32 %v1554_v22, %v1015_v21 }
  0xea   :  { %v1556_v26 = vpop.f32.mrf.mxu1 }
 0x102   :  { %v1574_v27 = vpop.f32.mrf.mxu0 }
 0x104   :  { %v1575_v28 = vpop.f32.mrf.mxu0  ;;  %v1596_v29 = vpop.f32.mrf.mxu1 }
 0x105   :  { %v1576_v43 = vadd.f32 %v1575_v28, %v1574_v27 }
 0x106   :  { %v1577_v30 = vpop.f32.mrf.mxu0  ;;  %v1597_v31 = vpop.f32.mrf.mxu1 }
 0x107   :  { %v1095_v44 = vadd.f32 %v1576_v43, %v1055_v25  ;;  %v1598_v45 = vadd.f32 %v1597_v31, %v1596_v29 }
 0x108   :  { %v1578_v32 = vpop.f32.mrf.mxu0  ;;  %v1599_v33 = vpop.f32.mrf.mxu1 }
 0x109   :  { %v1135_v47 = vadd.f32 %v1598_v45, %v1095_v44 }
 0x10a   :  { %v1600_v34 = vpop.f32.mrf.mxu1 }
 0x122   :  { %v1618_v35 = vpop.f32.mrf.mxu0 }
 0x124   :  { %v1619_v36 = vpop.f32.mrf.mxu0  ;;  %v1640_v37 = vpop.f32.mrf.mxu1 }
 0x125   :  { %v1620_v46 = vadd.f32 %v1619_v36, %v1618_v35 }
 0x126   :  { %v1621_v38 = vpop.f32.mrf.mxu0  ;;  %v1641_v39 = vpop.f32.mrf.mxu1 }
 0x127   :  { %v1175_v48 = vadd.f32 %v1620_v46, %v1135_v47  ;;  %v1642_v49 = vadd.f32 %v1641_v39, %v1640_v37 }
 0x128   :  { %v1622_v40 = vpop.f32.mrf.mxu0  ;;  %v1643_v41 = vpop.f32.mrf.mxu1 }
 0x129   :  { %v1215_v52 = vadd.f32 %v1642_v49, %v1175_v48 }
 0x12a   :  { %v1644_v42 = vpop.f32.mrf.mxu1 }
 0x142   :  { %v1662_v50 = vpop.f32.mrf.mxu0 }
 0x144   :  { %v1663_v51 = vpop.f32.mrf.mxu0 }
 0x145   :  { %v1664_v53 = vadd.f32 %v1663_v51, %v1662_v50 }
 0x146   :  { %v1665_v54 = vpop.f32.mrf.mxu0 }
 0x147   :  { %v1255_v55 = vadd.f32 %v1664_v53, %v1215_v52 }
 0x148   :  { %v1666_v56 = vpop.f32.mrf.mxu0 }
 0x149   :  { %v1260_v57 = vmax.f32 %v1255_v55, 0.0 }
 0x14b   :  { %v1261_v58 = vpack.c.bf16 %v1260_v57, %v1260_v57 }
 0x14d   :  { %1694 = vmatmul.mubr.bf16.vlgmr.msra.gmra.mxu1 %v1261_v58 }
 0x20d   :  { %v1367_v60 = vpop.f32.mrf.mxu1 }
 0x20e   :  { %v1368_v61 = vadd.f32 %v1505_v59, %v1367_v60 }
 0x20f   :  { %v1695_v62 = vpop.f32.mrf.mxu1 }
 0x210   :  { %1373 = vst [vmem:[%s2260_s5] sm:$0xff] %v1368_v61 }
 0x211   :  { %v1370_v63 = vpop.f32.mrf.mxu1 }
 0x213   :  { %v1696_v0 = vpop.f32.mrf.mxu1 }

// kernel: simple_cnn_forward.4
= control target key start
LH: loop header
LB: loop body
LE: loop exit
PB: predicated region body
PF: predicated region fallthrough
CT: control target
= control target key end

     0   :  { %s5027_s4 = inlined_call_operand.vmem [shape: bf16[3,256,512], index: 4, kind: input, shape index: {}]   ;;  %s5028_s1 = inlined_call_operand.vmem [shape: bf16[56,256], index: 1, kind: input, shape index: {}]   ;;  %s5029_s0 = inlined_call_operand.vmem [shape: bf16[56,256], index: 0, kind: input, shape index: {}]   ;;  %s5030_s2 = inlined_call_operand.vmem [shape: bf16[56,256], index: 2, kind: input, shape index: {}]   ;;  %s5031_s3 = inlined_call_operand.vmem [shape: bf16[56,256], index: 3, kind: input, shape index: {}]   ;;  %s5032_s5 = inlined_call_operand.vmem [shape: f32[1,256], index: 5, kind: input, shape index: {}]   ;;  %s5033_s6 = inlined_call_operand.vmem [shape: bf16[56,256], index: 6, kind: output, shape index: {}]  }
   0x1   :  { %v2764_v0 = vld [vmem:[%s5027_s4 + $0x2e4] ss:$16 sps:$4 sm:$0xff]   ;;  %v2766_v1 = vld [vmem:[%s5027_s4 + $0x2ec] ss:$16 sps:$4 sm:$0xff]   ;;  %v2768_v2 = vld [vmem:[%s5027_s4 + $0x2e0] ss:$16 sps:$4 sm:$0xff]  }
   0x2   :  { %595 = vmatprep.subr.bf16.mxu0 %v2764_v0  ;;  %v2769_v3 = vld [vmem:[%s5027_s4 + $0x2e8] ss:$16 sps:$4 sm:$0xff]   ;;  %666 = vmatprep.subr.bf16.mxu1 %v2766_v1  ;;  %v2770_v4 = vld [vmem:[%s5027_s4 + $0x2c4] ss:$16 sps:$4 sm:$0xff]   ;;  %v2772_v5 = vld [vmem:[%s5027_s4 + $0x2cc] ss:$16 sps:$4 sm:$0xff]  }
   0x3   :  { %596 = vmatpush1.bf16.msra.mxu0 %v2768_v2  ;;  %667 = vmatpush1.bf16.msra.mxu1 %v2769_v3  ;;  %v2774_v6 = vld [vmem:[%s5027_s4 + $0x2c0] ss:$16 sps:$4 sm:$0xff]   ;;  %v2775_v7 = vld [vmem:[%s5027_s4 + $0x2c8] ss:$16 sps:$4 sm:$0xff]   ;;  %v2776_v8 = vld [vmem:[%s5027_s4 + $0x2a4] ss:$16 sps:$4 sm:$0xff]  }
   0x4   :  { %597 = vmatprep.subr.bf16.mxu0 %v2770_v4  ;;  %668 = vmatprep.subr.bf16.mxu1 %v2772_v5  ;;  %v2778_v9 = vld [vmem:[%s5027_s4 + $0x2ac] ss:$16 sps:$4 sm:$0xff]   ;;  %v2780_v10 = vld [vmem:[%s5027_s4 + $0x2a0] ss:$16 sps:$4 sm:$0xff]   ;;  %v2781_v11 = vld [vmem:[%s5027_s4 + $0x2a8] ss:$16 sps:$4 sm:$0xff]  }
   0x5   :  { %v2782_v12 = vld [vmem:[%s5027_s4 + $0x284] ss:$16 sps:$4 sm:$0xff]   ;;  %v2784_v13 = vld [vmem:[%s5027_s4 + $0x28c] ss:$16 sps:$4 sm:$0xff]   ;;  %v2786_v14 = vld [vmem:[%s5027_s4 + $0x280] ss:$16 sps:$4 sm:$0xff]  }
   0x6   :  { %v2787_v15 = vld [vmem:[%s5027_s4 + $0x288] ss:$16 sps:$4 sm:$0xff]   ;;  %v2788_v16 = vld [vmem:[%s5027_s4 + $0x264] ss:$16 sps:$4 sm:$0xff]   ;;  %v2790_v17 = vld [vmem:[%s5027_s4 + $0x26c] ss:$16 sps:$4 sm:$0xff]  }
   0x7   :  { %598 = vmatpush1.bf16.msra.mxu0 %v2774_v6  ;;  %669 = vmatpush1.bf16.msra.mxu1 %v2775_v7  ;;  %v2792_v18 = vld [vmem:[%s5027_s4 + $0x260] ss:$16 sps:$4 sm:$0xff]   ;;  %v2793_v19 = vld [vmem:[%s5027_s4 + $0x268] ss:$16 sps:$4 sm:$0xff]   ;;  %v2794_v20 = vld [vmem:[%s5027_s4 + $0x244] ss:$16 sps:$4 sm:$0xff]  }
   0x8   :  { %599 = vmatprep.subr.bf16.mxu0 %v2776_v8  ;;  %670 = vmatprep.subr.bf16.mxu1 %v2778_v9  ;;  %v2796_v21 = vld [vmem:[%s5027_s4 + $0x24c] ss:$16 sps:$4 sm:$0xff]   ;;  %v2798_v22 = vld [vmem:[%s5027_s4 + $0x240] ss:$16 sps:$4 sm:$0xff]   ;;  %v2799_v23 = vld [vmem:[%s5027_s4 + $0x248] ss:$16 sps:$4 sm:$0xff]  }
   0x9   :  { %v2800_v24 = vld [vmem:[%s5027_s4 + $0x224] ss:$16 sps:$4 sm:$0xff]   ;;  %v2802_v25 = vld [vmem:[%s5027_s4 + $0x22c] ss:$16 sps:$4 sm:$0xff]   ;;  %v2804_v26 = vld [vmem:[%s5027_s4 + $0x220] ss:$16 sps:$4 sm:$0xff]  }
   0xa   :  { %v2805_v27 = vld [vmem:[%s5027_s4 + $0x228] ss:$16 sps:$4 sm:$0xff]   ;;  %v2806_v28 = vld [vmem:[%s5027_s4 + $0x204] ss:$16 sps:$4 sm:$0xff]   ;;  %v2808_v29 = vld [vmem:[%s5027_s4 + $0x20c] ss:$16 sps:$4 sm:$0xff]  }
   0xb   :  { %600 = vmatpush1.bf16.msra.mxu0 %v2780_v10  ;;  %671 = vmatpush1.bf16.msra.mxu1 %v2781_v11  ;;  %v2810_v30 = vld [vmem:[%s5027_s4 + $0x200] ss:$16 sps:$4 sm:$0xff]   ;;  %v2811_v31 = vld [vmem:[%s5027_s4 + $0x208] ss:$16 sps:$4 sm:$0xff]   ;;  %v2812_v32 = vld [vmem:[%s5027_s4 + $0x3e4] ss:$16 sps:$4 sm:$0xff]  }
   0xc   :  { %601 = vmatprep.subr.bf16.mxu0 %v2782_v12  ;;  %672 = vmatprep.subr.bf16.mxu1 %v2784_v13  ;;  %v2814_v33 = vld [vmem:[%s5027_s4 + $0x3ec] ss:$16 sps:$4 sm:$0xff]   ;;  %v2816_v34 = vld [vmem:[%s5027_s4 + $0x3e0] ss:$16 sps:$4 sm:$0xff]   ;;  %v2817_v35 = vld [vmem:[%s5027_s4 + $0x3e8] ss:$16 sps:$4 sm:$0xff]  }
   0xd   :  { %v2818_v36 = vld [vmem:[%s5027_s4 + $0x3c4] ss:$16 sps:$4 sm:$0xff]   ;;  %v2820_v37 = vld [vmem:[%s5027_s4 + $0x3cc] ss:$16 sps:$4 sm:$0xff]   ;;  %v2822_v38 = vld [vmem:[%s5027_s4 + $0x3c0] ss:$16 sps:$4 sm:$0xff]  }
   0xe   :  { %v2823_v39 = vld [vmem:[%s5027_s4 + $0x3c8] ss:$16 sps:$4 sm:$0xff]   ;;  %v2824_v40 = vld [vmem:[%s5027_s4 + $0x3a4] ss:$16 sps:$4 sm:$0xff]   ;;  %v2826_v41 = vld [vmem:[%s5027_s4 + $0x3ac] ss:$16 sps:$4 sm:$0xff]  }
   0xf   :  { %602 = vmatpush1.bf16.msra.mxu0 %v2786_v14  ;;  %673 = vmatpush1.bf16.msra.mxu1 %v2787_v15  ;;  %v2828_v42 = vld [vmem:[%s5027_s4 + $0x3a0] ss:$16 sps:$4 sm:$0xff]   ;;  %v2829_v43 = vld [vmem:[%s5027_s4 + $0x3a8] ss:$16 sps:$4 sm:$0xff]   ;;  %v2830_v44 = vld [vmem:[%s5027_s4 + $0x384] ss:$16 sps:$4 sm:$0xff]  }
  0x10   :  { %603 = vmatprep.subr.bf16.mxu0 %v2788_v16  ;;  %674 = vmatprep.subr.bf16.mxu1 %v2790_v17  ;;  %v2832_v45 = vld [vmem:[%s5027_s4 + $0x38c] ss:$16 sps:$4 sm:$0xff]   ;;  %v2834_v46 = vld [vmem:[%s5027_s4 + $0x380] ss:$16 sps:$4 sm:$0xff]   ;;  %v2835_v47 = vld [vmem:[%s5027_s4 + $0x388] ss:$16 sps:$4 sm:$0xff]  }
  0x11   :  { %v2860_v48 = vld [vmem:[%s5028_s1 + $0x4] ss:$8 sps:$4 sm:$0xff]   ;;  %v2840_v51 = vld [vmem:[%s5027_s4 + $0x360] ss:$16 sps:$4 sm:$0xff]   ;;  %v2841_v52 = vld [vmem:[%s5027_s4 + $0x368] ss:$16 sps:$4 sm:$0xff]  }
  0x12   :  { %v2836_v49 = vld [vmem:[%s5027_s4 + $0x364] ss:$16 sps:$4 sm:$0xff]   ;;  %v2838_v50 = vld [vmem:[%s5027_s4 + $0x36c] ss:$16 sps:$4 sm:$0xff]   ;;  %627 = vmatprep.mubr.bf16.mxu0 %v2860_v48  ;;  %698 = vmatprep.mubr.bf16.mxu1 %v2860_v48  ;;  %v2846_v55 = vld [vmem:[%s5027_s4 + $0x340] ss:$16 sps:$4 sm:$0xff]  }
  0x13   :  { %604 = vmatpush1.bf16.msra.mxu0 %v2792_v18  ;;  %675 = vmatpush1.bf16.msra.mxu1 %v2793_v19  ;;  %v2842_v53 = vld [vmem:[%s5027_s4 + $0x344] ss:$16 sps:$4 sm:$0xff]   ;;  %v2844_v54 = vld [vmem:[%s5027_s4 + $0x34c] ss:$16 sps:$4 sm:$0xff]   ;;  %v2847_v56 = vld [vmem:[%s5027_s4 + $0x348] ss:$16 sps:$4 sm:$0xff]  }
  0x14   :  { %605 = vmatprep.subr.bf16.mxu0 %v2794_v20  ;;  %676 = vmatprep.subr.bf16.mxu1 %v2796_v21  ;;  %v2848_v57 = vld [vmem:[%s5027_s4 + $0x324] ss:$16 sps:$4 sm:$0xff]   ;;  %v2850_v58 = vld [vmem:[%s5027_s4 + $0x32c] ss:$16 sps:$4 sm:$0xff]   ;;  %v2852_v59 = vld [vmem:[%s5027_s4 + $0x320] ss:$16 sps:$4 sm:$0xff]  }
  0x15   :  { %v2853_v60 = vld [vmem:[%s5027_s4 + $0x328] ss:$16 sps:$4 sm:$0xff]   ;;  %v2854_v61 = vld [vmem:[%s5027_s4 + $0x304] ss:$16 sps:$4 sm:$0xff]   ;;  %v2856_v62 = vld [vmem:[%s5027_s4 + $0x30c] ss:$16 sps:$4 sm:$0xff]  }
  0x16   :  { %v2858_v63 = vld [vmem:[%s5027_s4 + $0x300] ss:$16 sps:$4 sm:$0xff]   ;;  %v2859_v0 = vld [vmem:[%s5027_s4 + $0x308] ss:$16 sps:$4 sm:$0xff]   ;;  %v2865_v1 = vld [vmem:[%s5027_s4 + $0xe4] ss:$16 sps:$4 sm:$0xff]  }
  0x17   :  { %606 = vmatpush1.bf16.msra.mxu0 %v2798_v22  ;;  %677 = vmatpush1.bf16.msra.mxu1 %v2799_v23  ;;  %v2868_v2 = vld [vmem:[%s5027_s4 + $0xec] ss:$16 sps:$4 sm:$0xff]   ;;  %v2862_v3 = vld [vmem:[%s5028_s1] ss:$8 sps:$4 sm:$0xff]   ;;  %v2871_v6 = vld [vmem:[%s5027_s4 + $0xc4] ss:$16 sps:$4 sm:$0xff]  }
  0x18   :  { %607 = vmatprep.subr.bf16.mxu0 %v2800_v24  ;;  %678 = vmatprep.subr.bf16.mxu1 %v2802_v25  ;;  %v2863_v4 = vld [vmem:[%s5027_s4 + $0xe0] ss:$16 sps:$4 sm:$0xff]   ;;  %v2866_v5 = vld [vmem:[%s5027_s4 + $0xe8] ss:$16 sps:$4 sm:$0xff]   ;;  %v2874_v7 = vld [vmem:[%s5027_s4 + $0xcc] ss:$16 sps:$4 sm:$0xff]  }
  0x19   :  { %v2869_v8 = vld [vmem:[%s5027_s4 + $0xc0] ss:$16 sps:$4 sm:$0xff]   ;;  %v2872_v9 = vld [vmem:[%s5027_s4 + $0xc8] ss:$16 sps:$4 sm:$0xff]   ;;  %v2877_v10 = vld [vmem:[%s5027_s4 + $0xa4] ss:$16 sps:$4 sm:$0xff]  }
  0x1a   :  { %v2917_v11 = vld [vmem:[%s5028_s1 + $0x14] ss:$8 sps:$4 sm:$0xff]   ;;  %v2875_v13 = vld [vmem:[%s5027_s4 + $0xa0] ss:$16 sps:$4 sm:$0xff]   ;;  %v3450_v14 = vld [vmem:[%s5027_s4 + $0xa8] ss:$16 sps:$4 sm:$0xff]  }
  0x1b   :  { %608 = vmatpush1.bf16.msra.mxu0 %v2804_v26  ;;  %679 = vmatpush1.bf16.msra.mxu1 %v2805_v27  ;;  %v3442_v12 = vld [vmem:[%s5027_s4 + $0xac] ss:$16 sps:$4 sm:$0xff]   ;;  %v2919_v15 = vld [vmem:[%s5028_s1 + $0x10] ss:$8 sps:$4 sm:$0xff]   ;;  %v3458_v16 = vld [vmem:[%s5027_s4 + $0x84] ss:$16 sps:$4 sm:$0xff]  }
  0x1c   :  { %609 = vmatprep.subr.bf16.mxu0 %v2806_v28  ;;  %680 = vmatprep.subr.bf16.mxu1 %v2808_v29  ;;  %v3464_v17 = vld [vmem:[%s5027_s4 + $0x8c] ss:$16 sps:$4 sm:$0xff]   ;;  %v3469_v18 = vld [vmem:[%s5027_s4 + $0x80] ss:$16 sps:$4 sm:$0xff]   ;;  %v3474_v19 = vld [vmem:[%s5027_s4 + $0x88] ss:$16 sps:$4 sm:$0xff]  }
  0x1d   :  { %v2932_v20 = vld [vmem:[%s5028_s1 + $0x24] ss:$8 sps:$4 sm:$0xff]   ;;  %v3495_v23 = vld [vmem:[%s5027_s4 + $0x60] ss:$16 sps:$4 sm:$0xff]   ;;  %v3500_v24 = vld [vmem:[%s5027_s4 + $0x68] ss:$16 sps:$4 sm:$0xff]  }
  0x1e   :  { %v3483_v21 = vld [vmem:[%s5027_s4 + $0x64] ss:$16 sps:$4 sm:$0xff]   ;;  %v3490_v22 = vld [vmem:[%s5027_s4 + $0x6c] ss:$16 sps:$4 sm:$0xff]   ;;  %v2934_v25 = vld [vmem:[%s5028_s1 + $0x20] ss:$8 sps:$4 sm:$0xff]  }
  0x1f   :  { %610 = vmatpush1.bf16.msra.mxu0 %v2810_v30  ;;  %681 = vmatpush1.bf16.msra.mxu1 %v2811_v31  ;;  %v3510_v26 = vld [vmem:[%s5027_s4 + $0x44] ss:$16 sps:$4 sm:$0xff]   ;;  %v3517_v27 = vld [vmem:[%s5027_s4 + $0x4c] ss:$16 sps:$4 sm:$0xff]   ;;  %v3527_v30 = vld [vmem:[%s5027_s4 + $0x40] ss:$16 sps:$4 sm:$0xff]  }
  0x20   :  { %611 = vmatprep.subr.bf16.mxu0 %v2812_v32  ;;  %682 = vmatprep.subr.bf16.mxu1 %v2814_v33  ;;  %v230_v28 = vld [vmem:[%s5028_s1 + $0x30] sm:$0xff]  ;;  %v3534_v31 = vld [vmem:[%s5027_s4 + $0x48] ss:$16 sps:$4 sm:$0xff]   ;;  %v3546_v33 = vld [vmem:[%s5027_s4 + $0x2c] ss:$16 sps:$4 sm:$0xff]  }
  0x21   :  { %v3522_v29 = vcombine.high %v230_v28, %v230_v28  ;;  %v3541_v32 = vld [vmem:[%s5027_s4 + $0x24] ss:$16 sps:$4 sm:$0xff]   ;;  %v3632_v48 = vld [vmem:[%s5027_s4 + $0x1c0] ss:$16 sps:$4 sm:$0xff]  }
  0x23   :  { %612 = vmatpush2.bf16.msra.mxu0 %v2816_v34  ;;  %683 = vmatpush2.bf16.msra.mxu1 %v2817_v35  ;;  %5105 = vst [vmem:[#allocation2_spill] sm:$0xff] %v3522_v29  ;;  %v3553_v34 = vld [vmem:[%s5027_s4 + $0x20] ss:$16 sps:$4 sm:$0xff]   ;;  %v3555_v35 = vcombine.low %v230_v28, %v230_v28  ;;  %v3822_v28 = vld [vmem:[%s5027_s4 + $0x4cc] ss:$16 sps:$4 sm:$0xff]  }
  0x24   :  { %613 = vmatprep.subr.bf16.mxu0 %v2818_v36  ;;  %684 = vmatprep.subr.bf16.mxu1 %v2820_v37  ;;  %v3562_v36 = vld [vmem:[%s5027_s4 + $0x28] ss:$16 sps:$4 sm:$0xff]   ;;  %v3569_v37 = vld [vmem:[%s5027_s4 + $0x4] ss:$16 sps:$4 sm:$0xff]   ;;  %5115 = vst [vmem:[#allocation12_spill] sm:$0xff] %v3822_v28 }
  0x25   :  { %5106 = vst [vmem:[#allocation3_spill] sm:$0xff] %v3555_v35 }
  0x27   :  { %614 = vmatpush2.bf16.msra.mxu0 %v2822_v38  ;;  %685 = vmatpush2.bf16.msra.mxu1 %v2823_v39  ;;  %v3574_v38 = vld [vmem:[%s5027_s4 + $0xc] ss:$16 sps:$4 sm:$0xff]  }
  0x28   :  { %615 = vmatprep.subr.bf16.mxu0 %v2824_v40  ;;  %686 = vmatprep.subr.bf16.mxu1 %v2826_v41  ;;  %v2969_v39 = vld [vmem:[%s5029_s0 + $0x4] ss:$8 sps:$4 sm:$0xff]   ;;  %v3582_v40 = vld [vmem:[%s5027_s4] ss:$16 sps:$4 sm:$0xff]   ;;  %v3591_v41 = vld [vmem:[%s5027_s4 + $0x8] ss:$16 sps:$4 sm:$0xff]  }
  0x2b   :  { %616 = vmatpush2.bf16.msra.mxu0 %v2828_v42  ;;  %687 = vmatpush2.bf16.msra.mxu1 %v2829_v43  ;;  %v3598_v42 = vld [vmem:[%s5027_s4 + $0x1e4] ss:$16 sps:$4 sm:$0xff]   ;;  %v3603_v43 = vld [vmem:[%s5027_s4 + $0x1ec] ss:$16 sps:$4 sm:$0xff]  }
  0x2c   :  { %617 = vmatprep.subr.bf16.mxu0 %v2830_v44  ;;  %688 = vmatprep.subr.bf16.mxu1 %v2832_v45  ;;  %v3608_v44 = vld [vmem:[%s5027_s4 + $0x1e0] ss:$16 sps:$4 sm:$0xff]   ;;  %v3615_v45 = vld [vmem:[%s5027_s4 + $0x1e8] ss:$16 sps:$4 sm:$0xff]  }
  0x2f   :  { %618 = vmatpush2.bf16.msra.mxu0 %v2834_v46  ;;  %689 = vmatpush2.bf16.msra.mxu1 %v2835_v47  ;;  %v3622_v46 = vld [vmem:[%s5027_s4 + $0x1c4] ss:$16 sps:$4 sm:$0xff]   ;;  %v3627_v47 = vld [vmem:[%s5027_s4 + $0x1cc] ss:$16 sps:$4 sm:$0xff]  }
  0x30   :  { %619 = vmatprep.subr.bf16.mxu0 %v2836_v49  ;;  %690 = vmatprep.subr.bf16.mxu1 %v2838_v50  ;;  %v3639_v49 = vld [vmem:[%s5027_s4 + $0x1c8] ss:$16 sps:$4 sm:$0xff]   ;;  %v3646_v50 = vld [vmem:[%s5027_s4 + $0x1a4] ss:$16 sps:$4 sm:$0xff]  }
  0x33   :  { %620 = vmatpush2.bf16.msra.mxu0 %v2840_v51  ;;  %691 = vmatpush2.bf16.msra.mxu1 %v2841_v52  ;;  %v3651_v51 = vld [vmem:[%s5027_s4 + $0x1ac] ss:$16 sps:$4 sm:$0xff]   ;;  %v3656_v52 = vld [vmem:[%s5027_s4 + $0x1a0] ss:$16 sps:$4 sm:$0xff]  }
  0x34   :  { %621 = vmatprep.subr.bf16.mxu0 %v2842_v53  ;;  %692 = vmatprep.subr.bf16.mxu1 %v2844_v54  ;;  %v3663_v53 = vld [vmem:[%s5027_s4 + $0x1a8] ss:$16 sps:$4 sm:$0xff]   ;;  %v3670_v54 = vld [vmem:[%s5027_s4 + $0x184] ss:$16 sps:$4 sm:$0xff]  }
  0x37   :  { %622 = vmatpush2.bf16.msra.mxu0 %v2846_v55  ;;  %693 = vmatpush2.bf16.msra.mxu1 %v2847_v56  ;;  %v3675_v55 = vld [vmem:[%s5027_s4 + $0x18c] ss:$16 sps:$4 sm:$0xff]   ;;  %v3680_v56 = vld [vmem:[%s5027_s4 + $0x180] ss:$16 sps:$4 sm:$0xff]  }
  0x38   :  { %623 = vmatprep.subr.bf16.mxu0 %v2848_v57  ;;  %694 = vmatprep.subr.bf16.mxu1 %v2850_v58  ;;  %v3687_v57 = vld [vmem:[%s5027_s4 + $0x188] ss:$16 sps:$4 sm:$0xff]   ;;  %v3694_v58 = vld [vmem:[%s5027_s4 + $0x164] ss:$16 sps:$4 sm:$0xff]  }
  0x3b   :  { %624 = vmatpush2.bf16.msra.mxu0 %v2852_v59  ;;  %695 = vmatpush2.bf16.msra.mxu1 %v2853_v60  ;;  %v3699_v59 = vld [vmem:[%s5027_s4 + $0x16c] ss:$16 sps:$4 sm:$0xff]   ;;  %v3706_v60 = vld [vmem:[%s5027_s4 + $0x160] ss:$16 sps:$4 sm:$0xff]  }
  0x3c   :  { %625 = vmatprep.subr.bf16.mxu0 %v2854_v61  ;;  %696 = vmatprep.subr.bf16.mxu1 %v2856_v62  ;;  %v3711_v61 = vld [vmem:[%s5027_s4 + $0x168] ss:$16 sps:$4 sm:$0xff]   ;;  %v3718_v62 = vld [vmem:[%s5027_s4 + $0x144] ss:$16 sps:$4 sm:$0xff]  }
  0x3f   :  { %626 = vmatpush2.bf16.msra.mxu0 %v2858_v63  ;;  %697 = vmatpush2.bf16.msra.mxu1 %v2859_v0  ;;  %v3723_v63 = vld [vmem:[%s5027_s4 + $0x14c] ss:$16 sps:$4 sm:$0xff]   ;;  %v3730_v0 = vld [vmem:[%s5027_s4 + $0x140] ss:$16 sps:$4 sm:$0xff]  }
  0x40   :  { %1094 = vmatprep.subr.bf16.mxu0 %v2865_v1  ;;  %1165 = vmatprep.subr.bf16.mxu1 %v2868_v2  ;;  %v3735_v1 = vld [vmem:[%s5027_s4 + $0x148] ss:$16 sps:$4 sm:$0xff]   ;;  %v3742_v2 = vld [vmem:[%s5027_s4 + $0x124] ss:$16 sps:$4 sm:$0xff]  }
  0x42   :  { %628 = vmatmul.mubr.bf16.vlgmr.msra.gmra.mxu0 %v2862_v3  ;;  %699 = vmatmul.mubr.bf16.vlgmr.msra.gmra.mxu1 %v2862_v3  ;;  %v3747_v3 = vld [vmem:[%s5027_s4 + $0x12c] ss:$16 sps:$4 sm:$0xff]  }
  0x43   :  { %1095 = vmatpush1.bf16.msra.mxu0 %v2863_v4  ;;  %1166 = vmatpush1.bf16.msra.mxu1 %v2866_v5  ;;  %v3754_v4 = vld [vmem:[%s5027_s4 + $0x120] ss:$16 sps:$4 sm:$0xff]   ;;  %v3759_v5 = vld [vmem:[%s5027_s4 + $0x128] ss:$16 sps:$4 sm:$0xff]  }
  0x44   :  { %1096 = vmatprep.subr.bf16.mxu0 %v2871_v6  ;;  %1167 = vmatprep.subr.bf16.mxu1 %v2874_v7  ;;  %v3766_v6 = vld [vmem:[%s5027_s4 + $0x104] ss:$16 sps:$4 sm:$0xff]   ;;  %v3771_v7 = vld [vmem:[%s5027_s4 + $0x10c] ss:$16 sps:$4 sm:$0xff]  }
  0x45   :  { %637 = vmatprep.mubr.bf16.mxu0 %v2917_v11  ;;  %708 = vmatprep.mubr.bf16.mxu1 %v2917_v11  ;;  %5107 = vst [vmem:[#allocation4_spill] sm:$0xff] %v3771_v7  ;;  %v3795_v11 = vld [vmem:[%s5027_s4 + $0x4ec] ss:$16 sps:$4 sm:$0xff]  }
  0x46   :  { %5111 = vst [vmem:[#allocation8_spill] sm:$0xff] %v3795_v11 }
  0x47   :  { %1097 = vmatpush1.bf16.msra.mxu0 %v2869_v8  ;;  %1168 = vmatpush1.bf16.msra.mxu1 %v2872_v9  ;;  %v3778_v8 = vld [vmem:[%s5027_s4 + $0x100] ss:$16 sps:$4 sm:$0xff]   ;;  %v3783_v9 = vld [vmem:[%s5027_s4 + $0x108] ss:$16 sps:$4 sm:$0xff]  }
  0x48   :  { %1098 = vmatprep.subr.bf16.mxu0 %v2877_v10  ;;  %1169 = vmatprep.subr.bf16.mxu1 %v3442_v12  ;;  %5108 = vst [vmem:[#allocation5_spill] sm:$0xff] %v3778_v8  ;;  %5109 = vst [vmem:[#allocation6_spill] sm:$0xff] %v3783_v9  ;;  %v3790_v10 = vld [vmem:[%s5027_s4 + $0x4e4] ss:$16 sps:$4 sm:$0xff]  }
  0x49   :  { %5110 = vst [vmem:[#allocation7_spill] sm:$0xff] %v3790_v10 }
  0x4a   :  { %638 = vmatmul.mubr.bf16.gmra.mxu0 %v2919_v15  ;;  %709 = vmatmul.mubr.bf16.gmra.mxu1 %v2919_v15  ;;  %v3805_v15 = vld [vmem:[%s5027_s4 + $0x4e0] ss:$16 sps:$4 sm:$0xff]  }
  0x4b   :  { %1099 = vmatpush1.bf16.msra.mxu0 %v2875_v13  ;;  %1170 = vmatpush1.bf16.msra.mxu1 %v3450_v14  ;;  %v2967_v13 = vld [vmem:[%s5029_s0] ss:$8 sps:$4 sm:$0xff]   ;;  %5112 = vst [vmem:[#allocation9_spill] sm:$0xff] %v3805_v15 }
  0x4c   :  { %1100 = vmatprep.subr.bf16.mxu0 %v3458_v16  ;;  %1171 = vmatprep.subr.bf16.mxu1 %v3464_v17 }
  0x4d   :  { %647 = vmatprep.mubr.bf16.mxu0 %v2932_v20  ;;  %718 = vmatprep.mubr.bf16.mxu1 %v2932_v20  ;;  %v3810_v20 = vld [vmem:[%s5027_s4 + $0x4e8] ss:$16 sps:$4 sm:$0xff]  }
  0x4e   :  { %5113 = vst [vmem:[#allocation10_spill] sm:$0xff] %v3810_v20 }
  0x4f   :  { %1101 = vmatpush1.bf16.msra.mxu0 %v3469_v18  ;;  %1172 = vmatpush1.bf16.msra.mxu1 %v3474_v19 }
  0x50   :  { %1102 = vmatprep.subr.bf16.mxu0 %v3483_v21  ;;  %1173 = vmatprep.subr.bf16.mxu1 %v3490_v22 }
  0x52   :  { %648 = vmatmul.mubr.bf16.gmra.mxu0 %v2934_v25  ;;  %719 = vmatmul.mubr.bf16.gmra.mxu1 %v2934_v25  ;;  %v3817_v25 = vld [vmem:[%s5027_s4 + $0x4c4] ss:$16 sps:$4 sm:$0xff]  }
  0x53   :  { %1103 = vmatpush1.bf16.msra.mxu0 %v3495_v23  ;;  %1174 = vmatpush1.bf16.msra.mxu1 %v3500_v24  ;;  %5114 = vst [vmem:[#allocation11_spill] sm:$0xff] %v3817_v25 }
  0x54   :  { %1104 = vmatprep.subr.bf16.mxu0 %v3510_v26  ;;  %1175 = vmatprep.subr.bf16.mxu1 %v3517_v27 }
  0x55   :  { %657 = vmatprep.mubr.bf16.mxu0 %v3522_v29  ;;  %728 = vmatprep.mubr.bf16.mxu1 %v3522_v29  ;;  %v3837_v29 = vld [vmem:[%s5027_s4 + $0x4c8] ss:$16 sps:$4 sm:$0xff]  }
  0x56   :  { %5117 = vst [vmem:[#allocation14_spill] sm:$0xff] %v3837_v29 }
  0x57   :  { %1105 = vmatpush1.bf16.msra.mxu0 %v3527_v30  ;;  %1176 = vmatpush1.bf16.msra.mxu1 %v3534_v31 }
  0x58   :  { %1106 = vmatprep.subr.bf16.mxu0 %v3541_v32  ;;  %1177 = vmatprep.subr.bf16.mxu1 %v3546_v33 }
  0x5a   :  { %658 = vmatmul.mubr.bf16.gmra.mxu0 %v3555_v35  ;;  %729 = vmatmul.mubr.bf16.gmra.mxu1 %v3555_v35  ;;  %v3832_v35 = vld [vmem:[%s5027_s4 + $0x4c0] ss:$16 sps:$4 sm:$0xff]  }
  0x5b   :  { %1107 = vmatpush1.bf16.msra.mxu0 %v3553_v34  ;;  %1178 = vmatpush1.bf16.msra.mxu1 %v3562_v36  ;;  %5116 = vst [vmem:[#allocation13_spill] sm:$0xff] %v3832_v35 }
  0x5c   :  { %1108 = vmatprep.subr.bf16.mxu0 %v3569_v37  ;;  %1179 = vmatprep.subr.bf16.mxu1 %v3574_v38 }
  0x5d   :  { %1126 = vmatprep.mubr.bf16.mxu0 %v2969_v39  ;;  %1197 = vmatprep.mubr.bf16.mxu1 %v2969_v39  ;;  %v2982_v39 = vld [vmem:[%s5029_s0 + $0x14] ss:$8 sps:$4 sm:$0xff]  }
  0x5f   :  { %1109 = vmatpush1.bf16.msra.mxu0 %v3582_v40  ;;  %1180 = vmatpush1.bf16.msra.mxu1 %v3591_v41 }
  0x60   :  { %1110 = vmatprep.subr.bf16.mxu0 %v3598_v42  ;;  %1181 = vmatprep.subr.bf16.mxu1 %v3603_v43 }
  0x63   :  { %1111 = vmatpush2.bf16.msra.mxu0 %v3608_v44  ;;  %1182 = vmatpush2.bf16.msra.mxu1 %v3615_v45 }
  0x64   :  { %1112 = vmatprep.subr.bf16.mxu0 %v3622_v46  ;;  %1183 = vmatprep.subr.bf16.mxu1 %v3627_v47 }
  0x67   :  { %1113 = vmatpush2.bf16.msra.mxu0 %v3632_v48  ;;  %1184 = vmatpush2.bf16.msra.mxu1 %v3639_v49 }
  0x68   :  { %1114 = vmatprep.subr.bf16.mxu0 %v3646_v50  ;;  %1185 = vmatprep.subr.bf16.mxu1 %v3651_v51 }
  0x6b   :  { %1115 = vmatpush2.bf16.msra.mxu0 %v3656_v52  ;;  %1186 = vmatpush2.bf16.msra.mxu1 %v3663_v53 }
  0x6c   :  { %1116 = vmatprep.subr.bf16.mxu0 %v3670_v54  ;;  %1187 = vmatprep.subr.bf16.mxu1 %v3675_v55 }
  0x6f   :  { %1117 = vmatpush2.bf16.msra.mxu0 %v3680_v56  ;;  %1188 = vmatpush2.bf16.msra.mxu1 %v3687_v57 }
  0x70   :  { %1118 = vmatprep.subr.bf16.mxu0 %v3694_v58  ;;  %1189 = vmatprep.subr.bf16.mxu1 %v3699_v59 }
  0x73   :  { %1119 = vmatpush2.bf16.msra.mxu0 %v3706_v60  ;;  %1190 = vmatpush2.bf16.msra.mxu1 %v3711_v61 }
  0x74   :  { %1120 = vmatprep.subr.bf16.mxu0 %v3718_v62  ;;  %1191 = vmatprep.subr.bf16.mxu1 %v3723_v63 }
  0x77   :  { %1121 = vmatpush2.bf16.msra.mxu0 %v3730_v0  ;;  %1192 = vmatpush2.bf16.msra.mxu1 %v3735_v1 }
  0x78   :  { %1122 = vmatprep.subr.bf16.mxu0 %v3742_v2  ;;  %1193 = vmatprep.subr.bf16.mxu1 %v3747_v3 }
  0x7b   :  { %1123 = vmatpush2.bf16.msra.mxu0 %v3754_v4  ;;  %1194 = vmatpush2.bf16.msra.mxu1 %v3759_v5 }
  0x7c   :  { %1124 = vmatprep.subr.bf16.mxu0 %v3766_v6  ;;  %1195 = vmatprep.subr.bf16.mxu1 %v3771_v7 }
  0x7f   :  { %1125 = vmatpush2.bf16.msra.mxu0 %v3778_v8  ;;  %1196 = vmatpush2.bf16.msra.mxu1 %v3783_v9  ;;  %v3113_v9 = vld [vmem:[%s5027_s4 + $0x26c] ss:$16 sps:$4 sm:$0xff]  }
  0x80   :  { %1593 = vmatprep.subr.bf16.mxu0 %v3790_v10  ;;  %1664 = vmatprep.subr.bf16.mxu1 %v3795_v11  ;;  %v3112_v10 = vld [vmem:[%s5027_s4 + $0x264] ss:$16 sps:$4 sm:$0xff]  }
  0x82   :  { %1127 = vmatmul.mubr.bf16.vlgmr.msra.gmra.mxu0 %v2967_v13  ;;  %1198 = vmatmul.mubr.bf16.vlgmr.msra.gmra.mxu1 %v2967_v13  ;;  %v3844_v13 = vld [vmem:[%s5027_s4 + $0x4a4] ss:$16 sps:$4 sm:$0xff]  }
  0x83   :  { %1594 = vmatpush1.bf16.msra.mxu0 %v3805_v15  ;;  %1665 = vmatpush1.bf16.msra.mxu1 %v3810_v20  ;;  %5118 = vst [vmem:[#allocation15_spill] sm:$0xff] %v3844_v13  ;;  %v3849_v20 = vld [vmem:[%s5027_s4 + $0x4ac] ss:$16 sps:$4 sm:$0xff]   ;;  %v2984_v15 = vld [vmem:[%s5029_s0 + $0x10] ss:$8 sps:$4 sm:$0xff]  }
  0x84   :  { %1595 = vmatprep.subr.bf16.mxu0 %v3817_v25  ;;  %1666 = vmatprep.subr.bf16.mxu1 %v3822_v28  ;;  %5119 = vst [vmem:[#allocation16_spill] sm:$0xff] %v3849_v20  ;;  %v3859_v28 = vld [vmem:[%s5027_s4 + $0x4a0] ss:$16 sps:$4 sm:$0xff]   ;;  %v3864_v25 = vld [vmem:[%s5027_s4 + $0x4a8] ss:$16 sps:$4 sm:$0xff]  }
  0x85   :  { %1136 = vmatprep.mubr.bf16.mxu0 %v2982_v39  ;;  %1207 = vmatprep.mubr.bf16.mxu1 %v2982_v39  ;;  %5120 = vst [vmem:[#allocation17_spill] sm:$0xff] %v3859_v28  ;;  %5121 = vst [vmem:[#allocation18_spill] sm:$0xff] %v3864_v25  ;;  %v3871_v39 = vld [vmem:[%s5027_s4 + $0x484] ss:$16 sps:$4 sm:$0xff]  }
  0x86   :  { %5122 = vst [vmem:[#allocation19_spill] sm:$0xff] %v3871_v39 }
  0x87   :  { %1596 = vmatpush1.bf16.msra.mxu0 %v3832_v35  ;;  %1667 = vmatpush1.bf16.msra.mxu1 %v3837_v29  ;;  %v3876_v29 = vld [vmem:[%s5027_s4 + $0x48c] ss:$16 sps:$4 sm:$0xff]  }
  0x88   :  { %1597 = vmatprep.subr.bf16.mxu0 %v3844_v13  ;;  %1668 = vmatprep.subr.bf16.mxu1 %v3849_v20  ;;  %5123 = vst [vmem:[#allocation20_spill] sm:$0xff] %v3876_v29  ;;  %v2997_v35 = vld [vmem:[%s5029_s0 + $0x24] ss:$8 sps:$4 sm:$0xff]   ;;  %v3886_v20 = vld [vmem:[%s5027_s4 + $0x480] ss:$16 sps:$4 sm:$0xff]  }
  0x89   :  { %5124 = vst [vmem:[#allocation21_spill] sm:$0xff] %v3886_v20  ;;  %v3891_v13 = vld [vmem:[%s5027_s4 + $0x488] ss:$16 sps:$4 sm:$0xff]  }
  0x8a   :  { %1137 = vmatmul.mubr.bf16.gmra.mxu0 %v2984_v15  ;;  %1208 = vmatmul.mubr.bf16.gmra.mxu1 %v2984_v15  ;;  %5125 = vst [vmem:[#allocation22_spill] sm:$0xff] %v3891_v13  ;;  %v3898_v15 = vld [vmem:[%s5027_s4 + $0x464] ss:$16 sps:$4 sm:$0xff]  }
  0x8b   :  { %1598 = vmatpush1.bf16.msra.mxu0 %v3859_v28  ;;  %1669 = vmatpush1.bf16.msra.mxu1 %v3864_v25  ;;  %5126 = vst [vmem:[#allocation23_spill] sm:$0xff] %v3898_v15  ;;  %v3903_v25 = vld [vmem:[%s5027_s4 + $0x46c] ss:$16 sps:$4 sm:$0xff]   ;;  %v2999_v28 = vld [vmem:[%s5029_s0 + $0x20] ss:$8 sps:$4 sm:$0xff]  }
  0x8c   :  { %1599 = vmatprep.subr.bf16.mxu0 %v3871_v39  ;;  %1670 = vmatprep.subr.bf16.mxu1 %v3876_v29  ;;  %5127 = vst [vmem:[#allocation24_spill] sm:$0xff] %v3903_v25  ;;  %v223_v29 = vld [vmem:[%s5029_s0 + $0x30] sm:$0xff] }
  0x8d   :  { %1146 = vmatprep.mubr.bf16.mxu0 %v2997_v35  ;;  %1217 = vmatprep.mubr.bf16.mxu1 %v2997_v35  ;;  %v3916_v39 = vld [vmem:[%s5027_s4 + $0x460] ss:$16 sps:$4 sm:$0xff]   ;;  %v3921_v35 = vld [vmem:[%s5027_s4 + $0x468] ss:$16 sps:$4 sm:$0xff]   ;;  %v2605_v11 = vcombine.high %v223_v29, %v223_v29 }
  0x8e   :  { %5128 = vst [vmem:[#allocation25_spill] sm:$0xff] %v3916_v39  ;;  %5129 = vst [vmem:[#allocation26_spill] sm:$0xff] %v3921_v35 }
  0x8f   :  { %1600 = vmatpush1.bf16.msra.mxu0 %v3886_v20  ;;  %1671 = vmatpush1.bf16.msra.mxu1 %v3891_v13  ;;  %v3928_v20 = vld [vmem:[%s5027_s4 + $0x444] ss:$16 sps:$4 sm:$0xff]   ;;  %v3933_v13 = vld [vmem:[%s5027_s4 + $0x44c] ss:$16 sps:$4 sm:$0xff]  }
  0x90   :  { %1601 = vmatprep.subr.bf16.mxu0 %v3898_v15  ;;  %1672 = vmatprep.subr.bf16.mxu1 %v3903_v25  ;;  %5130 = vst [vmem:[#allocation27_spill] sm:$0xff] %v3928_v20  ;;  %5131 = vst [vmem:[#allocation28_spill] sm:$0xff] %v3933_v13  ;;  %v3940_v25 = vld [vmem:[%s5027_s4 + $0x440] ss:$16 sps:$4 sm:$0xff]   ;;  %v3945_v15 = vld [vmem:[%s5027_s4 + $0x448] ss:$16 sps:$4 sm:$0xff]  }
  0x91   :  { %5132 = vst [vmem:[#allocation29_spill] sm:$0xff] %v3940_v25  ;;  %5133 = vst [vmem:[#allocation30_spill] sm:$0xff] %v3945_v15 }
  0x92   :  { %1147 = vmatmul.mubr.bf16.gmra.mxu0 %v2999_v28  ;;  %1218 = vmatmul.mubr.bf16.gmra.mxu1 %v2999_v28  ;;  %v3952_v28 = vld [vmem:[%s5027_s4 + $0x424] ss:$16 sps:$4 sm:$0xff]  }
  0x93   :  { %1602 = vmatpush1.bf16.msra.mxu0 %v3916_v39  ;;  %1673 = vmatpush1.bf16.msra.mxu1 %v3921_v35  ;;  %5134 = vst [vmem:[#allocation31_spill] sm:$0xff] %v3952_v28  ;;  %v3957_v35 = vld [vmem:[%s5027_s4 + $0x42c] ss:$16 sps:$4 sm:$0xff]   ;;  %v2604_v39 = vcombine.low %v223_v29, %v223_v29  ;;  %v3976_v29 = vld [vmem:[%s5027_s4 + $0x404] ss:$16 sps:$4 sm:$0xff]  }
  0x94   :  { %1603 = vmatprep.subr.bf16.mxu0 %v3928_v20  ;;  %1674 = vmatprep.subr.bf16.mxu1 %v3933_v13  ;;  %5135 = vst [vmem:[#allocation32_spill] sm:$0xff] %v3957_v35  ;;  %v3964_v13 = vld [vmem:[%s5027_s4 + $0x420] ss:$16 sps:$4 sm:$0xff]   ;;  %v3969_v20 = vld [vmem:[%s5027_s4 + $0x428] ss:$16 sps:$4 sm:$0xff]   ;;  %5138 = vst [vmem:[#allocation35_spill] sm:$0xff] %v3976_v29 }
  0x95   :  { %1156 = vmatprep.mubr.bf16.mxu0 %v2605_v11  ;;  %1227 = vmatprep.mubr.bf16.mxu1 %v2605_v11  ;;  %5136 = vst [vmem:[#allocation33_spill] sm:$0xff] %v3964_v13  ;;  %5137 = vst [vmem:[#allocation34_spill] sm:$0xff] %v3969_v20  ;;  %v3981_v11 = vld [vmem:[%s5027_s4 + $0x40c] ss:$16 sps:$4 sm:$0xff]  }
  0x96   :  { %5139 = vst [vmem:[#allocation36_spill] sm:$0xff] %v3981_v11 }
  0x97   :  { %1604 = vmatpush1.bf16.msra.mxu0 %v3940_v25  ;;  %1675 = vmatpush1.bf16.msra.mxu1 %v3945_v15  ;;  %v3986_v15 = vld [vmem:[%s5030_s2 + $0x4] ss:$8 sps:$4 sm:$0xff]  }
  0x98   :  { %1605 = vmatprep.subr.bf16.mxu0 %v3952_v28  ;;  %1676 = vmatprep.subr.bf16.mxu1 %v3957_v35  ;;  %v3993_v35 = vld [vmem:[%s5027_s4 + $0x400] ss:$16 sps:$4 sm:$0xff]   ;;  %v3998_v28 = vld [vmem:[%s5027_s4 + $0x408] ss:$16 sps:$4 sm:$0xff]   ;;  %v4250_v25 = vld [vmem:[%s5030_s2 + $0x24] ss:$8 sps:$4 sm:$0xff]  }
  0x99   :  { %5140 = vst [vmem:[#allocation37_spill] sm:$0xff] %v3993_v35  ;;  %5141 = vst [vmem:[#allocation38_spill] sm:$0xff] %v3998_v28 }
  0x9a   :  { %1157 = vmatmul.mubr.bf16.gmra.mxu0 %v2604_v39  ;;  %1228 = vmatmul.mubr.bf16.gmra.mxu1 %v2604_v39  ;;  %v4005_v39 = vld [vmem:[%s5027_s4 + $0x5e4] ss:$16 sps:$4 sm:$0xff]  }
  0x9b   :  { %1606 = vmatpush1.bf16.msra.mxu0 %v3964_v13  ;;  %1677 = vmatpush1.bf16.msra.mxu1 %v3969_v20  ;;  %5142 = vst [vmem:[#allocation39_spill] sm:$0xff] %v4005_v39  ;;  %v4010_v20 = vld [vmem:[%s5027_s4 + $0x5ec] ss:$16 sps:$4 sm:$0xff]  }
  0x9c   :  { %1607 = vmatprep.subr.bf16.mxu0 %v3976_v29  ;;  %1678 = vmatprep.subr.bf16.mxu1 %v3981_v11  ;;  %5143 = vst [vmem:[#allocation40_spill] sm:$0xff] %v4010_v20  ;;  %v4019_v11 = vld [vmem:[%s5027_s4 + $0x5e0] ss:$16 sps:$4 sm:$0xff]   ;;  %v4024_v29 = vld [vmem:[%s5027_s4 + $0x5e8] ss:$16 sps:$4 sm:$0xff]  }
  0x9d   :  { %1625 = vmatprep.mubr.bf16.mxu0 %v3986_v15  ;;  %1696 = vmatprep.mubr.bf16.mxu1 %v3986_v15  ;;  %5144 = vst [vmem:[#allocation41_spill] sm:$0xff] %v4019_v11  ;;  %5145 = vst [vmem:[#allocation42_spill] sm:$0xff] %v4024_v29  ;;  %v3105_v13 = vld [vmem:[%s5027_s4 + $0x2ac] ss:$16 sps:$4 sm:$0xff]  }
  0x9f   :  { %1608 = vmatpush1.bf16.msra.mxu0 %v3993_v35  ;;  %1679 = vmatpush1.bf16.msra.mxu1 %v3998_v28  ;;  %v4031_v35 = vld [vmem:[%s5027_s4 + $0x5c4] ss:$16 sps:$4 sm:$0xff]   ;;  %v4036_v28 = vld [vmem:[%s5027_s4 + $0x5cc] ss:$16 sps:$4 sm:$0xff]  }
  0xa0   :  { %1609 = vmatprep.subr.bf16.mxu0 %v4005_v39  ;;  %1680 = vmatprep.subr.bf16.mxu1 %v4010_v20  ;;  %5146 = vst [vmem:[#allocation43_spill] sm:$0xff] %v4031_v35  ;;  %5147 = vst [vmem:[#allocation44_spill] sm:$0xff] %v4036_v28  ;;  %v4043_v39 = vld [vmem:[%s5027_s4 + $0x5c0] ss:$16 sps:$4 sm:$0xff]   ;;  %v4048_v20 = vld [vmem:[%s5027_s4 + $0x5c8] ss:$16 sps:$4 sm:$0xff]  }
  0xa1   :  { %5148 = vst [vmem:[#allocation45_spill] sm:$0xff] %v4043_v39  ;;  %5149 = vst [vmem:[#allocation46_spill] sm:$0xff] %v4048_v20 }
  0xa3   :  { %1610 = vmatpush2.bf16.msra.mxu0 %v4019_v11  ;;  %1681 = vmatpush2.bf16.msra.mxu1 %v4024_v29  ;;  %v4055_v11 = vld [vmem:[%s5027_s4 + $0x5a4] ss:$16 sps:$4 sm:$0xff]   ;;  %v4060_v29 = vld [vmem:[%s5027_s4 + $0x5ac] ss:$16 sps:$4 sm:$0xff]  }
  0xa4   :  { %1611 = vmatprep.subr.bf16.mxu0 %v4031_v35  ;;  %1682 = vmatprep.subr.bf16.mxu1 %v4036_v28  ;;  %5150 = vst [vmem:[#allocation47_spill] sm:$0xff] %v4055_v11  ;;  %5151 = vst [vmem:[#allocation48_spill] sm:$0xff] %v4060_v29  ;;  %v4067_v35 = vld [vmem:[%s5027_s4 + $0x5a0] ss:$16 sps:$4 sm:$0xff]   ;;  %v4072_v28 = vld [vmem:[%s5027_s4 + $0x5a8] ss:$16 sps:$4 sm:$0xff]  }
  0xa5   :  { %5152 = vst [vmem:[#allocation49_spill] sm:$0xff] %v4067_v35  ;;  %5153 = vst [vmem:[#allocation50_spill] sm:$0xff] %v4072_v28 }
  0xa7   :  { %1612 = vmatpush2.bf16.msra.mxu0 %v4043_v39  ;;  %1683 = vmatpush2.bf16.msra.mxu1 %v4048_v20  ;;  %v4079_v39 = vld [vmem:[%s5027_s4 + $0x584] ss:$16 sps:$4 sm:$0xff]   ;;  %v4084_v20 = vld [vmem:[%s5027_s4 + $0x58c] ss:$16 sps:$4 sm:$0xff]  }
  0xa8   :  { %1613 = vmatprep.subr.bf16.mxu0 %v4055_v11  ;;  %1684 = vmatprep.subr.bf16.mxu1 %v4060_v29  ;;  %5154 = vst [vmem:[#allocation51_spill] sm:$0xff] %v4079_v39  ;;  %5155 = vst [vmem:[#allocation52_spill] sm:$0xff] %v4084_v20  ;;  %v4091_v11 = vld [vmem:[%s5027_s4 + $0x580] ss:$16 sps:$4 sm:$0xff]   ;;  %v4096_v29 = vld [vmem:[%s5027_s4 + $0x588] ss:$16 sps:$4 sm:$0xff]  }
  0xa9   :  { %5156 = vst [vmem:[#allocation53_spill] sm:$0xff] %v4091_v11  ;;  %5157 = vst [vmem:[#allocation54_spill] sm:$0xff] %v4096_v29 }
  0xab   :  { %1614 = vmatpush2.bf16.msra.mxu0 %v4067_v35  ;;  %1685 = vmatpush2.bf16.msra.mxu1 %v4072_v28  ;;  %v4103_v35 = vld [vmem:[%s5027_s4 + $0x564] ss:$16 sps:$4 sm:$0xff]   ;;  %v4108_v28 = vld [vmem:[%s5027_s4 + $0x56c] ss:$16 sps:$4 sm:$0xff]  }
  0xac   :  { %1615 = vmatprep.subr.bf16.mxu0 %v4079_v39  ;;  %1686 = vmatprep.subr.bf16.mxu1 %v4084_v20  ;;  %5158 = vst [vmem:[#allocation55_spill] sm:$0xff] %v4103_v35  ;;  %5159 = vst [vmem:[#allocation56_spill] sm:$0xff] %v4108_v28  ;;  %v4115_v39 = vld [vmem:[%s5027_s4 + $0x560] ss:$16 sps:$4 sm:$0xff]   ;;  %v4120_v20 = vld [vmem:[%s5027_s4 + $0x568] ss:$16 sps:$4 sm:$0xff]  }
  0xad   :  { %5160 = vst [vmem:[#allocation57_spill] sm:$0xff] %v4115_v39  ;;  %5161 = vst [vmem:[#allocation58_spill] sm:$0xff] %v4120_v20 }
  0xaf   :  { %1616 = vmatpush2.bf16.msra.mxu0 %v4091_v11  ;;  %1687 = vmatpush2.bf16.msra.mxu1 %v4096_v29  ;;  %v4127_v11 = vld [vmem:[%s5027_s4 + $0x544] ss:$16 sps:$4 sm:$0xff]   ;;  %v4132_v29 = vld [vmem:[%s5027_s4 + $0x54c] ss:$16 sps:$4 sm:$0xff]  }
  0xb0   :  { %1617 = vmatprep.subr.bf16.mxu0 %v4103_v35  ;;  %1688 = vmatprep.subr.bf16.mxu1 %v4108_v28  ;;  %5162 = vst [vmem:[#allocation59_spill] sm:$0xff] %v4127_v11  ;;  %5163 = vst [vmem:[#allocation60_spill] sm:$0xff] %v4132_v29  ;;  %v4139_v35 = vld [vmem:[%s5027_s4 + $0x540] ss:$16 sps:$4 sm:$0xff]   ;;  %v4144_v28 = vld [vmem:[%s5027_s4 + $0x548] ss:$16 sps:$4 sm:$0xff]  }
  0xb1   :  { %5164 = vst [vmem:[#allocation61_spill] sm:$0xff] %v4139_v35  ;;  %5165 = vst [vmem:[#allocation62_spill] sm:$0xff] %v4144_v28 }
  0xb3   :  { %1618 = vmatpush2.bf16.msra.mxu0 %v4115_v39  ;;  %1689 = vmatpush2.bf16.msra.mxu1 %v4120_v20  ;;  %v4151_v39 = vld [vmem:[%s5027_s4 + $0x524] ss:$16 sps:$4 sm:$0xff]   ;;  %v4156_v20 = vld [vmem:[%s5027_s4 + $0x52c] ss:$16 sps:$4 sm:$0xff]  }
  0xb4   :  { %1619 = vmatprep.subr.bf16.mxu0 %v4127_v11  ;;  %1690 = vmatprep.subr.bf16.mxu1 %v4132_v29  ;;  %5166 = vst [vmem:[#allocation63_spill] sm:$0xff] %v4151_v39  ;;  %5167 = vst [vmem:[#allocation64_spill] sm:$0xff] %v4156_v20  ;;  %v4163_v11 = vld [vmem:[%s5027_s4 + $0x520] ss:$16 sps:$4 sm:$0xff]   ;;  %v4168_v29 = vld [vmem:[%s5027_s4 + $0x528] ss:$16 sps:$4 sm:$0xff]  }
  0xb5   :  { %5168 = vst [vmem:[#allocation65_spill] sm:$0xff] %v4163_v11  ;;  %5169 = vst [vmem:[#allocation66_spill] sm:$0xff] %v4168_v29 }
  0xb7   :  { %1620 = vmatpush2.bf16.msra.mxu0 %v4139_v35  ;;  %1691 = vmatpush2.bf16.msra.mxu1 %v4144_v28  ;;  %v4175_v35 = vld [vmem:[%s5027_s4 + $0x504] ss:$16 sps:$4 sm:$0xff]   ;;  %v4180_v28 = vld [vmem:[%s5027_s4 + $0x50c] ss:$16 sps:$4 sm:$0xff]  }
  0xb8   :  { %1621 = vmatprep.subr.bf16.mxu0 %v4151_v39  ;;  %1692 = vmatprep.subr.bf16.mxu1 %v4156_v20  ;;  %5170 = vst [vmem:[#allocation67_spill] sm:$0xff] %v4175_v35  ;;  %5171 = vst [vmem:[#allocation68_spill] sm:$0xff] %v4180_v28  ;;  %v4187_v39 = vld [vmem:[%s5027_s4 + $0x500] ss:$16 sps:$4 sm:$0xff]   ;;  %v4192_v20 = vld [vmem:[%s5027_s4 + $0x508] ss:$16 sps:$4 sm:$0xff]  }
  0xb9   :  { %5172 = vst [vmem:[#allocation69_spill] sm:$0xff] %v4187_v39  ;;  %5173 = vst [vmem:[#allocation70_spill] sm:$0xff] %v4192_v20 }
  0xbb   :  { %1622 = vmatpush2.bf16.msra.mxu0 %v4163_v11  ;;  %1693 = vmatpush2.bf16.msra.mxu1 %v4168_v29  ;;  %v4199_v11 = vld [vmem:[%s5030_s2] ss:$8 sps:$4 sm:$0xff]   ;;  %v3096_v29 = vld [vmem:[%s5027_s4 + $0x2e4] ss:$16 sps:$4 sm:$0xff]  }
  0xbc   :  { %1623 = vmatprep.subr.bf16.mxu0 %v4175_v35  ;;  %1694 = vmatprep.subr.bf16.mxu1 %v4180_v28  ;;  %v3097_v35 = vld [vmem:[%s5027_s4 + $0x2ec] ss:$16 sps:$4 sm:$0xff]  }
  0xbd   :  { %v4212_v28 = vld [vmem:[%s5030_s2 + $0x14] ss:$8 sps:$4 sm:$0xff]  }
  0xbf   :  { %1624 = vmatpush2.bf16.msra.mxu0 %v4187_v39  ;;  %1695 = vmatpush2.bf16.msra.mxu1 %v4192_v20  ;;  %v3098_v20 = vld [vmem:[%s5027_s4 + $0x2e0] ss:$16 sps:$4 sm:$0xff]   ;;  %v3101_v39 = vld [vmem:[%s5027_s4 + $0x2cc] ss:$16 sps:$4 sm:$0xff]  }
  0xc0   :  { %1770 = vmatprep.subr.bf16.mxu0 %v3096_v29  ;;  %1841 = vmatprep.subr.bf16.mxu1 %v3097_v35  ;;  %v3099_v29 = vld [vmem:[%s5027_s4 + $0x2e8] ss:$16 sps:$4 sm:$0xff]   ;;  %v3100_v35 = vld [vmem:[%s5027_s4 + $0x2c4] ss:$16 sps:$4 sm:$0xff]  }
  0xc2   :  { %1626 = vmatmul.mubr.bf16.vlgmr.msra.gmra.mxu0 %v4199_v11  ;;  %1697 = vmatmul.mubr.bf16.vlgmr.msra.gmra.mxu1 %v4199_v11 }
  0xc3   :  { %1771 = vmatpush1.bf16.msra.mxu0 %v3098_v20  ;;  %1842 = vmatpush1.bf16.msra.mxu1 %v3099_v29  ;;  %v4233_v20 = vld [vmem:[%s5030_s2 + $0x10] ss:$8 sps:$4 sm:$0xff]  }
  0xc4   :  { %1772 = vmatprep.subr.bf16.mxu0 %v3100_v35  ;;  %1843 = vmatprep.subr.bf16.mxu1 %v3101_v39  ;;  %v3102_v29 = vld [vmem:[%s5027_s4 + $0x2c0] ss:$16 sps:$4 sm:$0xff]   ;;  %v3103_v35 = vld [vmem:[%s5027_s4 + $0x2c8] ss:$16 sps:$4 sm:$0xff]   ;;  %v3104_v39 = vld [vmem:[%s5027_s4 + $0x2a4] ss:$16 sps:$4 sm:$0xff]  }
  0xc5   :  { %1635 = vmatprep.mubr.bf16.mxu0 %v4212_v28  ;;  %1706 = vmatprep.mubr.bf16.mxu1 %v4212_v28 }
  0xc7   :  { %1773 = vmatpush1.bf16.msra.mxu0 %v3102_v29  ;;  %1844 = vmatpush1.bf16.msra.mxu1 %v3103_v35  ;;  %v3106_v29 = vld [vmem:[%s5027_s4 + $0x2a0] ss:$16 sps:$4 sm:$0xff]   ;;  %v3107_v35 = vld [vmem:[%s5027_s4 + $0x2a8] ss:$16 sps:$4 sm:$0xff]  }
  0xc8   :  { %1774 = vmatprep.subr.bf16.mxu0 %v3104_v39  ;;  %1845 = vmatprep.subr.bf16.mxu1 %v3105_v13  ;;  %v3108_v13 = vld [vmem:[%s5027_s4 + $0x284] ss:$16 sps:$4 sm:$0xff]   ;;  %v3109_v39 = vld [vmem:[%s5027_s4 + $0x28c] ss:$16 sps:$4 sm:$0xff]  }
  0xca   :  { %1636 = vmatmul.mubr.bf16.gmra.mxu0 %v4233_v20  ;;  %1707 = vmatmul.mubr.bf16.gmra.mxu1 %v4233_v20 }
  0xcb   :  { %1775 = vmatpush1.bf16.msra.mxu0 %v3106_v29  ;;  %1846 = vmatpush1.bf16.msra.mxu1 %v3107_v35  ;;  %v4271_v29 = vld [vmem:[%s5030_s2 + $0x20] ss:$8 sps:$4 sm:$0xff]   ;;  %v237_v35 = vld [vmem:[%s5030_s2 + $0x30] sm:$0xff] }
  0xcc   :  { %1776 = vmatprep.subr.bf16.mxu0 %v3108_v13  ;;  %1847 = vmatprep.subr.bf16.mxu1 %v3109_v39  ;;  %v3110_v13 = vld [vmem:[%s5027_s4 + $0x280] ss:$16 sps:$4 sm:$0xff]   ;;  %v3111_v39 = vld [vmem:[%s5027_s4 + $0x288] ss:$16 sps:$4 sm:$0xff]   ;;  %v4288_v8 = vcombine.high %v237_v35, %v237_v35 }
  0xcd   :  { %1645 = vmatprep.mubr.bf16.mxu0 %v4250_v25  ;;  %1716 = vmatprep.mubr.bf16.mxu1 %v4250_v25 }
  0xcf   :  { %1777 = vmatpush1.bf16.msra.mxu0 %v3110_v13  ;;  %1848 = vmatpush1.bf16.msra.mxu1 %v3111_v39  ;;  %v3114_v13 = vld [vmem:[%s5027_s4 + $0x260] ss:$16 sps:$4 sm:$0xff]   ;;  %v3117_v39 = vld [vmem:[%s5027_s4 + $0x24c] ss:$16 sps:$4 sm:$0xff]  }
  0xd0   :  { %1778 = vmatprep.subr.bf16.mxu0 %v3112_v10  ;;  %1849 = vmatprep.subr.bf16.mxu1 %v3113_v9  ;;  %v3115_v10 = vld [vmem:[%s5027_s4 + $0x268] ss:$16 sps:$4 sm:$0xff]   ;;  %v3116_v9 = vld [vmem:[%s5027_s4 + $0x244] ss:$16 sps:$4 sm:$0xff]  }
  0xd2   :  { %1646 = vmatmul.mubr.bf16.gmra.mxu0 %v4271_v29  ;;  %1717 = vmatmul.mubr.bf16.gmra.mxu1 %v4271_v29 }
  0xd3   :  { %1779 = vmatpush1.bf16.msra.mxu0 %v3114_v13  ;;  %1850 = vmatpush1.bf16.msra.mxu1 %v3115_v10  ;;  %v4306_v13 = vcombine.low %v237_v35, %v237_v35  ;;  %v3118_v10 = vld [vmem:[%s5027_s4 + $0x240] ss:$16 sps:$4 sm:$0xff]   ;;  %v3121_v35 = vld [vmem:[%s5027_s4 + $0x22c] ss:$16 sps:$4 sm:$0xff]  }
  0xd4   :  { %1780 = vmatprep.subr.bf16.mxu0 %v3116_v9  ;;  %1851 = vmatprep.subr.bf16.mxu1 %v3117_v39  ;;  %v3119_v9 = vld [vmem:[%s5027_s4 + $0x248] ss:$16 sps:$4 sm:$0xff]   ;;  %v3120_v39 = vld [vmem:[%s5027_s4 + $0x224] ss:$16 sps:$4 sm:$0xff]  }
  0xd5   :  { %1655 = vmatprep.mubr.bf16.mxu0 %v4288_v8  ;;  %1726 = vmatprep.mubr.bf16.mxu1 %v4288_v8 }
  0xd7   :  { %1781 = vmatpush1.bf16.msra.mxu0 %v3118_v10  ;;  %1852 = vmatpush1.bf16.msra.mxu1 %v3119_v9  ;;  %v3122_v10 = vld [vmem:[%s5027_s4 + $0x220] ss:$16 sps:$4 sm:$0xff]   ;;  %v3123_v9 = vld [vmem:[%s5027_s4 + $0x228] ss:$16 sps:$4 sm:$0xff]  }
  0xd8   :  { %1782 = vmatprep.subr.bf16.mxu0 %v3120_v39  ;;  %1853 = vmatprep.subr.bf16.mxu1 %v3121_v35  ;;  %v3124_v39 = vld [vmem:[%s5027_s4 + $0x204] ss:$16 sps:$4 sm:$0xff]   ;;  %v3125_v35 = vld [vmem:[%s5027_s4 + $0x20c] ss:$16 sps:$4 sm:$0xff]  }
  0xda   :  { %1656 = vmatmul.mubr.bf16.gmra.mxu0 %v4306_v13  ;;  %1727 = vmatmul.mubr.bf16.gmra.mxu1 %v4306_v13 }
  0xdb   :  { %1783 = vmatpush1.bf16.msra.mxu0 %v3122_v10  ;;  %1854 = vmatpush1.bf16.msra.mxu1 %v3123_v9  ;;  %v3126_v10 = vld [vmem:[%s5027_s4 + $0x200] ss:$16 sps:$4 sm:$0xff]   ;;  %v3127_v9 = vld [vmem:[%s5027_s4 + $0x208] ss:$16 sps:$4 sm:$0xff]  }
  0xdc   :  { %1784 = vmatprep.subr.bf16.mxu0 %v3124_v39  ;;  %1855 = vmatprep.subr.bf16.mxu1 %v3125_v35  ;;  %v3128_v39 = vld [vmem:[%s5027_s4 + $0x3e4] ss:$16 sps:$4 sm:$0xff]   ;;  %v3129_v35 = vld [vmem:[%s5027_s4 + $0x3ec] ss:$16 sps:$4 sm:$0xff]  }
  0xdd   :  { %1802 = vmatprep.mubr.bf16.mxu0 %v3986_v15  ;;  %1873 = vmatprep.mubr.bf16.mxu1 %v3986_v15  ;;  %v3130_v15 = vld [vmem:[%s5027_s4 + $0x3e0] ss:$16 sps:$4 sm:$0xff]  }
  0xdf   :  { %1785 = vmatpush1.bf16.msra.mxu0 %v3126_v10  ;;  %1856 = vmatpush1.bf16.msra.mxu1 %v3127_v9  ;;  %v3131_v10 = vld [vmem:[%s5027_s4 + $0x3e8] ss:$16 sps:$4 sm:$0xff]   ;;  %v3132_v9 = vld [vmem:[%s5027_s4 + $0x3c4] ss:$16 sps:$4 sm:$0xff]  }
  0xe0   :  { %1786 = vmatprep.subr.bf16.mxu0 %v3128_v39  ;;  %1857 = vmatprep.subr.bf16.mxu1 %v3129_v35  ;;  %v3133_v39 = vld [vmem:[%s5027_s4 + $0x3cc] ss:$16 sps:$4 sm:$0xff]   ;;  %v3134_v35 = vld [vmem:[%s5027_s4 + $0x3c0] ss:$16 sps:$4 sm:$0xff]  }
  0xe3   :  { %1787 = vmatpush2.bf16.msra.mxu0 %v3130_v15  ;;  %1858 = vmatpush2.bf16.msra.mxu1 %v3131_v10  ;;  %v3135_v15 = vld [vmem:[%s5027_s4 + $0x3c8] ss:$16 sps:$4 sm:$0xff]   ;;  %v3136_v10 = vld [vmem:[%s5027_s4 + $0x3a4] ss:$16 sps:$4 sm:$0xff]  }
  0xe4   :  { %1788 = vmatprep.subr.bf16.mxu0 %v3132_v9  ;;  %1859 = vmatprep.subr.bf16.mxu1 %v3133_v39  ;;  %v3137_v9 = vld [vmem:[%s5027_s4 + $0x3ac] ss:$16 sps:$4 sm:$0xff]   ;;  %v3138_v39 = vld [vmem:[%s5027_s4 + $0x3a0] ss:$16 sps:$4 sm:$0xff]  }
  0xe7   :  { %1789 = vmatpush2.bf16.msra.mxu0 %v3134_v35  ;;  %1860 = vmatpush2.bf16.msra.mxu1 %v3135_v15  ;;  %v3139_v35 = vld [vmem:[%s5027_s4 + $0x3a8] ss:$16 sps:$4 sm:$0xff]   ;;  %v3140_v15 = vld [vmem:[%s5027_s4 + $0x384] ss:$16 sps:$4 sm:$0xff]  }
  0xe8   :  { %1790 = vmatprep.subr.bf16.mxu0 %v3136_v10  ;;  %1861 = vmatprep.subr.bf16.mxu1 %v3137_v9  ;;  %v3141_v10 = vld [vmem:[%s5027_s4 + $0x38c] ss:$16 sps:$4 sm:$0xff]   ;;  %v3142_v9 = vld [vmem:[%s5027_s4 + $0x380] ss:$16 sps:$4 sm:$0xff]  }
  0xeb   :  { %1791 = vmatpush2.bf16.msra.mxu0 %v3138_v39  ;;  %1862 = vmatpush2.bf16.msra.mxu1 %v3139_v35  ;;  %v3143_v39 = vld [vmem:[%s5027_s4 + $0x388] ss:$16 sps:$4 sm:$0xff]   ;;  %v3144_v35 = vld [vmem:[%s5027_s4 + $0x364] ss:$16 sps:$4 sm:$0xff]  }
  0xec   :  { %1792 = vmatprep.subr.bf16.mxu0 %v3140_v15  ;;  %1863 = vmatprep.subr.bf16.mxu1 %v3141_v10  ;;  %v3145_v15 = vld [vmem:[%s5027_s4 + $0x36c] ss:$16 sps:$4 sm:$0xff]   ;;  %v3146_v10 = vld [vmem:[%s5027_s4 + $0x360] ss:$16 sps:$4 sm:$0xff]  }
  0xef   :  { %1793 = vmatpush2.bf16.msra.mxu0 %v3142_v9  ;;  %1864 = vmatpush2.bf16.msra.mxu1 %v3143_v39  ;;  %v3147_v9 = vld [vmem:[%s5027_s4 + $0x368] ss:$16 sps:$4 sm:$0xff]   ;;  %v3148_v39 = vld [vmem:[%s5027_s4 + $0x344] ss:$16 sps:$4 sm:$0xff]  }
  0xf0   :  { %1794 = vmatprep.subr.bf16.mxu0 %v3144_v35  ;;  %1865 = vmatprep.subr.bf16.mxu1 %v3145_v15  ;;  %v3149_v35 = vld [vmem:[%s5027_s4 + $0x34c] ss:$16 sps:$4 sm:$0xff]   ;;  %v3150_v15 = vld [vmem:[%s5027_s4 + $0x340] ss:$16 sps:$4 sm:$0xff]  }
  0xf3   :  { %1795 = vmatpush2.bf16.msra.mxu0 %v3146_v10  ;;  %1866 = vmatpush2.bf16.msra.mxu1 %v3147_v9  ;;  %v3151_v10 = vld [vmem:[%s5027_s4 + $0x348] ss:$16 sps:$4 sm:$0xff]   ;;  %v3152_v9 = vld [vmem:[%s5027_s4 + $0x324] ss:$16 sps:$4 sm:$0xff]  }
  0xf4   :  { %1796 = vmatprep.subr.bf16.mxu0 %v3148_v39  ;;  %1867 = vmatprep.subr.bf16.mxu1 %v3149_v35  ;;  %v3153_v39 = vld [vmem:[%s5027_s4 + $0x32c] ss:$16 sps:$4 sm:$0xff]   ;;  %v3154_v35 = vld [vmem:[%s5027_s4 + $0x320] ss:$16 sps:$4 sm:$0xff]  }
  0xf7   :  { %1797 = vmatpush2.bf16.msra.mxu0 %v3150_v15  ;;  %1868 = vmatpush2.bf16.msra.mxu1 %v3151_v10  ;;  %v3155_v15 = vld [vmem:[%s5027_s4 + $0x328] ss:$16 sps:$4 sm:$0xff]   ;;  %v3156_v10 = vld [vmem:[%s5027_s4 + $0x304] ss:$16 sps:$4 sm:$0xff]  }
  0xf8   :  { %1798 = vmatprep.subr.bf16.mxu0 %v3152_v9  ;;  %1869 = vmatprep.subr.bf16.mxu1 %v3153_v39  ;;  %v3157_v9 = vld [vmem:[%s5027_s4 + $0x30c] ss:$16 sps:$4 sm:$0xff]   ;;  %v3158_v39 = vld [vmem:[%s5027_s4 + $0x300] ss:$16 sps:$4 sm:$0xff]  }
  0xfb   :  { %1799 = vmatpush2.bf16.msra.mxu0 %v3154_v35  ;;  %1870 = vmatpush2.bf16.msra.mxu1 %v3155_v15  ;;  %v3159_v35 = vld [vmem:[%s5027_s4 + $0x308] ss:$16 sps:$4 sm:$0xff]   ;;  %v3160_v15 = vld [vmem:[%s5027_s4 + $0xe4] ss:$16 sps:$4 sm:$0xff]  }
  0xfc   :  { %1800 = vmatprep.subr.bf16.mxu0 %v3156_v10  ;;  %1871 = vmatprep.subr.bf16.mxu1 %v3157_v9  ;;  %v3161_v10 = vld [vmem:[%s5027_s4 + $0xec] ss:$16 sps:$4 sm:$0xff]  }
  0xff   :  { %1801 = vmatpush2.bf16.msra.mxu0 %v3158_v39  ;;  %1872 = vmatpush2.bf16.msra.mxu1 %v3159_v35  ;;  %v3162_v39 = vld [vmem:[%s5027_s4 + $0xe0] ss:$16 sps:$4 sm:$0xff]   ;;  %v3163_v35 = vld [vmem:[%s5027_s4 + $0xe8] ss:$16 sps:$4 sm:$0xff]  }
 0x100   :  { %1912 = vmatprep.subr.bf16.mxu0 %v3160_v15  ;;  %1983 = vmatprep.subr.bf16.mxu1 %v3161_v10 }
 0x102   :  { %v4444_v9 = vpop.f32.mrf.mxu0  ;;  %v4446_v7 = vpop.f32.mrf.mxu1  ;;  %1803 = vmatmul.mubr.bf16.vlgmr.msra.gmra.mxu0 %v4199_v11  ;;  %1874 = vmatmul.mubr.bf16.vlgmr.msra.gmra.mxu1 %v4199_v11  ;;  %v3165_v11 = vld [vmem:[%s5027_s4 + $0xcc] ss:$16 sps:$4 sm:$0xff]  }
 0x103   :  { %5174 = vst [vmem:[#allocation71_spill] sm:$0xff] %v4446_v7  ;;  %1913 = vmatpush1.bf16.msra.mxu0 %v3162_v39  ;;  %1984 = vmatpush1.bf16.msra.mxu1 %v3163_v35  ;;  %v3164_v7 = vld [vmem:[%s5027_s4 + $0xc4] ss:$16 sps:$4 sm:$0xff]  }
 0x104   :  { %v4456_v15 = vpop.f32.mrf.mxu0  ;;  %v4458_v10 = vpop.f32.mrf.mxu1  ;;  %1914 = vmatprep.subr.bf16.mxu0 %v3164_v7  ;;  %1985 = vmatprep.subr.bf16.mxu1 %v3165_v11  ;;  %v3167_v7 = vld [vmem:[%s5027_s4 + $0xc8] ss:$16 sps:$4 sm:$0xff]  }
 0x105   :  { %5175 = vst [vmem:[#allocation72_spill] sm:$0xff] %v4456_v15  ;;  %5176 = vst [vmem:[#allocation73_spill] sm:$0xff] %v4458_v10  ;;  %1812 = vmatprep.mubr.bf16.mxu0 %v4212_v28  ;;  %1883 = vmatprep.mubr.bf16.mxu1 %v4212_v28  ;;  %v3166_v10 = vld [vmem:[%s5027_s4 + $0xc0] ss:$16 sps:$4 sm:$0xff]   ;;  %v3168_v28 = vld [vmem:[%s5027_s4 + $0xa4] ss:$16 sps:$4 sm:$0xff]  }
 0x106   :  { %v4468_v39 = vpop.f32.mrf.mxu0  ;;  %v4470_v35 = vpop.f32.mrf.mxu1 }
 0x107   :  { %5177 = vst [vmem:[#allocation74_spill] sm:$0xff] %v4468_v39  ;;  %5178 = vst [vmem:[#allocation75_spill] sm:$0xff] %v4470_v35  ;;  %1915 = vmatpush1.bf16.msra.mxu0 %v3166_v10  ;;  %1986 = vmatpush1.bf16.msra.mxu1 %v3167_v7  ;;  %v3169_v10 = vld [vmem:[%s5027_s4 + $0xa0] ss:$16 sps:$4 sm:$0xff]  }
 0x108   :  { %v4478_v15 = vpop.f32.mrf.mxu0  ;;  %v4480_v11 = vpop.f32.mrf.mxu1  ;;  %1916 = vmatprep.subr.bf16.mxu0 %v3168_v28  ;;  %1987 = vmatprep.subr.bf16.mxu1 %v3442_v12 }
 0x10a   :  { %v4486_v35 = vpop.f32.mrf.mxu0  ;;  %v4488_v39 = vpop.f32.mrf.mxu1  ;;  %1813 = vmatmul.mubr.bf16.gmra.mxu0 %v4233_v20  ;;  %1884 = vmatmul.mubr.bf16.gmra.mxu1 %v4233_v20 }
 0x10b   :  { %1917 = vmatpush1.bf16.msra.mxu0 %v3169_v10  ;;  %1988 = vmatpush1.bf16.msra.mxu1 %v3450_v14 }
 0x10c   :  { %1918 = vmatprep.subr.bf16.mxu0 %v3458_v16  ;;  %1989 = vmatprep.subr.bf16.mxu1 %v3464_v17  ;;  %v4498_v12 = vpop.f32.mrf.mxu0  ;;  %v4500_v7 = vpop.f32.mrf.mxu1 }
 0x10d   :  { %1822 = vmatprep.mubr.bf16.mxu0 %v4250_v25  ;;  %1893 = vmatprep.mubr.bf16.mxu1 %v4250_v25  ;;  %v5196_v25 = vld [vmem:[#allocation16_spill] sm:$0xff] }
 0x10e   :  { %v4504_v20 = vpop.f32.mrf.mxu0  ;;  %v4506_v28 = vpop.f32.mrf.mxu1 }
 0x10f   :  { %1919 = vmatpush1.bf16.msra.mxu0 %v3469_v18  ;;  %1990 = vmatpush1.bf16.msra.mxu1 %v3474_v19 }
 0x110   :  { %1920 = vmatprep.subr.bf16.mxu0 %v3483_v21  ;;  %1991 = vmatprep.subr.bf16.mxu1 %v3490_v22  ;;  %v4512_v14 = vpop.f32.mrf.mxu0  ;;  %v4514_v16 = vpop.f32.mrf.mxu1 }
 0x112   :  { %v4516_v17 = vpop.f32.mrf.mxu0  ;;  %v4518_v10 = vpop.f32.mrf.mxu1  ;;  %1823 = vmatmul.mubr.bf16.gmra.mxu0 %v4271_v29  ;;  %1894 = vmatmul.mubr.bf16.gmra.mxu1 %v4271_v29 }
 0x113   :  { %1921 = vmatpush1.bf16.msra.mxu0 %v3495_v23  ;;  %1992 = vmatpush1.bf16.msra.mxu1 %v3500_v24 }
 0x114   :  { %1922 = vmatprep.subr.bf16.mxu0 %v3510_v26  ;;  %1993 = vmatprep.subr.bf16.mxu1 %v3517_v27  ;;  %v4526_v18 = vpop.f32.mrf.mxu0  ;;  %v4528_v19 = vpop.f32.mrf.mxu1 }
 0x115   :  { %1832 = vmatprep.mubr.bf16.mxu0 %v4288_v8  ;;  %1903 = vmatprep.mubr.bf16.mxu1 %v4288_v8 }
 0x116   :  { %v4532_v21 = vpop.f32.mrf.mxu0  ;;  %v4534_v22 = vpop.f32.mrf.mxu1 }
 0x117   :  { %1923 = vmatpush1.bf16.msra.mxu0 %v3527_v30  ;;  %1994 = vmatpush1.bf16.msra.mxu1 %v3534_v31 }
 0x118   :  { %1924 = vmatprep.subr.bf16.mxu0 %v3541_v32  ;;  %1995 = vmatprep.subr.bf16.mxu1 %v3546_v33  ;;  %v4540_v23 = vpop.f32.mrf.mxu0  ;;  %v4542_v24 = vpop.f32.mrf.mxu1  ;;  %v3170_v32 = vld [vmem:[%s5028_s1 + $0x4] ss:$8 sps:$4 sm:$0xff]  }
 0x11a   :  { %v4544_v26 = vpop.f32.mrf.mxu0  ;;  %v4546_v27 = vpop.f32.mrf.mxu1  ;;  %1833 = vmatmul.mubr.bf16.gmra.mxu0 %v4306_v13  ;;  %1904 = vmatmul.mubr.bf16.gmra.mxu1 %v4306_v13 }
 0x11b   :  { %1925 = vmatpush1.bf16.msra.mxu0 %v3553_v34  ;;  %1996 = vmatpush1.bf16.msra.mxu1 %v3562_v36 }
 0x11c   :  { %1926 = vmatprep.subr.bf16.mxu0 %v3569_v37  ;;  %1997 = vmatprep.subr.bf16.mxu1 %v3574_v38  ;;  %v4554_v30 = vpop.f32.mrf.mxu0  ;;  %v4556_v31 = vpop.f32.mrf.mxu1  ;;  %v5179_v37 = vld [vmem:[#allocation4_spill] sm:$0xff]  ;;  %v5180_v38 = vld [vmem:[#allocation5_spill] sm:$0xff] }
 0x11d   :  { %1944 = vmatprep.mubr.bf16.mxu0 %v3170_v32  ;;  %2015 = vmatprep.mubr.bf16.mxu1 %v3170_v32 }
 0x11e   :  { %v663_v33 = vpop.f32.mrf.mxu0  ;;  %v734_v8 = vpop.f32.mrf.mxu1 }
 0x11f   :  { %1927 = vmatpush1.bf16.msra.mxu0 %v3582_v40  ;;  %1998 = vmatpush1.bf16.msra.mxu1 %v3591_v41  ;;  %v5181_v40 = vld [vmem:[#allocation6_spill] sm:$0xff]  ;;  %v5182_v41 = vld [vmem:[#allocation7_spill] sm:$0xff]  ;;  %v3173_v33 = vld [vmem:[%s5028_s1 + $0x10] ss:$8 sps:$4 sm:$0xff]  }
 0x120   :  { %1928 = vmatprep.subr.bf16.mxu0 %v3598_v42  ;;  %1999 = vmatprep.subr.bf16.mxu1 %v3603_v43  ;;  %v664_v34 = vpop.f32.mrf.mxu0  ;;  %v735_v36 = vpop.f32.mrf.mxu1  ;;  %v5183_v42 = vld [vmem:[#allocation8_spill] sm:$0xff] }
 0x121   :  { %v5197_v36 = vld [vmem:[#allocation17_spill] sm:$0xff] }
 0x123   :  { %1929 = vmatpush2.bf16.msra.mxu0 %v3608_v44  ;;  %2000 = vmatpush2.bf16.msra.mxu1 %v3615_v45  ;;  %v3171_v45 = vld [vmem:[%s5028_s1] ss:$8 sps:$4 sm:$0xff]  }
 0x124   :  { %1930 = vmatprep.subr.bf16.mxu0 %v3622_v46  ;;  %2001 = vmatprep.subr.bf16.mxu1 %v3627_v47  ;;  %v5184_v47 = vld [vmem:[#allocation71_spill] sm:$0xff] }
 0x127   :  { %1931 = vmatpush2.bf16.msra.mxu0 %v3632_v48  ;;  %2002 = vmatpush2.bf16.msra.mxu1 %v3639_v49  ;;  %v5185_v49 = vld [vmem:[#allocation9_spill] sm:$0xff] }
 0x128   :  { %1932 = vmatprep.subr.bf16.mxu0 %v3646_v50  ;;  %2003 = vmatprep.subr.bf16.mxu1 %v3651_v51  ;;  %v5186_v50 = vld [vmem:[#allocation10_spill] sm:$0xff] }
 0x12b   :  { %1933 = vmatpush2.bf16.msra.mxu0 %v3656_v52  ;;  %2004 = vmatpush2.bf16.msra.mxu1 %v3663_v53  ;;  %v5187_v53 = vld [vmem:[#allocation11_spill] sm:$0xff] }
 0x12c   :  { %1934 = vmatprep.subr.bf16.mxu0 %v3670_v54  ;;  %2005 = vmatprep.subr.bf16.mxu1 %v3675_v55  ;;  %v5188_v54 = vld [vmem:[#allocation12_spill] sm:$0xff] }
 0x12d   :  { %v5189_v55 = vld [vmem:[#allocation72_spill] sm:$0xff] }
 0x12f   :  { %1935 = vmatpush2.bf16.msra.mxu0 %v3680_v56  ;;  %2006 = vmatpush2.bf16.msra.mxu1 %v3687_v57  ;;  %v5190_v57 = vld [vmem:[#allocation73_spill] sm:$0xff] }
 0x130   :  { %1936 = vmatprep.subr.bf16.mxu0 %v3694_v58  ;;  %2007 = vmatprep.subr.bf16.mxu1 %v3699_v59  ;;  %v3172_v59 = vld [vmem:[%s5028_s1 + $0x14] ss:$8 sps:$4 sm:$0xff]  }
 0x133   :  { %1937 = vmatpush2.bf16.msra.mxu0 %v3706_v60  ;;  %2008 = vmatpush2.bf16.msra.mxu1 %v3711_v61 }
 0x134   :  { %1938 = vmatprep.subr.bf16.mxu0 %v3718_v62  ;;  %2009 = vmatprep.subr.bf16.mxu1 %v3723_v63  ;;  %v5191_v62 = vld [vmem:[#allocation74_spill] sm:$0xff] }
 0x137   :  { %1939 = vmatpush2.bf16.msra.mxu0 %v3730_v0  ;;  %2010 = vmatpush2.bf16.msra.mxu1 %v3735_v1  ;;  %v5192_v0 = vld [vmem:[#allocation75_spill] sm:$0xff] }
 0x138   :  { %1940 = vmatprep.subr.bf16.mxu0 %v3742_v2  ;;  %2011 = vmatprep.subr.bf16.mxu1 %v3747_v3  ;;  %v5193_v2 = vld [vmem:[#allocation13_spill] sm:$0xff]  ;;  %v5194_v3 = vld [vmem:[#allocation14_spill] sm:$0xff] }
 0x13b   :  { %1941 = vmatpush2.bf16.msra.mxu0 %v3754_v4  ;;  %2012 = vmatpush2.bf16.msra.mxu1 %v3759_v5 }
 0x13c   :  { %1942 = vmatprep.subr.bf16.mxu0 %v3766_v6  ;;  %2013 = vmatprep.subr.bf16.mxu1 %v5179_v37  ;;  %v5195_v6 = vld [vmem:[#allocation15_spill] sm:$0xff] }
 0x13f   :  { %1943 = vmatpush2.bf16.msra.mxu0 %v5180_v38  ;;  %2014 = vmatpush2.bf16.msra.mxu1 %v5181_v40  ;;  %v5199_v38 = vld [vmem:[#allocation19_spill] sm:$0xff]  ;;  %v5200_v40 = vld [vmem:[#allocation20_spill] sm:$0xff] }
 0x140   :  { %2091 = vmatprep.subr.bf16.mxu0 %v5182_v41  ;;  %2162 = vmatprep.subr.bf16.mxu1 %v5183_v42 }
 0x142   :  { %v1128_v43 = vpop.f32.mrf.mxu0  ;;  %v1199_v44 = vpop.f32.mrf.mxu1  ;;  %1945 = vmatmul.mubr.bf16.vlgmr.msra.gmra.mxu0 %v3171_v45  ;;  %2016 = vmatmul.mubr.bf16.vlgmr.msra.gmra.mxu1 %v3171_v45 }
 0x143   :  { %v4601_v46 = vadd.f32 %v1128_v43, %v4444_v9  ;;  %v4604_v48 = vadd.f32 %v1199_v44, %v5184_v47  ;;  %2092 = vmatpush1.bf16.msra.mxu0 %v5185_v49  ;;  %2163 = vmatpush1.bf16.msra.mxu1 %v5186_v50  ;;  %v5201_v47 = vld [vmem:[#allocation21_spill] sm:$0xff]  ;;  %v5203_v50 = vld [vmem:[#allocation23_spill] sm:$0xff] }
 0x144   :  { %v1130_v51 = vpop.f32.mrf.mxu0  ;;  %v1201_v52 = vpop.f32.mrf.mxu1  ;;  %2093 = vmatprep.subr.bf16.mxu0 %v5187_v53  ;;  %2164 = vmatprep.subr.bf16.mxu1 %v5188_v54 }
 0x145   :  { %v4611_v56 = vadd.f32 %v1130_v51, %v5189_v55  ;;  %v4614_v58 = vadd.f32 %v1201_v52, %v5190_v57  ;;  %1954 = vmatprep.mubr.bf16.mxu0 %v3172_v59  ;;  %2025 = vmatprep.mubr.bf16.mxu1 %v3172_v59  ;;  %v5204_v51 = vld [vmem:[#allocation24_spill] sm:$0xff]  ;;  %v5205_v59 = vld [vmem:[#allocation25_spill] sm:$0xff] }
 0x146   :  { %v1132_v60 = vpop.f32.mrf.mxu0  ;;  %v1203_v61 = vpop.f32.mrf.mxu1 }
 0x147   :  { %v4620_v63 = vadd.f32 %v1132_v60, %v5191_v62  ;;  %v4623_v1 = vadd.f32 %v1203_v61, %v5192_v0  ;;  %2094 = vmatpush1.bf16.msra.mxu0 %v5193_v2  ;;  %2165 = vmatpush1.bf16.msra.mxu1 %v5194_v3  ;;  %v5207_v61 = vld [vmem:[#allocation27_spill] sm:$0xff]  ;;  %v5208_v62 = vld [vmem:[#allocation28_spill] sm:$0xff] }
 0x148   :  { %v1134_v4 = vpop.f32.mrf.mxu0  ;;  %v1205_v5 = vpop.f32.mrf.mxu1  ;;  %2095 = vmatprep.subr.bf16.mxu0 %v5195_v6  ;;  %2166 = vmatprep.subr.bf16.mxu1 %v5196_v25  ;;  %v5210_v6 = vld [vmem:[#allocation29_spill] sm:$0xff]  ;;  %v5211_v25 = vld [vmem:[#allocation30_spill] sm:$0xff] }
 0x149   :  { %v4630_v29 = vadd.f32 %v1134_v4, %v4478_v15  ;;  %v4633_v13 = vadd.f32 %v1205_v5, %v4480_v11  ;;  %v5198_v15 = vld [vmem:[#allocation18_spill] sm:$0xff] }
 0x14a   :  { %v1138_v9 = vpop.f32.mrf.mxu0  ;;  %v1209_v32 = vpop.f32.mrf.mxu1  ;;  %1955 = vmatmul.mubr.bf16.gmra.mxu0 %v3173_v33  ;;  %2026 = vmatmul.mubr.bf16.gmra.mxu1 %v3173_v33 }
 0x14b   :  { %v4639_v8 = vadd.f32 %v1138_v9, %v4486_v35  ;;  %v4642_v34 = vadd.f32 %v1209_v32, %v4488_v39  ;;  %2096 = vmatpush1.bf16.msra.mxu0 %v5197_v36  ;;  %2167 = vmatpush1.bf16.msra.mxu1 %v5198_v15  ;;  %v3174_v39 = vld [vmem:[%s5028_s1 + $0x24] ss:$8 sps:$4 sm:$0xff]   ;;  %v5213_v32 = vld [vmem:[#allocation32_spill] sm:$0xff] }
 0x14c   :  { %v1140_v11 = vpop.f32.mrf.mxu0  ;;  %v1211_v37 = vpop.f32.mrf.mxu1  ;;  %2097 = vmatprep.subr.bf16.mxu0 %v5199_v38  ;;  %2168 = vmatprep.subr.bf16.mxu1 %v5200_v40 }
 0x14d   :  { %v4649_v41 = vadd.f32 %v1140_v11, %v4498_v12  ;;  %v4652_v42 = vadd.f32 %v1211_v37, %v4500_v7  ;;  %1964 = vmatprep.mubr.bf16.mxu0 %v3174_v39  ;;  %2035 = vmatprep.mubr.bf16.mxu1 %v3174_v39  ;;  %v5202_v12 = vld [vmem:[#allocation22_spill] sm:$0xff]  ;;  %v5214_v11 = vld [vmem:[#allocation3_spill] sm:$0xff] }
 0x14e   :  { %v1142_v35 = vpop.f32.mrf.mxu0  ;;  %v1213_v43 = vpop.f32.mrf.mxu1 }
 0x14f   :  { %v4658_v44 = vadd.f32 %v1142_v35, %v4504_v20  ;;  %v4661_v45 = vadd.f32 %v1213_v43, %v4506_v28  ;;  %2098 = vmatpush1.bf16.msra.mxu0 %v5201_v47  ;;  %2169 = vmatpush1.bf16.msra.mxu1 %v5202_v12  ;;  %v3175_v28 = vld [vmem:[%s5028_s1 + $0x20] ss:$8 sps:$4 sm:$0xff]   ;;  %v5218_v43 = vld [vmem:[#allocation36_spill] sm:$0xff] }
 0x150   :  { %v1144_v7 = vpop.f32.mrf.mxu0  ;;  %v1215_v49 = vpop.f32.mrf.mxu1  ;;  %2099 = vmatprep.subr.bf16.mxu0 %v5203_v50  ;;  %2170 = vmatprep.subr.bf16.mxu1 %v5204_v51  ;;  %v5217_v35 = vld [vmem:[#allocation35_spill] sm:$0xff]  ;;  %v5222_v51 = vld [vmem:[#allocation40_spill] sm:$0xff] }
 0x151   :  { %v4668_v52 = vadd.f32 %v1144_v7, %v4512_v14  ;;  %v4671_v53 = vadd.f32 %v1215_v49, %v4514_v16  ;;  %v5206_v14 = vld [vmem:[#allocation26_spill] sm:$0xff]  ;;  %v5219_v7 = vld [vmem:[#allocation37_spill] sm:$0xff]  ;;  %v5221_v50 = vld [vmem:[#allocation39_spill] sm:$0xff] }
 0x152   :  { %v1148_v20 = vpop.f32.mrf.mxu0  ;;  %v1219_v54 = vpop.f32.mrf.mxu1  ;;  %1965 = vmatmul.mubr.bf16.gmra.mxu0 %v3175_v28  ;;  %2036 = vmatmul.mubr.bf16.gmra.mxu1 %v3175_v28  ;;  %v5220_v49 = vld [vmem:[#allocation38_spill] sm:$0xff]  ;;  %v5223_v28 = vld [vmem:[#allocation41_spill] sm:$0xff] }
 0x153   :  { %v4677_v55 = vadd.f32 %v1148_v20, %v4516_v17  ;;  %v4680_v57 = vadd.f32 %v1219_v54, %v4518_v10  ;;  %2100 = vmatpush1.bf16.msra.mxu0 %v5205_v59  ;;  %2171 = vmatpush1.bf16.msra.mxu1 %v5206_v14  ;;  %v5209_v17 = vld [vmem:[#allocation2_spill] sm:$0xff]  ;;  %v5226_v59 = vld [vmem:[#allocation44_spill] sm:$0xff]  ;;  %v5227_v14 = vld [vmem:[#allocation45_spill] sm:$0xff] }
 0x154   :  { %v1150_v16 = vpop.f32.mrf.mxu0  ;;  %v1221_v60 = vpop.f32.mrf.mxu1  ;;  %2101 = vmatprep.subr.bf16.mxu0 %v5207_v61  ;;  %2172 = vmatprep.subr.bf16.mxu1 %v5208_v62  ;;  %v5230_v61 = vld [vmem:[#allocation48_spill] sm:$0xff]  ;;  %v5231_v62 = vld [vmem:[#allocation49_spill] sm:$0xff] }
 0x155   :  { %v4687_v0 = vadd.f32 %v1150_v16, %v4526_v18  ;;  %v4690_v2 = vadd.f32 %v1221_v60, %v4528_v19  ;;  %1974 = vmatprep.mubr.bf16.mxu0 %v5209_v17  ;;  %2045 = vmatprep.mubr.bf16.mxu1 %v5209_v17  ;;  %v5212_v19 = vld [vmem:[#allocation31_spill] sm:$0xff]  ;;  %v5228_v16 = vld [vmem:[#allocation46_spill] sm:$0xff] }
 0x156   :  { %v1152_v10 = vpop.f32.mrf.mxu0  ;;  %v1223_v3 = vpop.f32.mrf.mxu1  ;;  %v5229_v60 = vld [vmem:[#allocation47_spill] sm:$0xff]  ;;  %v5232_v17 = vld [vmem:[#allocation50_spill] sm:$0xff] }
 0x157   :  { %v4695_v4 = vadd.f32 %v1152_v10, %v4532_v21  ;;  %v4698_v5 = vadd.f32 %v1223_v3, %v4534_v22  ;;  %2102 = vmatpush1.bf16.msra.mxu0 %v5210_v6  ;;  %2173 = vmatpush1.bf16.msra.mxu1 %v5211_v25  ;;  %v3087_v21 = vld [vmem:[%s5031_s3 + $0x4] ss:$8 sps:$4 sm:$0xff]   ;;  %v5234_v3 = vld [vmem:[#allocation52_spill] sm:$0xff]  ;;  %v5235_v6 = vld [vmem:[#allocation53_spill] sm:$0xff] }
 0x158   :  { %v1154_v18 = vpop.f32.mrf.mxu0  ;;  %v1225_v9 = vpop.f32.mrf.mxu1  ;;  %2103 = vmatprep.subr.bf16.mxu0 %v5212_v19  ;;  %2174 = vmatprep.subr.bf16.mxu1 %v5213_v32  ;;  %v5233_v10 = vld [vmem:[#allocation51_spill] sm:$0xff]  ;;  %v5236_v25 = vld [vmem:[#allocation54_spill] sm:$0xff]  ;;  %v5239_v19 = vld [vmem:[#allocation57_spill] sm:$0xff] }
 0x159   :  { %v4705_v33 = vadd.f32 %v1154_v18, %v4540_v23  ;;  %v4708_v36 = vadd.f32 %v1225_v9, %v4542_v24  ;;  %v5215_v23 = vld [vmem:[#allocation33_spill] sm:$0xff]  ;;  %v5216_v24 = vld [vmem:[#allocation34_spill] sm:$0xff]  ;;  %v5237_v18 = vld [vmem:[#allocation55_spill] sm:$0xff] }
 0x15a   :  { %v1158_v22 = vpop.f32.mrf.mxu0  ;;  %v1229_v15 = vpop.f32.mrf.mxu1  ;;  %1975 = vmatmul.mubr.bf16.gmra.mxu0 %v5214_v11  ;;  %2046 = vmatmul.mubr.bf16.gmra.mxu1 %v5214_v11  ;;  %v5238_v9 = vld [vmem:[#allocation56_spill] sm:$0xff]  ;;  %v5240_v32 = vld [vmem:[#allocation58_spill] sm:$0xff] }
 0x15b   :  { %v4716_v37 = vadd.f32 %v1158_v22, %v4544_v26  ;;  %v4719_v38 = vadd.f32 %v1229_v15, %v4546_v27  ;;  %2104 = vmatpush1.bf16.msra.mxu0 %v5215_v23  ;;  %2175 = vmatpush1.bf16.msra.mxu1 %v5216_v24  ;;  %v5242_v22 = vld [vmem:[#allocation60_spill] sm:$0xff]  ;;  %v5243_v15 = vld [vmem:[#allocation61_spill] sm:$0xff]  ;;  %v5244_v11 = vld [vmem:[#allocation62_spill] sm:$0xff] }
 0x15c   :  { %v1160_v40 = vpop.f32.mrf.mxu0  ;;  %v1231_v39 = vpop.f32.mrf.mxu1  ;;  %2105 = vmatprep.subr.bf16.mxu0 %v5217_v35  ;;  %2176 = vmatprep.subr.bf16.mxu1 %v5218_v43  ;;  %v5245_v23 = vld [vmem:[#allocation63_spill] sm:$0xff]  ;;  %v5246_v24 = vld [vmem:[#allocation64_spill] sm:$0xff] }
 0x15d   :  { %v4726_v47 = vadd.f32 %v1160_v40, %v4554_v30  ;;  %v4729_v12 = vadd.f32 %v1231_v39, %v4556_v31  ;;  %2123 = vmatprep.mubr.bf16.mxu0 %v3087_v21  ;;  %2194 = vmatprep.mubr.bf16.mxu1 %v3087_v21  ;;  %v5224_v30 = vld [vmem:[#allocation42_spill] sm:$0xff]  ;;  %v5225_v31 = vld [vmem:[#allocation43_spill] sm:$0xff]  ;;  %v5247_v40 = vld [vmem:[#allocation65_spill] sm:$0xff] }
 0x15e   :  { %v1162_v26 = vpop.f32.mrf.mxu0  ;;  %v1233_v27 = vpop.f32.mrf.mxu1  ;;  %v5241_v21 = vld [vmem:[#allocation59_spill] sm:$0xff]  ;;  %v5248_v39 = vld [vmem:[#allocation66_spill] sm:$0xff]  ;;  %v5250_v43 = vld [vmem:[#allocation68_spill] sm:$0xff] }
 0x15f   :  { %2106 = vmatpush1.bf16.msra.mxu0 %v5219_v7  ;;  %2177 = vmatpush1.bf16.msra.mxu1 %v5220_v49  ;;  %v5249_v35 = vld [vmem:[#allocation67_spill] sm:$0xff]  ;;  %v5251_v27 = vld [vmem:[#allocation69_spill] sm:$0xff]  ;;  %v5252_v7 = vld [vmem:[#allocation70_spill] sm:$0xff] }
 0x160   :  { %2107 = vmatprep.subr.bf16.mxu0 %v5221_v50  ;;  %2178 = vmatprep.subr.bf16.mxu1 %v5222_v51  ;;  %v1163_v20 = vpop.f32.mrf.mxu0  ;;  %v1234_v54 = vpop.f32.mrf.mxu1  ;;  %v3085_v26 = vld [vmem:[%s5031_s3] ss:$8 sps:$4 sm:$0xff]   ;;  %v3088_v49 = vld [vmem:[%s5031_s3 + $0x14] ss:$8 sps:$4 sm:$0xff]  }
 0x163   :  { %2108 = vmatpush2.bf16.msra.mxu0 %v5223_v28  ;;  %2179 = vmatpush2.bf16.msra.mxu1 %v5224_v30 }
 0x164   :  { %2109 = vmatprep.subr.bf16.mxu0 %v5225_v31  ;;  %2180 = vmatprep.subr.bf16.mxu1 %v5226_v59 }
 0x167   :  { %2110 = vmatpush2.bf16.msra.mxu0 %v5227_v14  ;;  %2181 = vmatpush2.bf16.msra.mxu1 %v5228_v16 }
 0x168   :  { %2111 = vmatprep.subr.bf16.mxu0 %v5229_v60  ;;  %2182 = vmatprep.subr.bf16.mxu1 %v5230_v61 }
 0x16b   :  { %2112 = vmatpush2.bf16.msra.mxu0 %v5231_v62  ;;  %2183 = vmatpush2.bf16.msra.mxu1 %v5232_v17 }
 0x16c   :  { %2113 = vmatprep.subr.bf16.mxu0 %v5233_v10  ;;  %2184 = vmatprep.subr.bf16.mxu1 %v5234_v3 }
 0x16f   :  { %2114 = vmatpush2.bf16.msra.mxu0 %v5235_v6  ;;  %2185 = vmatpush2.bf16.msra.mxu1 %v5236_v25 }
 0x170   :  { %2115 = vmatprep.subr.bf16.mxu0 %v5237_v18  ;;  %2186 = vmatprep.subr.bf16.mxu1 %v5238_v9 }
 0x173   :  { %2116 = vmatpush2.bf16.msra.mxu0 %v5239_v19  ;;  %2187 = vmatpush2.bf16.msra.mxu1 %v5240_v32 }
 0x174   :  { %2117 = vmatprep.subr.bf16.mxu0 %v5241_v21  ;;  %2188 = vmatprep.subr.bf16.mxu1 %v5242_v22 }
 0x177   :  { %2118 = vmatpush2.bf16.msra.mxu0 %v5243_v15  ;;  %2189 = vmatpush2.bf16.msra.mxu1 %v5244_v11 }
 0x178   :  { %2119 = vmatprep.subr.bf16.mxu0 %v5245_v23  ;;  %2190 = vmatprep.subr.bf16.mxu1 %v5246_v24 }
 0x17b   :  { %2120 = vmatpush2.bf16.msra.mxu0 %v5247_v40  ;;  %2191 = vmatpush2.bf16.msra.mxu1 %v5248_v39 }
 0x17c   :  { %2121 = vmatprep.subr.bf16.mxu0 %v5249_v35  ;;  %2192 = vmatprep.subr.bf16.mxu1 %v5250_v43 }
 0x17f   :  { %2122 = vmatpush2.bf16.msra.mxu0 %v5251_v27  ;;  %2193 = vmatpush2.bf16.msra.mxu1 %v5252_v7 }
 0x182   :  { %v1627_v50 = vpop.f32.mrf.mxu0  ;;  %v1698_v51 = vpop.f32.mrf.mxu1  ;;  %2124 = vmatmul.mubr.bf16.vlgmr.msra.gmra.mxu0 %v3085_v26  ;;  %2195 = vmatmul.mubr.bf16.vlgmr.msra.gmra.mxu1 %v3085_v26 }
 0x183   :  { %v4772_v20 = vadd.f32 %v1627_v50, %v4601_v46  ;;  %v4775_v54 = vadd.f32 %v1698_v51, %v4604_v48  ;;  %2133 = vmatprep.mubr.bf16.mxu0 %v3088_v49  ;;  %2204 = vmatprep.mubr.bf16.mxu1 %v3088_v49  ;;  %v3090_v46 = vld [vmem:[%s5031_s3 + $0x10] ss:$8 sps:$4 sm:$0xff]  }
 0x184   :  { %v1629_v28 = vpop.f32.mrf.mxu0  ;;  %v1700_v30 = vpop.f32.mrf.mxu1 }
 0x185   :  { %v4778_v31 = vadd.f32 %v1629_v28, %v4611_v56  ;;  %v4781_v59 = vadd.f32 %v1700_v30, %v4614_v58  ;;  %v3091_v56 = vld [vmem:[%s5031_s3 + $0x24] ss:$8 sps:$4 sm:$0xff]  }
 0x186   :  { %v1631_v14 = vpop.f32.mrf.mxu0  ;;  %v1702_v16 = vpop.f32.mrf.mxu1 }
 0x187   :  { %v4787_v60 = vadd.f32 %v1631_v14, %v4620_v63  ;;  %v4790_v48 = vadd.f32 %v1702_v16, %v4623_v1 }
 0x188   :  { %v1633_v61 = vpop.f32.mrf.mxu0  ;;  %v1704_v62 = vpop.f32.mrf.mxu1 }
 0x189   :  { %v4796_v58 = vadd.f32 %v1633_v61, %v4630_v29  ;;  %v4799_v17 = vadd.f32 %v1704_v62, %v4633_v13  ;;  %v1769_v29 = vld [vmem:[%s5031_s3 + $0x30] sm:$0xff] }
 0x18a   :  { %v1637_v10 = vpop.f32.mrf.mxu0  ;;  %v1708_v3 = vpop.f32.mrf.mxu1  ;;  %2134 = vmatmul.mubr.bf16.gmra.mxu0 %v3090_v46  ;;  %2205 = vmatmul.mubr.bf16.gmra.mxu1 %v3090_v46  ;;  %v2749_v21 = vcombine.high %v1769_v29, %v1769_v29  ;;  %v2748_v43 = vcombine.low %v1769_v29, %v1769_v29 }
 0x18b   :  { %v4802_v63 = vadd.f32 %v1637_v10, %v4639_v8  ;;  %v4805_v1 = vadd.f32 %v1708_v3, %v4642_v34  ;;  %2143 = vmatprep.mubr.bf16.mxu0 %v3091_v56  ;;  %2214 = vmatprep.mubr.bf16.mxu1 %v3091_v56  ;;  %v3093_v34 = vld [vmem:[%s5031_s3 + $0x20] ss:$8 sps:$4 sm:$0xff]  }
 0x18c   :  { %v1639_v6 = vpop.f32.mrf.mxu0  ;;  %v1710_v25 = vpop.f32.mrf.mxu1 }
 0x18d   :  { %v4811_v13 = vadd.f32 %v1639_v6, %v4649_v41  ;;  %v4814_v18 = vadd.f32 %v1710_v25, %v4652_v42 }
 0x18e   :  { %v1641_v9 = vpop.f32.mrf.mxu0  ;;  %v1712_v8 = vpop.f32.mrf.mxu1 }
 0x18f   :  { %v4820_v19 = vadd.f32 %v1641_v9, %v4658_v44  ;;  %v4823_v32 = vadd.f32 %v1712_v8, %v4661_v45 }
 0x190   :  { %v1643_v22 = vpop.f32.mrf.mxu0  ;;  %v1714_v15 = vpop.f32.mrf.mxu1 }
 0x191   :  { %5253 = vst [vmem:[#allocation4_spill] sm:$0xff] %v4823_v32  ;;  %v4826_v41 = vadd.f32 %v1643_v22, %v4668_v52  ;;  %v4829_v42 = vadd.f32 %v1714_v15, %v4671_v53 }
 0x192   :  { %v1647_v11 = vpop.f32.mrf.mxu0  ;;  %v1718_v23 = vpop.f32.mrf.mxu1  ;;  %2144 = vmatmul.mubr.bf16.gmra.mxu0 %v3093_v34  ;;  %2215 = vmatmul.mubr.bf16.gmra.mxu1 %v3093_v34 }
 0x193   :  { %5254 = vst [vmem:[#allocation5_spill] sm:$0xff] %v4826_v41  ;;  %5255 = vst [vmem:[#allocation6_spill] sm:$0xff] %v4829_v42  ;;  %v4832_v24 = vadd.f32 %v1647_v11, %v4677_v55  ;;  %v4835_v44 = vadd.f32 %v1718_v23, %v4680_v57  ;;  %2153 = vmatprep.mubr.bf16.mxu0 %v2749_v21  ;;  %2224 = vmatprep.mubr.bf16.mxu1 %v2749_v21 }
 0x194   :  { %v1649_v45 = vpop.f32.mrf.mxu0  ;;  %v1720_v40 = vpop.f32.mrf.mxu1 }
 0x195   :  { %5256 = vst [vmem:[#allocation7_spill] sm:$0xff] %v4832_v24  ;;  %5257 = vst [vmem:[#allocation8_spill] sm:$0xff] %v4835_v44  ;;  %v4838_v52 = vadd.f32 %v1649_v45, %v4687_v0  ;;  %v4841_v53 = vadd.f32 %v1720_v40, %v4690_v2 }
 0x196   :  { %v1651_v39 = vpop.f32.mrf.mxu0  ;;  %v1722_v35 = vpop.f32.mrf.mxu1 }
 0x197   :  { %5258 = vst [vmem:[#allocation71_spill] sm:$0xff] %v4838_v52  ;;  %5259 = vst [vmem:[#allocation9_spill] sm:$0xff] %v4841_v53  ;;  %v4844_v26 = vadd.f32 %v1651_v39, %v4695_v4  ;;  %v4847_v55 = vadd.f32 %v1722_v35, %v4698_v5 }
 0x198   :  { %v1653_v57 = vpop.f32.mrf.mxu0  ;;  %v1724_v27 = vpop.f32.mrf.mxu1 }
 0x199   :  { %5260 = vst [vmem:[#allocation10_spill] sm:$0xff] %v4844_v26  ;;  %5261 = vst [vmem:[#allocation11_spill] sm:$0xff] %v4847_v55  ;;  %v4850_v7 = vadd.f32 %v1653_v57, %v4705_v33  ;;  %v4853_v0 = vadd.f32 %v1724_v27, %v4708_v36 }
 0x19a   :  { %v1657_v49 = vpop.f32.mrf.mxu0  ;;  %v1728_v2 = vpop.f32.mrf.mxu1  ;;  %2154 = vmatmul.mubr.bf16.gmra.mxu0 %v2748_v43  ;;  %2225 = vmatmul.mubr.bf16.gmra.mxu1 %v2748_v43 }
 0x19b   :  { %5262 = vst [vmem:[#allocation12_spill] sm:$0xff] %v4850_v7  ;;  %5263 = vst [vmem:[#allocation72_spill] sm:$0xff] %v4853_v0  ;;  %v4856_v50 = vadd.f32 %v1657_v49, %v4716_v37  ;;  %v4859_v4 = vadd.f32 %v1728_v2, %v4719_v38 }
 0x19c   :  { %v1659_v5 = vpop.f32.mrf.mxu0  ;;  %v1730_v51 = vpop.f32.mrf.mxu1 }
 0x19d   :  { %5264 = vst [vmem:[#allocation73_spill] sm:$0xff] %v4856_v50  ;;  %5265 = vst [vmem:[#allocation74_spill] sm:$0xff] %v4859_v4  ;;  %v4862_v28 = vadd.f32 %v1659_v5, %v4726_v47  ;;  %v4865_v33 = vadd.f32 %v1730_v51, %v4729_v12 }
 0x19e   :  { %v1661_v36 = vpop.f32.mrf.mxu0  ;;  %v1732_v30 = vpop.f32.mrf.mxu1 }
 0x19f   :  { %5266 = vst [vmem:[#allocation75_spill] sm:$0xff] %v4862_v28  ;;  %5267 = vst [vmem:[#allocation13_spill] sm:$0xff] %v4865_v33 }
 0x1a0   :  { %v1662_v14 = vpop.f32.mrf.mxu0  ;;  %v1733_v16 = vpop.f32.mrf.mxu1 }
 0x1c2   :  { %v1804_v46 = vpop.f32.mrf.mxu0  ;;  %v1875_v56 = vpop.f32.mrf.mxu1 }
 0x1c4   :  { %v4867_v61 = vpop.f32.mrf.mxu0  ;;  %v4869_v37 = vpop.f32.mrf.mxu1 }
 0x1c6   :  { %v1808_v38 = vpop.f32.mrf.mxu0  ;;  %v1879_v62 = vpop.f32.mrf.mxu1 }
 0x1c8   :  { %v4871_v10 = vpop.f32.mrf.mxu0  ;;  %v4873_v3 = vpop.f32.mrf.mxu1 }
 0x1ca   :  { %v1814_v47 = vpop.f32.mrf.mxu0  ;;  %v1885_v6 = vpop.f32.mrf.mxu1 }
 0x1cc   :  { %v4875_v12 = vpop.f32.mrf.mxu0  ;;  %v4877_v25 = vpop.f32.mrf.mxu1 }
 0x1ce   :  { %v1818_v29 = vpop.f32.mrf.mxu0  ;;  %v1889_v9 = vpop.f32.mrf.mxu1 }
 0x1d0   :  { %v4879_v8 = vpop.f32.mrf.mxu0  ;;  %v4881_v34 = vpop.f32.mrf.mxu1 }
 0x1d2   :  { %v1824_v21 = vpop.f32.mrf.mxu0  ;;  %v1895_v22 = vpop.f32.mrf.mxu1 }
 0x1d4   :  { %v4883_v15 = vpop.f32.mrf.mxu0  ;;  %v4885_v11 = vpop.f32.mrf.mxu1 }
 0x1d6   :  { %v1828_v23 = vpop.f32.mrf.mxu0  ;;  %v1899_v45 = vpop.f32.mrf.mxu1 }
 0x1d8   :  { %v4887_v40 = vpop.f32.mrf.mxu0  ;;  %v4889_v39 = vpop.f32.mrf.mxu1 }
 0x1da   :  { %v1834_v35 = vpop.f32.mrf.mxu0  ;;  %v1905_v43 = vpop.f32.mrf.mxu1 }
 0x1dc   :  { %v4891_v57 = vpop.f32.mrf.mxu0  ;;  %v4893_v27 = vpop.f32.mrf.mxu1 }
 0x1dd   :  { %5268 = vst [vmem:[#allocation14_spill] sm:$0xff] %v4891_v57  ;;  %5269 = vst [vmem:[#allocation15_spill] sm:$0xff] %v4893_v27 }
 0x1de   :  { %v1838_v49 = vpop.f32.mrf.mxu0  ;;  %v1909_v2 = vpop.f32.mrf.mxu1 }
 0x1e0   :  { %v1839_v5 = vpop.f32.mrf.mxu0  ;;  %v1910_v51 = vpop.f32.mrf.mxu1 }
 0x202   :  { %v1946_v36 = vpop.f32.mrf.mxu0  ;;  %v2017_v30 = vpop.f32.mrf.mxu1 }
 0x203   :  { %v1947_v14 = vadd.f32 %v1946_v36, %v1804_v46  ;;  %v2018_v16 = vadd.f32 %v2017_v30, %v1875_v56 }
 0x204   :  { %v1948_v33 = vpop.f32.mrf.mxu0  ;;  %v2019_v28 = vpop.f32.mrf.mxu1 }
 0x206   :  { %v1950_v4 = vpop.f32.mrf.mxu0  ;;  %v2021_v50 = vpop.f32.mrf.mxu1 }
 0x207   :  { %v4895_v0 = vadd.f32 %v1950_v4, %v1808_v38  ;;  %v4897_v7 = vadd.f32 %v2021_v50, %v1879_v62 }
 0x208   :  { %v1952_v55 = vpop.f32.mrf.mxu0  ;;  %v2023_v26 = vpop.f32.mrf.mxu1 }
 0x209   :  { %v1953_v41 = vadd.f32 %v1952_v55, %v4871_v10 }
 0x20a   :  { %v1956_v53 = vpop.f32.mrf.mxu0  ;;  %v2027_v27 = vpop.f32.mrf.mxu1 }
 0x20b   :  { %v4899_v49 = vadd.f32 %v1956_v53, %v1814_v47  ;;  %v4901_v2 = vadd.f32 %v2027_v27, %v1885_v6 }
 0x20c   :  { %v1958_v5 = vpop.f32.mrf.mxu0  ;;  %v2029_v51 = vpop.f32.mrf.mxu1 }
 0x20e   :  { %v1960_v46 = vpop.f32.mrf.mxu0  ;;  %v2031_v56 = vpop.f32.mrf.mxu1 }
 0x20f   :  { %v4903_v36 = vadd.f32 %v1960_v46, %v1818_v29  ;;  %v4905_v30 = vadd.f32 %v2031_v56, %v1889_v9 }
 0x210   :  { %v1962_v4 = vpop.f32.mrf.mxu0  ;;  %v2033_v38 = vpop.f32.mrf.mxu1 }
 0x212   :  { %v1966_v50 = vpop.f32.mrf.mxu0  ;;  %v2037_v62 = vpop.f32.mrf.mxu1 }
 0x213   :  { %v4907_v52 = vadd.f32 %v1966_v50, %v1824_v21  ;;  %v4909_v44 = vadd.f32 %v2037_v62, %v1895_v22 }
 0x214   :  { %v1968_v53 = vpop.f32.mrf.mxu0  ;;  %v2039_v47 = vpop.f32.mrf.mxu1 }
 0x215   :  { %5270 = vst [vmem:[#allocation16_spill] sm:$0xff] %v4907_v52  ;;  %5271 = vst [vmem:[#allocation17_spill] sm:$0xff] %v4909_v44 }
 0x216   :  { %v1970_v6 = vpop.f32.mrf.mxu0  ;;  %v2041_v27 = vpop.f32.mrf.mxu1 }
 0x217   :  { %v4911_v57 = vadd.f32 %v1970_v6, %v1828_v23  ;;  %v4913_v24 = vadd.f32 %v2041_v27, %v1899_v45  ;;  %v2305_v45 = vlaneseq }
 0x218   :  { %v4915_v29 = vpop.f32.mrf.mxu0  ;;  %v4917_v9 = vpop.f32.mrf.mxu1 }
 0x219   :  { %5272 = vst [vmem:[#allocation18_spill] sm:$0xff] %v4911_v57  ;;  %5273 = vst [vmem:[#allocation19_spill] sm:$0xff] %v4913_v24  ;;  %v2306_v27 = vshrl.u32 %v2305_v45, 7  ;;  %v2303_v57 = vld [vmem:[%s5032_s5] sm:$0x3] }
 0x21a   :  { %v1976_v46 = vpop.f32.mrf.mxu0  ;;  %v2047_v56 = vpop.f32.mrf.mxu1 }
 0x21b   :  { %v4919_v42 = vadd.f32 %v1976_v46, %v1834_v35  ;;  %v4921_v21 = vadd.f32 %v2047_v56, %v1905_v43  ;;  %v2307_v24 = vsub.s32 0, %v2306_v27  ;;  %v2311_v46 = vsub.s32 1, %v2306_v27 }
 0x21c   :  { %v4923_v22 = vpop.f32.mrf.mxu0  ;;  %v4925_v50 = vpop.f32.mrf.mxu1  ;;  %v1949_v43 = vadd.f32 %v1948_v33, %v4867_v61  ;;  %v2020_v56 = vadd.f32 %v2019_v28, %v4869_v37  ;;  %v2024_v27 = vadd.f32 %v2023_v26, %v4873_v3 }
 0x21d   :  { %5274 = vst [vmem:[#allocation20_spill] sm:$0xff] %v4919_v42  ;;  %5275 = vst [vmem:[#allocation21_spill] sm:$0xff] %v4921_v21  ;;  %v4938_v32 = vrot.slane %v2303_v57, %v2311_v46 }
 0x21e   :  { %5276 = vst [vmem:[#allocation22_spill] sm:$0xff] %v4923_v22  ;;  %5277 = vst [vmem:[#allocation23_spill] sm:$0xff] %v4925_v50  ;;  %v1980_v62 = vpop.f32.mrf.mxu0  ;;  %v2051_v44 = vpop.f32.mrf.mxu1 }
 0x21f   :  { %v4932_v62 = vrot.slane %v2303_v57, %v2307_v24 }
 0x220   :  { %v1981_v23 = vpop.f32.mrf.mxu0  ;;  %v2052_v6 = vpop.f32.mrf.mxu1 }
 0x242   :  { %v2125_v52 = vpop.f32.mrf.mxu0  ;;  %v2196_v35 = vpop.f32.mrf.mxu1 }
 0x243   :  { %v2233_v21 = vadd.f32 %v2125_v52, %v1947_v14  ;;  %v2235_v42 = vadd.f32 %v2196_v35, %v2018_v16 }
 0x244   :  { %v2127_v44 = vpop.f32.mrf.mxu0  ;;  %v2198_v23 = vpop.f32.mrf.mxu1 }
 0x245   :  { %v2261_v6 = vmax.f32 %v4772_v20, %v2233_v21  ;;  %v2263_v45 = vmax.f32 %v4775_v54, %v2235_v42  ;;  %v2234_v50 = vadd.f32 %v2127_v44, %v1949_v43  ;;  %v2236_v22 = vadd.f32 %v2198_v23, %v2020_v56 }
 0x246   :  { %v2129_v33 = vpop.f32.mrf.mxu0  ;;  %v2200_v28 = vpop.f32.mrf.mxu1  ;;  %v1959_v20 = vadd.f32 %v1958_v5, %v4875_v12  ;;  %v2030_v54 = vadd.f32 %v2029_v51, %v4877_v25  ;;  %v1963_v42 = vadd.f32 %v1962_v4, %v4879_v8  ;;  %v2040_v8 = vadd.f32 %v2039_v47, %v4885_v11 }
 0x247   :  { %v2289_v52 = vmax.f32 %v2261_v6, %v2263_v45  ;;  %v2262_v24 = vmax.f32 %v4778_v31, %v2234_v50  ;;  %v2264_v61 = vmax.f32 %v4781_v59, %v2236_v22  ;;  %v2237_v37 = vadd.f32 %v2129_v33, %v4895_v0 }
 0x248   :  { %v2239_v55 = vadd.f32 %v2200_v28, %v4897_v7  ;;  %v2131_v26 = vpop.f32.mrf.mxu0  ;;  %v2202_v10 = vpop.f32.mrf.mxu1  ;;  %v2034_v59 = vadd.f32 %v2033_v38, %v4881_v34  ;;  %v1969_v0 = vadd.f32 %v1968_v53, %v4883_v15  ;;  %v1973_v11 = vadd.f32 %v4915_v29, %v4887_v40 }
 0x249   :  { %v2315_v3 = vadd.f32 %v4932_v62, %v2289_v52  ;;  %v2290_v57 = vmax.f32 %v2262_v24, %v2264_v61  ;;  %v2265_v14 = vmax.f32 %v4787_v60, %v2237_v37  ;;  %v2238_v31 = vadd.f32 %v2131_v26, %v1953_v41  ;;  %v5279_v24 = vld [vmem:[#allocation5_spill] sm:$0xff]  ;;  %v5280_v37 = vld [vmem:[#allocation6_spill] sm:$0xff] }
 0x24a   :  { %v2267_v12 = vmax.f32 %v4790_v48, %v2239_v55  ;;  %v2240_v16 = vadd.f32 %v2202_v10, %v2024_v27  ;;  %v2135_v25 = vpop.f32.mrf.mxu0  ;;  %v2206_v5 = vpop.f32.mrf.mxu1  ;;  %v5282_v10 = vld [vmem:[#allocation17_spill] sm:$0xff] }
 0x24b   :  { %v2316_v7 = vadd.f32 %v4938_v32, %v2290_v57  ;;  %v2266_v51 = vmax.f32 %v4796_v58, %v2238_v31  ;;  %v2241_v4 = vadd.f32 %v2135_v25, %v4899_v49  ;;  %v2329_v21 = vmax.f32 %v2315_v3, 0.0 }
 0x24c   :  { %v2291_v60 = vmax.f32 %v2265_v14, %v2267_v12  ;;  %v2268_v41 = vmax.f32 %v4799_v17, %v2240_v16  ;;  %v2243_v34 = vadd.f32 %v2206_v5, %v4901_v2  ;;  %v2137_v15 = vpop.f32.mrf.mxu0  ;;  %v2208_v38 = vpop.f32.mrf.mxu1  ;;  %v5283_v12 = vld [vmem:[#allocation7_spill] sm:$0xff]  ;;  %v5284_v5 = vld [vmem:[#allocation14_spill] sm:$0xff] }
 0x24d   :  { %v2330_v48 = vmax.f32 %v2316_v7, 0.0  ;;  %v2269_v53 = vmax.f32 %v4802_v63, %v2241_v4  ;;  %v2242_v22 = vadd.f32 %v2137_v15, %v1959_v20  ;;  %v2244_v50 = vadd.f32 %v2208_v38, %v2030_v54  ;;  %v5281_v54 = vld [vmem:[#allocation16_spill] sm:$0xff]  ;;  %v5285_v7 = vld [vmem:[#allocation22_spill] sm:$0xff] }
 0x24e   :  { %v2317_v58 = vadd.f32 %v4932_v62, %v2291_v60  ;;  %v2292_v47 = vmax.f32 %v2266_v51, %v2268_v41  ;;  %v2271_v49 = vmax.f32 %v4805_v1, %v2243_v34  ;;  %v2139_v35 = vpop.f32.mrf.mxu0  ;;  %v2210_v46 = vpop.f32.mrf.mxu1  ;;  %v2044_v63 = vadd.f32 %v4917_v9, %v4889_v39  ;;  %v5278_v9 = vld [vmem:[#allocation4_spill] sm:$0xff] }
 0x24f   :  { %v2757_v17 = vpack.c.bf16 %v2330_v48, %v2329_v21  ;;  %v2270_v2 = vmax.f32 %v4811_v13, %v2242_v22  ;;  %v2272_v43 = vmax.f32 %v4814_v18, %v2244_v50  ;;  %v2245_v56 = vadd.f32 %v2139_v35, %v4903_v36  ;;  %v5286_v21 = vld [vmem:[#allocation8_spill] sm:$0xff] }
 0x250   :  { %v2318_v44 = vadd.f32 %v4938_v32, %v2292_v47  ;;  %v2293_v40 = vmax.f32 %v2269_v53, %v2271_v49  ;;  %v2247_v29 = vadd.f32 %v2210_v46, %v4905_v30  ;;  %v2141_v23 = vpop.f32.mrf.mxu0  ;;  %v2212_v6 = vpop.f32.mrf.mxu1  ;;  %v2331_v36 = vmax.f32 %v2317_v58, 0.0  ;;  %v5287_v53 = vld [vmem:[#allocation71_spill] sm:$0xff]  ;;  %v5289_v49 = vld [vmem:[#allocation9_spill] sm:$0xff] }
 0x251   :  { %2387 = vst [vmem:[%s5033_s6] sm:$0xff] %v2757_v17  ;;  %v2294_v1 = vmax.f32 %v2270_v2, %v2272_v43  ;;  %v2273_v13 = vmax.f32 %v4820_v19, %v2245_v56  ;;  %v2246_v18 = vadd.f32 %v2141_v23, %v1963_v42  ;;  %v2248_v45 = vadd.f32 %v2212_v6, %v2034_v59  ;;  %v5290_v46 = vld [vmem:[#allocation19_spill] sm:$0xff]  ;;  %v5291_v56 = vld [vmem:[#allocation10_spill] sm:$0xff] }
 0x252   :  { %v2332_v27 = vmax.f32 %v2318_v44, 0.0  ;;  %v2319_v39 = vadd.f32 %v4932_v62, %v2293_v40  ;;  %v2275_v33 = vmax.f32 %v5278_v9, %v2247_v29  ;;  %v2145_v28 = vpop.f32.mrf.mxu0  ;;  %v2216_v52 = vpop.f32.mrf.mxu1  ;;  %v1979_v51 = vadd.f32 %v5285_v7, %v5284_v5  ;;  %v5292_v23 = vld [vmem:[#allocation15_spill] sm:$0xff] }
 0x253   :  { %v2320_v30 = vadd.f32 %v4938_v32, %v2294_v1  ;;  %v2274_v61 = vmax.f32 %v5279_v24, %v2246_v18  ;;  %v2276_v20 = vmax.f32 %v5280_v37, %v2248_v45  ;;  %v2249_v55 = vadd.f32 %v2145_v28, %v5281_v54  ;;  %v5293_v6 = vld [vmem:[#allocation23_spill] sm:$0xff]  ;;  %v5297_v24 = vld [vmem:[#allocation20_spill] sm:$0xff]  ;;  %v5298_v37 = vld [vmem:[#allocation21_spill] sm:$0xff] }
 0x254   :  { %v2758_v26 = vpack.c.bf16 %v2332_v27, %v2331_v36  ;;  %v2333_v19 = vmax.f32 %v2319_v39, 0.0  ;;  %v2295_v42 = vmax.f32 %v2273_v13, %v2275_v33  ;;  %v2251_v3 = vadd.f32 %v2216_v52, %v5282_v10  ;;  %v2147_v57 = vpop.f32.mrf.mxu0  ;;  %v2218_v14 = vpop.f32.mrf.mxu1  ;;  %v5294_v45 = vld [vmem:[#allocation11_spill] sm:$0xff]  ;;  %v5295_v33 = vld [vmem:[#allocation12_spill] sm:$0xff] }
 0x255   :  { %v2334_v31 = vmax.f32 %v2320_v30, 0.0  ;;  %v2296_v59 = vmax.f32 %v2274_v61, %v2276_v20  ;;  %v2277_v16 = vmax.f32 %v5283_v12, %v2249_v55  ;;  %v2250_v25 = vadd.f32 %v2147_v57, %v1969_v0  ;;  %v5288_v0 = vld [vmem:[#allocation18_spill] sm:$0xff]  ;;  %v5296_v52 = vld [vmem:[#allocation72_spill] sm:$0xff]  ;;  %v5301_v7 = vld [vmem:[#allocation75_spill] sm:$0xff] }
 0x256   :  { %2388 = vst [vmem:[%s5033_s6 + $0x8] sm:$0xff] %v2758_v26  ;;  %v2321_v4 = vadd.f32 %v4932_v62, %v2295_v42  ;;  %v2279_v60 = vmax.f32 %v5286_v21, %v2251_v3  ;;  %v2252_v41 = vadd.f32 %v2218_v14, %v2040_v8  ;;  %v2149_v34 = vpop.f32.mrf.mxu0  ;;  %v2220_v15 = vpop.f32.mrf.mxu1  ;;  %v2050_v1 = vadd.f32 %v5293_v6, %v5292_v23  ;;  %v5302_v21 = vld [vmem:[#allocation13_spill] sm:$0xff] }
 0x257   :  { %v2759_v38 = vpack.c.bf16 %v2334_v31, %v2333_v19  ;;  %v2322_v48 = vadd.f32 %v4938_v32, %v2296_v59  ;;  %v2278_v22 = vmax.f32 %v5287_v53, %v2250_v25  ;;  %v2253_v50 = vadd.f32 %v2149_v34, %v5288_v0  ;;  %v5299_v19 = vld [vmem:[#allocation73_spill] sm:$0xff]  ;;  %v5300_v59 = vld [vmem:[#allocation74_spill] sm:$0xff] }
 0x258   :  { %v2335_v58 = vmax.f32 %v2321_v4, 0.0  ;;  %v2297_v47 = vmax.f32 %v2277_v16, %v2279_v60  ;;  %v2280_v35 = vmax.f32 %v5289_v49, %v2252_v41  ;;  %v2255_v17 = vadd.f32 %v2220_v15, %v5290_v46  ;;  %v2151_v2 = vpop.f32.mrf.mxu0  ;;  %v2222_v43 = vpop.f32.mrf.mxu1 }
 0x259   :  { %2389 = vst [vmem:[%s5033_s6 + $0x10] sm:$0xff] %v2759_v38  ;;  %v2336_v8 = vmax.f32 %v2322_v48, 0.0  ;;  %v2281_v44 = vmax.f32 %v5291_v56, %v2253_v50  ;;  %v2254_v40 = vadd.f32 %v2151_v2, %v1973_v11  ;;  %v2256_v29 = vadd.f32 %v2222_v43, %v2044_v63 }
 0x25a   :  { %v2323_v13 = vadd.f32 %v4932_v62, %v2297_v47  ;;  %v2298_v18 = vmax.f32 %v2278_v22, %v2280_v35  ;;  %v2283_v36 = vmax.f32 %v5294_v45, %v2255_v17  ;;  %v2155_v27 = vpop.f32.mrf.mxu0  ;;  %v2226_v39 = vpop.f32.mrf.mxu1 }
 0x25b   :  { %v2760_v9 = vpack.c.bf16 %v2336_v8, %v2335_v58  ;;  %v2282_v28 = vmax.f32 %v5295_v33, %v2254_v40  ;;  %v2284_v30 = vmax.f32 %v5296_v52, %v2256_v29  ;;  %v2257_v61 = vadd.f32 %v2155_v27, %v5297_v24 }
 0x25c   :  { %v2324_v11 = vadd.f32 %v4938_v32, %v2298_v18  ;;  %v2299_v63 = vmax.f32 %v2281_v44, %v2283_v36  ;;  %v2259_v20 = vadd.f32 %v2226_v39, %v5298_v37  ;;  %v2157_v54 = vpop.f32.mrf.mxu0  ;;  %v2228_v55 = vpop.f32.mrf.mxu1  ;;  %v2337_v57 = vmax.f32 %v2323_v13, 0.0 }
 0x25d   :  { %2390 = vst [vmem:[%s5033_s6 + $0x18] sm:$0xff] %v2760_v9  ;;  %v2300_v26 = vmax.f32 %v2282_v28, %v2284_v30  ;;  %v2285_v42 = vmax.f32 %v5299_v19, %v2257_v61  ;;  %v2258_v10 = vadd.f32 %v2157_v54, %v1979_v51  ;;  %v2260_v3 = vadd.f32 %v2228_v55, %v2050_v1 }
 0x25e   :  { %v2338_v14 = vmax.f32 %v2324_v11, 0.0  ;;  %v2325_v31 = vadd.f32 %v4932_v62, %v2299_v63  ;;  %v2287_v12 = vmax.f32 %v5300_v59, %v2259_v20  ;;  %v2159_v16 = vpop.f32.mrf.mxu0  ;;  %v2230_v25 = vpop.f32.mrf.mxu1 }
 0x25f   :  { %v2326_v5 = vadd.f32 %v4938_v32, %v2300_v26  ;;  %v2286_v4 = vmax.f32 %v5301_v7, %v2258_v10  ;;  %v2288_v60 = vmax.f32 %v5302_v21, %v2260_v3 }
 0x260   :  { %v2761_v41 = vpack.c.bf16 %v2338_v14, %v2337_v57  ;;  %v2301_v34 = vmax.f32 %v2285_v42, %v2287_v12  ;;  %v2160_v15 = vpop.f32.mrf.mxu0  ;;  %v2231_v38 = vpop.f32.mrf.mxu1  ;;  %v2339_v51 = vmax.f32 %v2325_v31, 0.0 }
 0x261   :  { %v2340_v48 = vmax.f32 %v2326_v5, 0.0  ;;  %v2302_v53 = vmax.f32 %v2286_v4, %v2288_v60 }
 0x262   :  { %2391 = vst [vmem:[%s5033_s6 + $0x20] sm:$0xff] %v2761_v41  ;;  %v2327_v22 = vadd.f32 %v4932_v62, %v2301_v34 }
 0x263   :  { %v2762_v0 = vpack.c.bf16 %v2340_v48, %v2339_v51  ;;  %v2328_v50 = vadd.f32 %v4938_v32, %v2302_v53 }
 0x264   :  { %v2341_v58 = vmax.f32 %v2327_v22, 0.0 }
 0x265   :  { %2392 = vst [vmem:[%s5033_s6 + $0x28] sm:$0xff] %v2762_v0  ;;  %v2342_v47 = vmax.f32 %v2328_v50, 0.0 }
 0x267   :  { %v2763_v49 = vpack.c.bf16 %v2342_v47, %v2341_v58 }
 0x269   :  { %2393 = vst [vmem:[%s5033_s6 + $0x30] sm:$0xff] %v2763_v49 }

</bundles_post_ra>
